<compile_context>
chip_gen: v7x
topology: tpu7x:2x2x1
jax: 0.10.0
libtpu: 0.0.40
codegen_flags: <defaults>
</compile_context>

<pallas_src>
import jax
import jax.numpy as jnp
from jax.experimental import pallas as pl
from jax.experimental.pallas import tpu as pltpu


MXU_DTYPE = jnp.bfloat16   # matmul-operand dtype; accumulation stays f32


# ----------------------------- Fused Pallas kernel ------------------------------

def _make_fused_kernel(S, tile_n, H, num_layers, mxu_dtype):
    """Kernel: num_layers-deep LSTM over S steps + fc2, transposed (lane = batch) layout."""
    G = 4 * H

    def kernel(*refs):
        # inputs : x (Din0, S*tile_n) bf16, then per layer (w_ih, w_hh, bias),
        #          then fc_w (Dout, H) bf16, fc_b (Dout, 1) f32
        # outputs: out (Dout, tile_n) f32
        # scratch: xproj_sc (4H, S*tile_n) f32, seq_sc (H, S*tile_n) f32
        x_ref = refs[0]
        layer_refs = refs[1:1 + 3 * num_layers]
        fc_w_ref = refs[1 + 3 * num_layers]
        fc_b_ref = refs[2 + 3 * num_layers]
        out_ref = refs[3 + 3 * num_layers]
        xproj_sc = refs[4 + 3 * num_layers]
        seq_sc = refs[5 + 3 * num_layers]

        h_last = None
        for l in range(num_layers):
            w_ih_ref = layer_refs[3 * l + 0]   # (4H, Din) bf16
            w_hh_ref = layer_refs[3 * l + 1]   # (4H, H)   bf16
            b_ref = layer_refs[3 * l + 2]      # (4H, 1)   f32

            in_vals = x_ref[...] if l == 0 else seq_sc[...].astype(mxu_dtype)

            # Input projection for ALL S timesteps as one lane-dense MXU matmul;
            # bias broadcast hoisted out of the recurrence.
            xproj_sc[...] = (
                jnp.dot(w_ih_ref[...], in_vals, preferred_element_type=jnp.float32)
                + b_ref[...])

            w_hh = w_hh_ref[...]               # resident bf16 (4H, H)
            write_seq = l != (num_layers - 1)

            def step(t, carry, w_hh=w_hh, write_seq=write_seq):
                h, c = carry                   # (H, tile_n) f32
                col = pl.multiple_of(t * tile_n, tile_n)
                # Recurrence-critical path: one (4H,H)@(H,tile_n) matmul per step.
                gates = (xproj_sc[:, pl.ds(col, tile_n)]
                         + jnp.dot(w_hh, h.astype(mxu_dtype),
                                   preferred_element_type=jnp.float32))
                # Gate rows pre-ordered [i, f, o, g]: one sigmoid over the 3H
                # block, one tanh over the last H block (sublane slices, free).
                sig = jax.nn.sigmoid(gates[0:3 * H, :])
                g_g = jnp.tanh(gates[3 * H:4 * H, :])
                i_g = sig[0:H, :]
                f_g = sig[H:2 * H, :]
                o_g = sig[2 * H:3 * H, :]
                c_new = f_g * c + i_g * g_g
                h_new = o_g * jnp.tanh(c_new)
                if write_seq:
                    # Inter-layer hidden sequence stays in VMEM for the next layer.
                    seq_sc[:, pl.ds(col, tile_n)] = h_new
                return (h_new, c_new)

            # Full unroll only for short sequences (LLO visibility without code blowup).
            unroll = True if S <= 16 else 8
            h_fin, _c_fin = jax.lax.fori_loop(
                0, S, step,
                (jnp.zeros((H, tile_n), jnp.float32),    # h0 = 0 (matches PyTorch)
                 jnp.zeros((H, tile_n), jnp.float32)),   # c0 = 0
                unroll=unroll)
            h_last = h_fin

        # Fused fc2 on the final hidden state; (Dout, tile_n) lane-dense store.
        out_ref[...] = (
            jnp.dot(fc_w_ref[...], h_last.astype(mxu_dtype),
                    preferred_element_type=jnp.float32)
            + fc_b_ref[...])

    return kernel


# ------------------------------ Parameter helpers ------------------------------

def init_params(key, feature_num, hidden_dim, sequence_out, num_layers):
    """PyTorch-layout synthetic params: w_ih (4H, in), w_hh (4H, H), gate order [i,f,g,o]."""
    scale = 1.0 / float(hidden_dim) ** 0.5
    params = {"lstm": []}
    for layer in range(num_layers):
        fin = feature_num if layer == 0 else hidden_dim
        key, k1, k2, k3, k4 = jax.random.split(key, 5)
        w_ih = jax.random.uniform(k1, (4 * hidden_dim, fin), jnp.float32, -scale, scale)
        w_hh = jax.random.uniform(k2, (4 * hidden_dim, hidden_dim), jnp.float32, -scale, scale)
        b_ih = jax.random.uniform(k3, (4 * hidden_dim,), jnp.float32, -scale, scale)
        b_hh = jax.random.uniform(k4, (4 * hidden_dim,), jnp.float32, -scale, scale)
        params["lstm"].append((w_ih, w_hh, b_ih, b_hh))
    key, k1, k2 = jax.random.split(key, 3)
    dout = feature_num * sequence_out
    params["fc2_w"] = jax.random.uniform(k1, (dout, hidden_dim), jnp.float32, -scale, scale)
    params["fc2_b"] = jax.random.uniform(k2, (dout,), jnp.float32, -scale, scale)
    return params


def _reorder_gate_rows(m, H):
    # PyTorch gate order along rows is [i, f, g, o]; reorder to [i, f, o, g] so the
    # three sigmoid gates form one contiguous 3H block (bias must match -> same fn).
    return jnp.concatenate([m[0:2 * H], m[3 * H:4 * H], m[2 * H:3 * H]], axis=0)


def _prepare_weights(params, H, F, F_pad, mxu_dtype):
    lstm_w = []
    for l, (w_ih, w_hh, b_ih, b_hh) in enumerate(params["lstm"]):
        w_ih_r = _reorder_gate_rows(w_ih, H)
        w_hh_r = _reorder_gate_rows(w_hh, H)
        b_r = _reorder_gate_rows(b_ih + b_hh, H)[:, None]          # (4H, 1) f32
        if l == 0 and F_pad != F:
            w_ih_r = jnp.pad(w_ih_r, ((0, 0), (0, F_pad - F)))     # zero-pad features
        lstm_w.append((w_ih_r.astype(mxu_dtype), w_hh_r.astype(mxu_dtype), b_r))
    fc_w = params["fc2_w"].astype(mxu_dtype)                        # (Dout, H)
    fc_b = params["fc2_b"][:, None]                                 # (Dout, 1) f32
    return lstm_w, fc_w, fc_b


def _choose_tile_n(N, S, H, budget_bytes=8 << 20, max_tile=256):
    """Largest 128-multiple batch tile whose f32 scratch (xproj 4H + seq H) fits the budget."""
    per_col = S * 5 * H * 4
    t = max(128, min(max_tile, (budget_bytes // max(per_col, 1)) // 128 * 128))
    n128 = -(-N // 128) * 128
    return int(min(t, n128))


# ------------------------------ Model wrapper ------------------------------

def vertex_lstm_forward(x, params, hidden_dim, sequence_out,
                        mxu_dtype=MXU_DTYPE, tile_n=None):
    """x: (B, feature_num, sequence_in, vertex_num) -> (B, sequence_out, feature_num, vertex_num)."""
    B, F, S, V = x.shape
    N = B * V
    H = hidden_dim
    G = 4 * H
    Dout = F * sequence_out
    num_layers = len(params["lstm"])

    if tile_n is None:
        tile_n = _choose_tile_n(N, S, H)
    n_tiles = -(-N // tile_n)
    N_pad = n_tiles * tile_n
    F_pad = max(8, -(-F // 8) * 8)          # pad feature (K) dim to a sublane multiple

    # permute(0,3,2,1) + reshape(B*V, S, F) exactly like the module, then per-tile
    # time-major layout: x_arr[j, f, t*tile_n + m] = sequence j*tile_n+m, time t, feat f.
    xp = jnp.transpose(x, (0, 3, 2, 1)).reshape(N, S, F)
    xp = jnp.pad(xp, ((0, N_pad - N), (0, 0), (0, F_pad - F)))
    x_arr = (xp.reshape(n_tiles, tile_n, S, F_pad)
               .transpose(0, 3, 2, 1)
               .reshape(n_tiles, F_pad, S * tile_n)
               .astype(mxu_dtype))          # pre-cast: halves the input HBM->VMEM DMA

    lstm_w, fc_w, fc_b = _prepare_weights(params, H, F, F_pad, mxu_dtype)

    inputs = [x_arr]
    in_specs = [pl.BlockSpec((None, F_pad, S * tile_n), lambda j: (j, 0, 0))]
    for (w_ih, w_hh, b) in lstm_w:
        inputs += [w_ih, w_hh, b]
        # Same block every grid step -> weights stay VMEM-resident (single DMA).
        in_specs += [pl.BlockSpec(w_ih.shape, lambda j: (0, 0)),
                     pl.BlockSpec(w_hh.shape, lambda j: (0, 0)),
                     pl.BlockSpec(b.shape, lambda j: (0, 0))]
    inputs += [fc_w, fc_b]
    in_specs += [pl.BlockSpec(fc_w.shape, lambda j: (0, 0)),
                 pl.BlockSpec(fc_b.shape, lambda j: (0, 0))]

    kernel = _make_fused_kernel(S, tile_n, H, num_layers, mxu_dtype)
    out = pl.pallas_call(
        kernel,
        out_shape=jax.ShapeDtypeStruct((n_tiles, Dout, tile_n), jnp.float32),
        grid_spec=pltpu.PrefetchScalarGridSpec(
            num_scalar_prefetch=0,
            grid=(n_tiles,),                 # batch tiles: independent sequences
            in_specs=in_specs,
            out_specs=pl.BlockSpec((None, Dout, tile_n), lambda j: (j, 0, 0)),
            scratch_shapes=[
                pltpu.VMEM((G, S * tile_n), jnp.float32),   # per-layer input projections
                pltpu.VMEM((H, S * tile_n), jnp.float32),   # inter-layer hidden sequence
            ]),
        compiler_params=pltpu.CompilerParams(
            dimension_semantics=("parallel",),              # megacore shard on v7x
            vmem_limit_bytes=32 * 1024 * 1024),             # explicit scoped-VMEM budget
    )(*inputs)

    # (n_tiles, Dout, tile_n) -> (N, Dout) -> (B, Sout, F, V), like the PyTorch module.
    out_flat = out.transpose(0, 2, 1).reshape(N_pad, Dout)[:N]
    return out_flat.reshape(B, V, sequence_out, F).transpose(0, 2, 3, 1)


# --------------------------- Pure-JAX reference ----------------------------

def vertex_lstm_ref(x, params, hidden_dim, sequence_out, mxu_dtype=jnp.float32):
    """Reference (batch-major layout); mxu_dtype mirrors the kernel's bf16-operand matmuls."""
    B, F, S, V = x.shape
    N = B * V
    H = hidden_dim

    def mxdot(a, b):
        return jnp.dot(a.astype(mxu_dtype), b.astype(mxu_dtype),
                       preferred_element_type=jnp.float32)

    xp = jnp.transpose(x, (0, 3, 2, 1)).reshape(N, S, F)
    seq = jnp.transpose(xp, (1, 0, 2)).astype(jnp.float32)   # (S, N, F)

    for (w_ih, w_hh, b_ih, b_hh) in params["lstm"]:
        b = (b_ih + b_hh)[None, :]

        def step(carry, x_t, w_ih=w_ih, w_hh=w_hh, b=b):
            h, c = carry
            gates = mxdot(x_t, w_ih.T) + mxdot(h, w_hh.T) + b
            i = jax.nn.sigmoid(gates[:, :H])
            f = jax.nn.sigmoid(gates[:, H:2 * H])
            g = jnp.tanh(gates[:, 2 * H:3 * H])
            o = jax.nn.sigmoid(gates[:, 3 * H:])
            c = f * c + i * g
            h = o * jnp.tanh(c)
            return (h, c), h

        init = (jnp.zeros((N, H), jnp.float32), jnp.zeros((N, H), jnp.float32))
        _, seq = jax.lax.scan(step, init, seq)

    h_last = seq[-1]
    out = mxdot(h_last, params["fc2_w"].T) + params["fc2_b"][None, :]
    return out.reshape(B, V, sequence_out, F).transpose(0, 2, 3, 1)


# ----------------------------------- Main -----------------------------------

if __name__ == "__main__":
    batch = 2
    feature_num = 4
    sequence_in = 8
    vertex_num = 4
    hidden_dim = 32
    sequence_out = 3
    num_layers = 2

    key = jax.random.PRNGKey(0)
    key, xkey = jax.random.split(key)
    x = jax.random.normal(xkey, (batch, feature_num, sequence_in, vertex_num), jnp.float32)

    params = init_params(key, feature_num, hidden_dim, sequence_out, num_layers)

    out = jax.block_until_ready(
        vertex_lstm_forward(x, params, hidden_dim, sequence_out))
    assert out.shape == (batch, sequence_out, feature_num, vertex_num), out.shape

    # Tight check vs. a precision-matched reference (bf16 MXU operands, f32 accum).
    ref_mx = jax.block_until_ready(
        vertex_lstm_ref(x, params, hidden_dim, sequence_out, mxu_dtype=MXU_DTYPE))
    assert jnp.allclose(out, ref_mx, atol=2e-3, rtol=2e-3), \
        float(jnp.max(jnp.abs(out - ref_mx)))

    # Loose sanity check vs. the full-f32 reference (bf16 operands shift numerics).
    ref_f32 = jax.block_until_ready(
        vertex_lstm_ref(x, params, hidden_dim, sequence_out, mxu_dtype=jnp.float32))
    assert jnp.allclose(out, ref_f32, atol=1e-1, rtol=1e-1), \
        float(jnp.max(jnp.abs(out - ref_f32)))

    print("KERNEL_OK")
</pallas_src>

<mosaic_0001>
module attributes {stable_mosaic.version = 11 : i64} {
  func.func @kernel(%arg0: i32, %arg1: memref<1x8x1024xbf16, #tpu.memory_space<vmem>>, %arg2: memref<128x8xbf16, #tpu.memory_space<vmem>>, %arg3: memref<128x32xbf16, #tpu.memory_space<vmem>>, %arg4: memref<128x1xf32, #tpu.memory_space<vmem>>, %arg5: memref<128x32xbf16, #tpu.memory_space<vmem>>, %arg6: memref<128x32xbf16, #tpu.memory_space<vmem>>, %arg7: memref<128x1xf32, #tpu.memory_space<vmem>>, %arg8: memref<12x32xbf16, #tpu.memory_space<vmem>>, %arg9: memref<12x1xf32, #tpu.memory_space<vmem>>, %arg10: memref<1x12x128xf32, #tpu.memory_space<vmem>>, %arg11: memref<128x1024xf32, #tpu.memory_space<vmem>>, %arg12: memref<32x1024xf32, #tpu.memory_space<vmem>>) attributes {dimension_semantics = [#tpu.dimension_semantics<parallel>], iteration_bounds = array<i64: 1>, scalar_prefetch = 0 : i64, scratch_operands = 2 : i64, tpu.core_type = #tpu.core_type<tc>, window_params = [{transform_indices = @transform_0, window_bounds = array<i64: 1, 8, 1024>}, {pipeline_mode = #tpu.pipeline_mode<synchronous>, transform_indices = @transform_1, window_bounds = array<i64: 128, 8>}, {pipeline_mode = #tpu.pipeline_mode<synchronous>, transform_indices = @transform_2, window_bounds = array<i64: 128, 32>}, {pipeline_mode = #tpu.pipeline_mode<synchronous>, transform_indices = @transform_3, window_bounds = array<i64: 128, 1>}, {pipeline_mode = #tpu.pipeline_mode<synchronous>, transform_indices = @transform_4, window_bounds = array<i64: 128, 32>}, {pipeline_mode = #tpu.pipeline_mode<synchronous>, transform_indices = @transform_5, window_bounds = array<i64: 128, 32>}, {pipeline_mode = #tpu.pipeline_mode<synchronous>, transform_indices = @transform_6, window_bounds = array<i64: 128, 1>}, {pipeline_mode = #tpu.pipeline_mode<synchronous>, transform_indices = @transform_7, window_bounds = array<i64: 12, 32>}, {pipeline_mode = #tpu.pipeline_mode<synchronous>, transform_indices = @transform_8, window_bounds = array<i64: 12, 1>}, {transform_indices = @transform_9, window_bounds = array<i64: 1, 12, 128>}]} {
    %c0 = arith.constant 0 : index
    %c0_0 = arith.constant 0 : index
    %c0_1 = arith.constant 0 : index
    %0 = vector.load %arg1[%c0, %c0_0, %c0_1] : memref<1x8x1024xbf16, #tpu.memory_space<vmem>>, vector<1x8x1024xbf16>
    %1 = vector.shape_cast %0 : vector<1x8x1024xbf16> to vector<8x1024xbf16>
    %c0_2 = arith.constant 0 : index
    %c0_3 = arith.constant 0 : index
    %2 = vector.load %arg2[%c0_2, %c0_3] : memref<128x8xbf16, #tpu.memory_space<vmem>>, vector<128x8xbf16>
    %cst = arith.constant dense<0.000000e+00> : vector<128x1024xf32>
    %3 = tpu.matmul %2, %1, %cst {dimension_numbers = #tpu.dot_dimension_numbers<[1], [0], [0], [1], [0, 0, 1, 1], [], []>} : vector<128x8xbf16>, vector<8x1024xbf16>, vector<128x1024xf32> -> vector<128x1024xf32>
    %c0_4 = arith.constant 0 : index
    %c0_5 = arith.constant 0 : index
    %4 = vector.load %arg4[%c0_4, %c0_5] : memref<128x1xf32, #tpu.memory_space<vmem>>, vector<128x1xf32>
    %5 = vector.broadcast %4 : vector<128x1xf32> to vector<128x1024xf32>
    %6 = arith.addf %3, %5 : vector<128x1024xf32>
    %c0_6 = arith.constant 0 : index
    %c0_7 = arith.constant 0 : index
    %7 = vector.load %arg11[%c0_6, %c0_7] : memref<128x1024xf32, #tpu.memory_space<vmem>>, vector<128x1024xf32>
    tpu.vector_store %arg11[%c0_6, %c0_7], %6 {strides = array<i32>} : memref<128x1024xf32, #tpu.memory_space<vmem>>, vector<128x1024xf32>,
    %c0_8 = arith.constant 0 : index
    %c0_9 = arith.constant 0 : index
    %8 = vector.load %arg3[%c0_8, %c0_9] : memref<128x32xbf16, #tpu.memory_space<vmem>>, vector<128x32xbf16>
    %cst_10 = arith.constant 0.000000e+00 : f32
    %9 = vector.broadcast %cst_10 : f32 to vector<32x128xf32>
    %cst_11 = arith.constant 0.000000e+00 : f32
    %10 = vector.broadcast %cst_11 : f32 to vector<32x128xf32>
    %c0_i32 = arith.constant 0 : i32
    %c128_i32 = arith.constant 128 : i32
    %11 = arith.muli %c0_i32, %c128_i32 : i32
    %12 = tpu.assume_multiple %11, 128 : i32
    %c0_12 = arith.constant 0 : index
    %13 = arith.index_cast %12 : i32 to index
    %14 = vector.load %arg11[%c0_12, %13] : memref<128x1024xf32, #tpu.memory_space<vmem>>, vector<128x128xf32>
    %15 = arith.truncf %9 : vector<32x128xf32> to vector<32x128xbf16>
    %cst_13 = arith.constant dense<0.000000e+00> : vector<128x128xf32>
    %16 = tpu.matmul %8, %15, %cst_13 {dimension_numbers = #tpu.dot_dimension_numbers<[1], [0], [0], [1], [0, 0, 1, 1], [], []>} : vector<128x32xbf16>, vector<32x128xbf16>, vector<128x128xf32> -> vector<128x128xf32>
    %17 = arith.addf %14, %16 : vector<128x128xf32>
    %18 = vector.extract_strided_slice %17 {offsets = [0, 0], sizes = [96, 128], strides = [1, 1]} : vector<128x128xf32> to vector<96x128xf32>
    %19 = arith.negf %18 : vector<96x128xf32>
    %20 = math.exp %19 : vector<96x128xf32>
    %cst_14 = arith.constant 1.000000e+00 : f32
    %21 = vector.broadcast %cst_14 : f32 to vector<96x128xf32>
    %22 = arith.addf %21, %20 : vector<96x128xf32>
    %23 = arith.divf %21, %22 : vector<96x128xf32>
    %24 = vector.extract_strided_slice %17 {offsets = [96, 0], sizes = [32, 128], strides = [1, 1]} : vector<128x128xf32> to vector<32x128xf32>
    %25 = math.tanh %24 : vector<32x128xf32>
    %26 = vector.extract_strided_slice %23 {offsets = [0, 0], sizes = [32, 128], strides = [1, 1]} : vector<96x128xf32> to vector<32x128xf32>
    %27 = vector.extract_strided_slice %23 {offsets = [32, 0], sizes = [32, 128], strides = [1, 1]} : vector<96x128xf32> to vector<32x128xf32>
    %28 = vector.extract_strided_slice %23 {offsets = [64, 0], sizes = [32, 128], strides = [1, 1]} : vector<96x128xf32> to vector<32x128xf32>
    %29 = arith.mulf %27, %10 : vector<32x128xf32>
    %30 = arith.mulf %26, %25 : vector<32x128xf32>
    %31 = arith.addf %29, %30 : vector<32x128xf32>
    %32 = math.tanh %31 : vector<32x128xf32>
    %33 = arith.mulf %28, %32 : vector<32x128xf32>
    %c0_15 = arith.constant 0 : index
    %34 = arith.index_cast %12 : i32 to index
    %35 = vector.load %arg12[%c0_15, %34] : memref<32x1024xf32, #tpu.memory_space<vmem>>, vector<32x128xf32>
    tpu.vector_store %arg12[%c0_15, %34], %33 {strides = array<i32>} : memref<32x1024xf32, #tpu.memory_space<vmem>>, vector<32x128xf32>,
    %c1_i32 = arith.constant 1 : i32
    %c128_i32_16 = arith.constant 128 : i32
    %36 = arith.muli %c1_i32, %c128_i32_16 : i32
    %37 = tpu.assume_multiple %36, 128 : i32
    %c0_17 = arith.constant 0 : index
    %38 = arith.index_cast %37 : i32 to index
    %39 = vector.load %arg11[%c0_17, %38] : memref<128x1024xf32, #tpu.memory_space<vmem>>, vector<128x128xf32>
    %40 = arith.truncf %33 : vector<32x128xf32> to vector<32x128xbf16>
    %cst_18 = arith.constant dense<0.000000e+00> : vector<128x128xf32>
    %41 = tpu.matmul %8, %40, %cst_18 {dimension_numbers = #tpu.dot_dimension_numbers<[1], [0], [0], [1], [0, 0, 1, 1], [], []>} : vector<128x32xbf16>, vector<32x128xbf16>, vector<128x128xf32> -> vector<128x128xf32>
    %42 = arith.addf %39, %41 : vector<128x128xf32>
    %43 = vector.extract_strided_slice %42 {offsets = [0, 0], sizes = [96, 128], strides = [1, 1]} : vector<128x128xf32> to vector<96x128xf32>
    %44 = arith.negf %43 : vector<96x128xf32>
    %45 = math.exp %44 : vector<96x128xf32>
    %cst_19 = arith.constant 1.000000e+00 : f32
    %46 = vector.broadcast %cst_19 : f32 to vector<96x128xf32>
    %47 = arith.addf %46, %45 : vector<96x128xf32>
    %48 = arith.divf %46, %47 : vector<96x128xf32>
    %49 = vector.extract_strided_slice %42 {offsets = [96, 0], sizes = [32, 128], strides = [1, 1]} : vector<128x128xf32> to vector<32x128xf32>
    %50 = math.tanh %49 : vector<32x128xf32>
    %51 = vector.extract_strided_slice %48 {offsets = [0, 0], sizes = [32, 128], strides = [1, 1]} : vector<96x128xf32> to vector<32x128xf32>
    %52 = vector.extract_strided_slice %48 {offsets = [32, 0], sizes = [32, 128], strides = [1, 1]} : vector<96x128xf32> to vector<32x128xf32>
    %53 = vector.extract_strided_slice %48 {offsets = [64, 0], sizes = [32, 128], strides = [1, 1]} : vector<96x128xf32> to vector<32x128xf32>
    %54 = arith.mulf %52, %31 : vector<32x128xf32>
    %55 = arith.mulf %51, %50 : vector<32x128xf32>
    %56 = arith.addf %54, %55 : vector<32x128xf32>
    %57 = math.tanh %56 : vector<32x128xf32>
    %58 = arith.mulf %53, %57 : vector<32x128xf32>
    %c0_20 = arith.constant 0 : index
    %59 = arith.index_cast %37 : i32 to index
    %60 = vector.load %arg12[%c0_20, %59] : memref<32x1024xf32, #tpu.memory_space<vmem>>, vector<32x128xf32>
    tpu.vector_store %arg12[%c0_20, %59], %58 {strides = array<i32>} : memref<32x1024xf32, #tpu.memory_space<vmem>>, vector<32x128xf32>,
    %c2_i32 = arith.constant 2 : i32
    %c128_i32_21 = arith.constant 128 : i32
    %61 = arith.muli %c2_i32, %c128_i32_21 : i32
    %62 = tpu.assume_multiple %61, 128 : i32
    %c0_22 = arith.constant 0 : index
    %63 = arith.index_cast %62 : i32 to index
    %64 = vector.load %arg11[%c0_22, %63] : memref<128x1024xf32, #tpu.memory_space<vmem>>, vector<128x128xf32>
    %65 = arith.truncf %58 : vector<32x128xf32> to vector<32x128xbf16>
    %cst_23 = arith.constant dense<0.000000e+00> : vector<128x128xf32>
    %66 = tpu.matmul %8, %65, %cst_23 {dimension_numbers = #tpu.dot_dimension_numbers<[1], [0], [0], [1], [0, 0, 1, 1], [], []>} : vector<128x32xbf16>, vector<32x128xbf16>, vector<128x128xf32> -> vector<128x128xf32>
    %67 = arith.addf %64, %66 : vector<128x128xf32>
    %68 = vector.extract_strided_slice %67 {offsets = [0, 0], sizes = [96, 128], strides = [1, 1]} : vector<128x128xf32> to vector<96x128xf32>
    %69 = arith.negf %68 : vector<96x128xf32>
    %70 = math.exp %69 : vector<96x128xf32>
    %cst_24 = arith.constant 1.000000e+00 : f32
    %71 = vector.broadcast %cst_24 : f32 to vector<96x128xf32>
    %72 = arith.addf %71, %70 : vector<96x128xf32>
    %73 = arith.divf %71, %72 : vector<96x128xf32>
    %74 = vector.extract_strided_slice %67 {offsets = [96, 0], sizes = [32, 128], strides = [1, 1]} : vector<128x128xf32> to vector<32x128xf32>
    %75 = math.tanh %74 : vector<32x128xf32>
    %76 = vector.extract_strided_slice %73 {offsets = [0, 0], sizes = [32, 128], strides = [1, 1]} : vector<96x128xf32> to vector<32x128xf32>
    %77 = vector.extract_strided_slice %73 {offsets = [32, 0], sizes = [32, 128], strides = [1, 1]} : vector<96x128xf32> to vector<32x128xf32>
    %78 = vector.extract_strided_slice %73 {offsets = [64, 0], sizes = [32, 128], strides = [1, 1]} : vector<96x128xf32> to vector<32x128xf32>
    %79 = arith.mulf %77, %56 : vector<32x128xf32>
    %80 = arith.mulf %76, %75 : vector<32x128xf32>
    %81 = arith.addf %79, %80 : vector<32x128xf32>
    %82 = math.tanh %81 : vector<32x128xf32>
    %83 = arith.mulf %78, %82 : vector<32x128xf32>
    %c0_25 = arith.constant 0 : index
    %84 = arith.index_cast %62 : i32 to index
    %85 = vector.load %arg12[%c0_25, %84] : memref<32x1024xf32, #tpu.memory_space<vmem>>, vector<32x128xf32>
    tpu.vector_store %arg12[%c0_25, %84], %83 {strides = array<i32>} : memref<32x1024xf32, #tpu.memory_space<vmem>>, vector<32x128xf32>,
    %c3_i32 = arith.constant 3 : i32
    %c128_i32_26 = arith.constant 128 : i32
    %86 = arith.muli %c3_i32, %c128_i32_26 : i32
    %87 = tpu.assume_multiple %86, 128 : i32
    %c0_27 = arith.constant 0 : index
    %88 = arith.index_cast %87 : i32 to index
    %89 = vector.load %arg11[%c0_27, %88] : memref<128x1024xf32, #tpu.memory_space<vmem>>, vector<128x128xf32>
    %90 = arith.truncf %83 : vector<32x128xf32> to vector<32x128xbf16>
    %cst_28 = arith.constant dense<0.000000e+00> : vector<128x128xf32>
    %91 = tpu.matmul %8, %90, %cst_28 {dimension_numbers = #tpu.dot_dimension_numbers<[1], [0], [0], [1], [0, 0, 1, 1], [], []>} : vector<128x32xbf16>, vector<32x128xbf16>, vector<128x128xf32> -> vector<128x128xf32>
    %92 = arith.addf %89, %91 : vector<128x128xf32>
    %93 = vector.extract_strided_slice %92 {offsets = [0, 0], sizes = [96, 128], strides = [1, 1]} : vector<128x128xf32> to vector<96x128xf32>
    %94 = arith.negf %93 : vector<96x128xf32>
    %95 = math.exp %94 : vector<96x128xf32>
    %cst_29 = arith.constant 1.000000e+00 : f32
    %96 = vector.broadcast %cst_29 : f32 to vector<96x128xf32>
    %97 = arith.addf %96, %95 : vector<96x128xf32>
    %98 = arith.divf %96, %97 : vector<96x128xf32>
    %99 = vector.extract_strided_slice %92 {offsets = [96, 0], sizes = [32, 128], strides = [1, 1]} : vector<128x128xf32> to vector<32x128xf32>
    %100 = math.tanh %99 : vector<32x128xf32>
    %101 = vector.extract_strided_slice %98 {offsets = [0, 0], sizes = [32, 128], strides = [1, 1]} : vector<96x128xf32> to vector<32x128xf32>
    %102 = vector.extract_strided_slice %98 {offsets = [32, 0], sizes = [32, 128], strides = [1, 1]} : vector<96x128xf32> to vector<32x128xf32>
    %103 = vector.extract_strided_slice %98 {offsets = [64, 0], sizes = [32, 128], strides = [1, 1]} : vector<96x128xf32> to vector<32x128xf32>
    %104 = arith.mulf %102, %81 : vector<32x128xf32>
    %105 = arith.mulf %101, %100 : vector<32x128xf32>
    %106 = arith.addf %104, %105 : vector<32x128xf32>
    %107 = math.tanh %106 : vector<32x128xf32>
    %108 = arith.mulf %103, %107 : vector<32x128xf32>
    %c0_30 = arith.constant 0 : index
    %109 = arith.index_cast %87 : i32 to index
    %110 = vector.load %arg12[%c0_30, %109] : memref<32x1024xf32, #tpu.memory_space<vmem>>, vector<32x128xf32>
    tpu.vector_store %arg12[%c0_30, %109], %108 {strides = array<i32>} : memref<32x1024xf32, #tpu.memory_space<vmem>>, vector<32x128xf32>,
    %c4_i32 = arith.constant 4 : i32
    %c128_i32_31 = arith.constant 128 : i32
    %111 = arith.muli %c4_i32, %c128_i32_31 : i32
    %112 = tpu.assume_multiple %111, 128 : i32
    %c0_32 = arith.constant 0 : index
    %113 = arith.index_cast %112 : i32 to index
    %114 = vector.load %arg11[%c0_32, %113] : memref<128x1024xf32, #tpu.memory_space<vmem>>, vector<128x128xf32>
    %115 = arith.truncf %108 : vector<32x128xf32> to vector<32x128xbf16>
    %cst_33 = arith.constant dense<0.000000e+00> : vector<128x128xf32>
    %116 = tpu.matmul %8, %115, %cst_33 {dimension_numbers = #tpu.dot_dimension_numbers<[1], [0], [0], [1], [0, 0, 1, 1], [], []>} : vector<128x32xbf16>, vector<32x128xbf16>, vector<128x128xf32> -> vector<128x128xf32>
    %117 = arith.addf %114, %116 : vector<128x128xf32>
    %118 = vector.extract_strided_slice %117 {offsets = [0, 0], sizes = [96, 128], strides = [1, 1]} : vector<128x128xf32> to vector<96x128xf32>
    %119 = arith.negf %118 : vector<96x128xf32>
    %120 = math.exp %119 : vector<96x128xf32>
    %cst_34 = arith.constant 1.000000e+00 : f32
    %121 = vector.broadcast %cst_34 : f32 to vector<96x128xf32>
    %122 = arith.addf %121, %120 : vector<96x128xf32>
    %123 = arith.divf %121, %122 : vector<96x128xf32>
    %124 = vector.extract_strided_slice %117 {offsets = [96, 0], sizes = [32, 128], strides = [1, 1]} : vector<128x128xf32> to vector<32x128xf32>
    %125 = math.tanh %124 : vector<32x128xf32>
    %126 = vector.extract_strided_slice %123 {offsets = [0, 0], sizes = [32, 128], strides = [1, 1]} : vector<96x128xf32> to vector<32x128xf32>
    %127 = vector.extract_strided_slice %123 {offsets = [32, 0], sizes = [32, 128], strides = [1, 1]} : vector<96x128xf32> to vector<32x128xf32>
    %128 = vector.extract_strided_slice %123 {offsets = [64, 0], sizes = [32, 128], strides = [1, 1]} : vector<96x128xf32> to vector<32x128xf32>
    %129 = arith.mulf %127, %106 : vector<32x128xf32>
    %130 = arith.mulf %126, %125 : vector<32x128xf32>
    %131 = arith.addf %129, %130 : vector<32x128xf32>
    %132 = math.tanh %131 : vector<32x128xf32>
    %133 = arith.mulf %128, %132 : vector<32x128xf32>
    %c0_35 = arith.constant 0 : index
    %134 = arith.index_cast %112 : i32 to index
    %135 = vector.load %arg12[%c0_35, %134] : memref<32x1024xf32, #tpu.memory_space<vmem>>, vector<32x128xf32>
    tpu.vector_store %arg12[%c0_35, %134], %133 {strides = array<i32>} : memref<32x1024xf32, #tpu.memory_space<vmem>>, vector<32x128xf32>,
    %c5_i32 = arith.constant 5 : i32
    %c128_i32_36 = arith.constant 128 : i32
    %136 = arith.muli %c5_i32, %c128_i32_36 : i32
    %137 = tpu.assume_multiple %136, 128 : i32
    %c0_37 = arith.constant 0 : index
    %138 = arith.index_cast %137 : i32 to index
    %139 = vector.load %arg11[%c0_37, %138] : memref<128x1024xf32, #tpu.memory_space<vmem>>, vector<128x128xf32>
    %140 = arith.truncf %133 : vector<32x128xf32> to vector<32x128xbf16>
    %cst_38 = arith.constant dense<0.000000e+00> : vector<128x128xf32>
    %141 = tpu.matmul %8, %140, %cst_38 {dimension_numbers = #tpu.dot_dimension_numbers<[1], [0], [0], [1], [0, 0, 1, 1], [], []>} : vector<128x32xbf16>, vector<32x128xbf16>, vector<128x128xf32> -> vector<128x128xf32>
    %142 = arith.addf %139, %141 : vector<128x128xf32>
    %143 = vector.extract_strided_slice %142 {offsets = [0, 0], sizes = [96, 128], strides = [1, 1]} : vector<128x128xf32> to vector<96x128xf32>
    %144 = arith.negf %143 : vector<96x128xf32>
    %145 = math.exp %144 : vector<96x128xf32>
    %cst_39 = arith.constant 1.000000e+00 : f32
    %146 = vector.broadcast %cst_39 : f32 to vector<96x128xf32>
    %147 = arith.addf %146, %145 : vector<96x128xf32>
    %148 = arith.divf %146, %147 : vector<96x128xf32>
    %149 = vector.extract_strided_slice %142 {offsets = [96, 0], sizes = [32, 128], strides = [1, 1]} : vector<128x128xf32> to vector<32x128xf32>
    %150 = math.tanh %149 : vector<32x128xf32>
    %151 = vector.extract_strided_slice %148 {offsets = [0, 0], sizes = [32, 128], strides = [1, 1]} : vector<96x128xf32> to vector<32x128xf32>
    %152 = vector.extract_strided_slice %148 {offsets = [32, 0], sizes = [32, 128], strides = [1, 1]} : vector<96x128xf32> to vector<32x128xf32>
    %153 = vector.extract_strided_slice %148 {offsets = [64, 0], sizes = [32, 128], strides = [1, 1]} : vector<96x128xf32> to vector<32x128xf32>
    %154 = arith.mulf %152, %131 : vector<32x128xf32>
    %155 = arith.mulf %151, %150 : vector<32x128xf32>
    %156 = arith.addf %154, %155 : vector<32x128xf32>
    %157 = math.tanh %156 : vector<32x128xf32>
    %158 = arith.mulf %153, %157 : vector<32x128xf32>
    %c0_40 = arith.constant 0 : index
    %159 = arith.index_cast %137 : i32 to index
    %160 = vector.load %arg12[%c0_40, %159] : memref<32x1024xf32, #tpu.memory_space<vmem>>, vector<32x128xf32>
    tpu.vector_store %arg12[%c0_40, %159], %158 {strides = array<i32>} : memref<32x1024xf32, #tpu.memory_space<vmem>>, vector<32x128xf32>,
    %c6_i32 = arith.constant 6 : i32
    %c128_i32_41 = arith.constant 128 : i32
    %161 = arith.muli %c6_i32, %c128_i32_41 : i32
    %162 = tpu.assume_multiple %161, 128 : i32
    %c0_42 = arith.constant 0 : index
    %163 = arith.index_cast %162 : i32 to index
    %164 = vector.load %arg11[%c0_42, %163] : memref<128x1024xf32, #tpu.memory_space<vmem>>, vector<128x128xf32>
    %165 = arith.truncf %158 : vector<32x128xf32> to vector<32x128xbf16>
    %cst_43 = arith.constant dense<0.000000e+00> : vector<128x128xf32>
    %166 = tpu.matmul %8, %165, %cst_43 {dimension_numbers = #tpu.dot_dimension_numbers<[1], [0], [0], [1], [0, 0, 1, 1], [], []>} : vector<128x32xbf16>, vector<32x128xbf16>, vector<128x128xf32> -> vector<128x128xf32>
    %167 = arith.addf %164, %166 : vector<128x128xf32>
    %168 = vector.extract_strided_slice %167 {offsets = [0, 0], sizes = [96, 128], strides = [1, 1]} : vector<128x128xf32> to vector<96x128xf32>
    %169 = arith.negf %168 : vector<96x128xf32>
    %170 = math.exp %169 : vector<96x128xf32>
    %cst_44 = arith.constant 1.000000e+00 : f32
    %171 = vector.broadcast %cst_44 : f32 to vector<96x128xf32>
    %172 = arith.addf %171, %170 : vector<96x128xf32>
    %173 = arith.divf %171, %172 : vector<96x128xf32>
    %174 = vector.extract_strided_slice %167 {offsets = [96, 0], sizes = [32, 128], strides = [1, 1]} : vector<128x128xf32> to vector<32x128xf32>
    %175 = math.tanh %174 : vector<32x128xf32>
    %176 = vector.extract_strided_slice %173 {offsets = [0, 0], sizes = [32, 128], strides = [1, 1]} : vector<96x128xf32> to vector<32x128xf32>
    %177 = vector.extract_strided_slice %173 {offsets = [32, 0], sizes = [32, 128], strides = [1, 1]} : vector<96x128xf32> to vector<32x128xf32>
    %178 = vector.extract_strided_slice %173 {offsets = [64, 0], sizes = [32, 128], strides = [1, 1]} : vector<96x128xf32> to vector<32x128xf32>
    %179 = arith.mulf %177, %156 : vector<32x128xf32>
    %180 = arith.mulf %176, %175 : vector<32x128xf32>
    %181 = arith.addf %179, %180 : vector<32x128xf32>
    %182 = math.tanh %181 : vector<32x128xf32>
    %183 = arith.mulf %178, %182 : vector<32x128xf32>
    %c0_45 = arith.constant 0 : index
    %184 = arith.index_cast %162 : i32 to index
    %185 = vector.load %arg12[%c0_45, %184] : memref<32x1024xf32, #tpu.memory_space<vmem>>, vector<32x128xf32>
    tpu.vector_store %arg12[%c0_45, %184], %183 {strides = array<i32>} : memref<32x1024xf32, #tpu.memory_space<vmem>>, vector<32x128xf32>,
    %c7_i32 = arith.constant 7 : i32
    %c128_i32_46 = arith.constant 128 : i32
    %186 = arith.muli %c7_i32, %c128_i32_46 : i32
    %187 = tpu.assume_multiple %186, 128 : i32
    %c0_47 = arith.constant 0 : index
    %188 = arith.index_cast %187 : i32 to index
    %189 = vector.load %arg11[%c0_47, %188] : memref<128x1024xf32, #tpu.memory_space<vmem>>, vector<128x128xf32>
    %190 = arith.truncf %183 : vector<32x128xf32> to vector<32x128xbf16>
    %cst_48 = arith.constant dense<0.000000e+00> : vector<128x128xf32>
    %191 = tpu.matmul %8, %190, %cst_48 {dimension_numbers = #tpu.dot_dimension_numbers<[1], [0], [0], [1], [0, 0, 1, 1], [], []>} : vector<128x32xbf16>, vector<32x128xbf16>, vector<128x128xf32> -> vector<128x128xf32>
    %192 = arith.addf %189, %191 : vector<128x128xf32>
    %193 = vector.extract_strided_slice %192 {offsets = [0, 0], sizes = [96, 128], strides = [1, 1]} : vector<128x128xf32> to vector<96x128xf32>
    %194 = arith.negf %193 : vector<96x128xf32>
    %195 = math.exp %194 : vector<96x128xf32>
    %cst_49 = arith.constant 1.000000e+00 : f32
    %196 = vector.broadcast %cst_49 : f32 to vector<96x128xf32>
    %197 = arith.addf %196, %195 : vector<96x128xf32>
    %198 = arith.divf %196, %197 : vector<96x128xf32>
    %199 = vector.extract_strided_slice %192 {offsets = [96, 0], sizes = [32, 128], strides = [1, 1]} : vector<128x128xf32> to vector<32x128xf32>
    %200 = math.tanh %199 : vector<32x128xf32>
    %201 = vector.extract_strided_slice %198 {offsets = [0, 0], sizes = [32, 128], strides = [1, 1]} : vector<96x128xf32> to vector<32x128xf32>
    %202 = vector.extract_strided_slice %198 {offsets = [32, 0], sizes = [32, 128], strides = [1, 1]} : vector<96x128xf32> to vector<32x128xf32>
    %203 = vector.extract_strided_slice %198 {offsets = [64, 0], sizes = [32, 128], strides = [1, 1]} : vector<96x128xf32> to vector<32x128xf32>
    %204 = arith.mulf %202, %181 : vector<32x128xf32>
    %205 = arith.mulf %201, %200 : vector<32x128xf32>
    %206 = arith.addf %204, %205 : vector<32x128xf32>
    %207 = math.tanh %206 : vector<32x128xf32>
    %208 = arith.mulf %203, %207 : vector<32x128xf32>
    %c0_50 = arith.constant 0 : index
    %209 = arith.index_cast %187 : i32 to index
    %210 = vector.load %arg12[%c0_50, %209] : memref<32x1024xf32, #tpu.memory_space<vmem>>, vector<32x128xf32>
    tpu.vector_store %arg12[%c0_50, %209], %208 {strides = array<i32>} : memref<32x1024xf32, #tpu.memory_space<vmem>>, vector<32x128xf32>,
    %c8_i32 = arith.constant 8 : i32
    %c0_51 = arith.constant 0 : index
    %c0_52 = arith.constant 0 : index
    %211 = vector.load %arg12[%c0_51, %c0_52] : memref<32x1024xf32, #tpu.memory_space<vmem>>, vector<32x1024xf32>
    %212 = arith.truncf %211 : vector<32x1024xf32> to vector<32x1024xbf16>
    %c0_53 = arith.constant 0 : index
    %c0_54 = arith.constant 0 : index
    %213 = vector.load %arg5[%c0_53, %c0_54] : memref<128x32xbf16, #tpu.memory_space<vmem>>, vector<128x32xbf16>
    %cst_55 = arith.constant dense<0.000000e+00> : vector<128x1024xf32>
    %214 = tpu.matmul %213, %212, %cst_55 {dimension_numbers = #tpu.dot_dimension_numbers<[1], [0], [0], [1], [0, 0, 1, 1], [], []>} : vector<128x32xbf16>, vector<32x1024xbf16>, vector<128x1024xf32> -> vector<128x1024xf32>
    %c0_56 = arith.constant 0 : index
    %c0_57 = arith.constant 0 : index
    %215 = vector.load %arg7[%c0_56, %c0_57] : memref<128x1xf32, #tpu.memory_space<vmem>>, vector<128x1xf32>
    %216 = vector.broadcast %215 : vector<128x1xf32> to vector<128x1024xf32>
    %217 = arith.addf %214, %216 : vector<128x1024xf32>
    %c0_58 = arith.constant 0 : index
    %c0_59 = arith.constant 0 : index
    %218 = vector.load %arg11[%c0_58, %c0_59] : memref<128x1024xf32, #tpu.memory_space<vmem>>, vector<128x1024xf32>
    tpu.vector_store %arg11[%c0_58, %c0_59], %217 {strides = array<i32>} : memref<128x1024xf32, #tpu.memory_space<vmem>>, vector<128x1024xf32>,
    %c0_60 = arith.constant 0 : index
    %c0_61 = arith.constant 0 : index
    %219 = vector.load %arg6[%c0_60, %c0_61] : memref<128x32xbf16, #tpu.memory_space<vmem>>, vector<128x32xbf16>
    %cst_62 = arith.constant 0.000000e+00 : f32
    %220 = vector.broadcast %cst_62 : f32 to vector<32x128xf32>
    %cst_63 = arith.constant 0.000000e+00 : f32
    %221 = vector.broadcast %cst_63 : f32 to vector<32x128xf32>
    %c0_i32_64 = arith.constant 0 : i32
    %c128_i32_65 = arith.constant 128 : i32
    %222 = arith.muli %c0_i32_64, %c128_i32_65 : i32
    %223 = tpu.assume_multiple %222, 128 : i32
    %c0_66 = arith.constant 0 : index
    %224 = arith.index_cast %223 : i32 to index
    %225 = vector.load %arg11[%c0_66, %224] : memref<128x1024xf32, #tpu.memory_space<vmem>>, vector<128x128xf32>
    %226 = arith.truncf %220 : vector<32x128xf32> to vector<32x128xbf16>
    %cst_67 = arith.constant dense<0.000000e+00> : vector<128x128xf32>
    %227 = tpu.matmul %219, %226, %cst_67 {dimension_numbers = #tpu.dot_dimension_numbers<[1], [0], [0], [1], [0, 0, 1, 1], [], []>} : vector<128x32xbf16>, vector<32x128xbf16>, vector<128x128xf32> -> vector<128x128xf32>
    %228 = arith.addf %225, %227 : vector<128x128xf32>
    %229 = vector.extract_strided_slice %228 {offsets = [0, 0], sizes = [96, 128], strides = [1, 1]} : vector<128x128xf32> to vector<96x128xf32>
    %230 = arith.negf %229 : vector<96x128xf32>
    %231 = math.exp %230 : vector<96x128xf32>
    %cst_68 = arith.constant 1.000000e+00 : f32
    %232 = vector.broadcast %cst_68 : f32 to vector<96x128xf32>
    %233 = arith.addf %232, %231 : vector<96x128xf32>
    %234 = arith.divf %232, %233 : vector<96x128xf32>
    %235 = vector.extract_strided_slice %228 {offsets = [96, 0], sizes = [32, 128], strides = [1, 1]} : vector<128x128xf32> to vector<32x128xf32>
    %236 = math.tanh %235 : vector<32x128xf32>
    %237 = vector.extract_strided_slice %234 {offsets = [0, 0], sizes = [32, 128], strides = [1, 1]} : vector<96x128xf32> to vector<32x128xf32>
    %238 = vector.extract_strided_slice %234 {offsets = [32, 0], sizes = [32, 128], strides = [1, 1]} : vector<96x128xf32> to vector<32x128xf32>
    %239 = vector.extract_strided_slice %234 {offsets = [64, 0], sizes = [32, 128], strides = [1, 1]} : vector<96x128xf32> to vector<32x128xf32>
    %240 = arith.mulf %238, %221 : vector<32x128xf32>
    %241 = arith.mulf %237, %236 : vector<32x128xf32>
    %242 = arith.addf %240, %241 : vector<32x128xf32>
    %243 = math.tanh %242 : vector<32x128xf32>
    %244 = arith.mulf %239, %243 : vector<32x128xf32>
    %c1_i32_69 = arith.constant 1 : i32
    %c128_i32_70 = arith.constant 128 : i32
    %245 = arith.muli %c1_i32_69, %c128_i32_70 : i32
    %246 = tpu.assume_multiple %245, 128 : i32
    %c0_71 = arith.constant 0 : index
    %247 = arith.index_cast %246 : i32 to index
    %248 = vector.load %arg11[%c0_71, %247] : memref<128x1024xf32, #tpu.memory_space<vmem>>, vector<128x128xf32>
    %249 = arith.truncf %244 : vector<32x128xf32> to vector<32x128xbf16>
    %cst_72 = arith.constant dense<0.000000e+00> : vector<128x128xf32>
    %250 = tpu.matmul %219, %249, %cst_72 {dimension_numbers = #tpu.dot_dimension_numbers<[1], [0], [0], [1], [0, 0, 1, 1], [], []>} : vector<128x32xbf16>, vector<32x128xbf16>, vector<128x128xf32> -> vector<128x128xf32>
    %251 = arith.addf %248, %250 : vector<128x128xf32>
    %252 = vector.extract_strided_slice %251 {offsets = [0, 0], sizes = [96, 128], strides = [1, 1]} : vector<128x128xf32> to vector<96x128xf32>
    %253 = arith.negf %252 : vector<96x128xf32>
    %254 = math.exp %253 : vector<96x128xf32>
    %cst_73 = arith.constant 1.000000e+00 : f32
    %255 = vector.broadcast %cst_73 : f32 to vector<96x128xf32>
    %256 = arith.addf %255, %254 : vector<96x128xf32>
    %257 = arith.divf %255, %256 : vector<96x128xf32>
    %258 = vector.extract_strided_slice %251 {offsets = [96, 0], sizes = [32, 128], strides = [1, 1]} : vector<128x128xf32> to vector<32x128xf32>
    %259 = math.tanh %258 : vector<32x128xf32>
    %260 = vector.extract_strided_slice %257 {offsets = [0, 0], sizes = [32, 128], strides = [1, 1]} : vector<96x128xf32> to vector<32x128xf32>
    %261 = vector.extract_strided_slice %257 {offsets = [32, 0], sizes = [32, 128], strides = [1, 1]} : vector<96x128xf32> to vector<32x128xf32>
    %262 = vector.extract_strided_slice %257 {offsets = [64, 0], sizes = [32, 128], strides = [1, 1]} : vector<96x128xf32> to vector<32x128xf32>
    %263 = arith.mulf %261, %242 : vector<32x128xf32>
    %264 = arith.mulf %260, %259 : vector<32x128xf32>
    %265 = arith.addf %263, %264 : vector<32x128xf32>
    %266 = math.tanh %265 : vector<32x128xf32>
    %267 = arith.mulf %262, %266 : vector<32x128xf32>
    %c2_i32_74 = arith.constant 2 : i32
    %c128_i32_75 = arith.constant 128 : i32
    %268 = arith.muli %c2_i32_74, %c128_i32_75 : i32
    %269 = tpu.assume_multiple %268, 128 : i32
    %c0_76 = arith.constant 0 : index
    %270 = arith.index_cast %269 : i32 to index
    %271 = vector.load %arg11[%c0_76, %270] : memref<128x1024xf32, #tpu.memory_space<vmem>>, vector<128x128xf32>
    %272 = arith.truncf %267 : vector<32x128xf32> to vector<32x128xbf16>
    %cst_77 = arith.constant dense<0.000000e+00> : vector<128x128xf32>
    %273 = tpu.matmul %219, %272, %cst_77 {dimension_numbers = #tpu.dot_dimension_numbers<[1], [0], [0], [1], [0, 0, 1, 1], [], []>} : vector<128x32xbf16>, vector<32x128xbf16>, vector<128x128xf32> -> vector<128x128xf32>
    %274 = arith.addf %271, %273 : vector<128x128xf32>
    %275 = vector.extract_strided_slice %274 {offsets = [0, 0], sizes = [96, 128], strides = [1, 1]} : vector<128x128xf32> to vector<96x128xf32>
    %276 = arith.negf %275 : vector<96x128xf32>
    %277 = math.exp %276 : vector<96x128xf32>
    %cst_78 = arith.constant 1.000000e+00 : f32
    %278 = vector.broadcast %cst_78 : f32 to vector<96x128xf32>
    %279 = arith.addf %278, %277 : vector<96x128xf32>
    %280 = arith.divf %278, %279 : vector<96x128xf32>
    %281 = vector.extract_strided_slice %274 {offsets = [96, 0], sizes = [32, 128], strides = [1, 1]} : vector<128x128xf32> to vector<32x128xf32>
    %282 = math.tanh %281 : vector<32x128xf32>
    %283 = vector.extract_strided_slice %280 {offsets = [0, 0], sizes = [32, 128], strides = [1, 1]} : vector<96x128xf32> to vector<32x128xf32>
    %284 = vector.extract_strided_slice %280 {offsets = [32, 0], sizes = [32, 128], strides = [1, 1]} : vector<96x128xf32> to vector<32x128xf32>
    %285 = vector.extract_strided_slice %280 {offsets = [64, 0], sizes = [32, 128], strides = [1, 1]} : vector<96x128xf32> to vector<32x128xf32>
    %286 = arith.mulf %284, %265 : vector<32x128xf32>
    %287 = arith.mulf %283, %282 : vector<32x128xf32>
    %288 = arith.addf %286, %287 : vector<32x128xf32>
    %289 = math.tanh %288 : vector<32x128xf32>
    %290 = arith.mulf %285, %289 : vector<32x128xf32>
    %c3_i32_79 = arith.constant 3 : i32
    %c128_i32_80 = arith.constant 128 : i32
    %291 = arith.muli %c3_i32_79, %c128_i32_80 : i32
    %292 = tpu.assume_multiple %291, 128 : i32
    %c0_81 = arith.constant 0 : index
    %293 = arith.index_cast %292 : i32 to index
    %294 = vector.load %arg11[%c0_81, %293] : memref<128x1024xf32, #tpu.memory_space<vmem>>, vector<128x128xf32>
    %295 = arith.truncf %290 : vector<32x128xf32> to vector<32x128xbf16>
    %cst_82 = arith.constant dense<0.000000e+00> : vector<128x128xf32>
    %296 = tpu.matmul %219, %295, %cst_82 {dimension_numbers = #tpu.dot_dimension_numbers<[1], [0], [0], [1], [0, 0, 1, 1], [], []>} : vector<128x32xbf16>, vector<32x128xbf16>, vector<128x128xf32> -> vector<128x128xf32>
    %297 = arith.addf %294, %296 : vector<128x128xf32>
    %298 = vector.extract_strided_slice %297 {offsets = [0, 0], sizes = [96, 128], strides = [1, 1]} : vector<128x128xf32> to vector<96x128xf32>
    %299 = arith.negf %298 : vector<96x128xf32>
    %300 = math.exp %299 : vector<96x128xf32>
    %cst_83 = arith.constant 1.000000e+00 : f32
    %301 = vector.broadcast %cst_83 : f32 to vector<96x128xf32>
    %302 = arith.addf %301, %300 : vector<96x128xf32>
    %303 = arith.divf %301, %302 : vector<96x128xf32>
    %304 = vector.extract_strided_slice %297 {offsets = [96, 0], sizes = [32, 128], strides = [1, 1]} : vector<128x128xf32> to vector<32x128xf32>
    %305 = math.tanh %304 : vector<32x128xf32>
    %306 = vector.extract_strided_slice %303 {offsets = [0, 0], sizes = [32, 128], strides = [1, 1]} : vector<96x128xf32> to vector<32x128xf32>
    %307 = vector.extract_strided_slice %303 {offsets = [32, 0], sizes = [32, 128], strides = [1, 1]} : vector<96x128xf32> to vector<32x128xf32>
    %308 = vector.extract_strided_slice %303 {offsets = [64, 0], sizes = [32, 128], strides = [1, 1]} : vector<96x128xf32> to vector<32x128xf32>
    %309 = arith.mulf %307, %288 : vector<32x128xf32>
    %310 = arith.mulf %306, %305 : vector<32x128xf32>
    %311 = arith.addf %309, %310 : vector<32x128xf32>
    %312 = math.tanh %311 : vector<32x128xf32>
    %313 = arith.mulf %308, %312 : vector<32x128xf32>
    %c4_i32_84 = arith.constant 4 : i32
    %c128_i32_85 = arith.constant 128 : i32
    %314 = arith.muli %c4_i32_84, %c128_i32_85 : i32
    %315 = tpu.assume_multiple %314, 128 : i32
    %c0_86 = arith.constant 0 : index
    %316 = arith.index_cast %315 : i32 to index
    %317 = vector.load %arg11[%c0_86, %316] : memref<128x1024xf32, #tpu.memory_space<vmem>>, vector<128x128xf32>
    %318 = arith.truncf %313 : vector<32x128xf32> to vector<32x128xbf16>
    %cst_87 = arith.constant dense<0.000000e+00> : vector<128x128xf32>
    %319 = tpu.matmul %219, %318, %cst_87 {dimension_numbers = #tpu.dot_dimension_numbers<[1], [0], [0], [1], [0, 0, 1, 1], [], []>} : vector<128x32xbf16>, vector<32x128xbf16>, vector<128x128xf32> -> vector<128x128xf32>
    %320 = arith.addf %317, %319 : vector<128x128xf32>
    %321 = vector.extract_strided_slice %320 {offsets = [0, 0], sizes = [96, 128], strides = [1, 1]} : vector<128x128xf32> to vector<96x128xf32>
    %322 = arith.negf %321 : vector<96x128xf32>
    %323 = math.exp %322 : vector<96x128xf32>
    %cst_88 = arith.constant 1.000000e+00 : f32
    %324 = vector.broadcast %cst_88 : f32 to vector<96x128xf32>
    %325 = arith.addf %324, %323 : vector<96x128xf32>
    %326 = arith.divf %324, %325 : vector<96x128xf32>
    %327 = vector.extract_strided_slice %320 {offsets = [96, 0], sizes = [32, 128], strides = [1, 1]} : vector<128x128xf32> to vector<32x128xf32>
    %328 = math.tanh %327 : vector<32x128xf32>
    %329 = vector.extract_strided_slice %326 {offsets = [0, 0], sizes = [32, 128], strides = [1, 1]} : vector<96x128xf32> to vector<32x128xf32>
    %330 = vector.extract_strided_slice %326 {offsets = [32, 0], sizes = [32, 128], strides = [1, 1]} : vector<96x128xf32> to vector<32x128xf32>
    %331 = vector.extract_strided_slice %326 {offsets = [64, 0], sizes = [32, 128], strides = [1, 1]} : vector<96x128xf32> to vector<32x128xf32>
    %332 = arith.mulf %330, %311 : vector<32x128xf32>
    %333 = arith.mulf %329, %328 : vector<32x128xf32>
    %334 = arith.addf %332, %333 : vector<32x128xf32>
    %335 = math.tanh %334 : vector<32x128xf32>
    %336 = arith.mulf %331, %335 : vector<32x128xf32>
    %c5_i32_89 = arith.constant 5 : i32
    %c128_i32_90 = arith.constant 128 : i32
    %337 = arith.muli %c5_i32_89, %c128_i32_90 : i32
    %338 = tpu.assume_multiple %337, 128 : i32
    %c0_91 = arith.constant 0 : index
    %339 = arith.index_cast %338 : i32 to index
    %340 = vector.load %arg11[%c0_91, %339] : memref<128x1024xf32, #tpu.memory_space<vmem>>, vector<128x128xf32>
    %341 = arith.truncf %336 : vector<32x128xf32> to vector<32x128xbf16>
    %cst_92 = arith.constant dense<0.000000e+00> : vector<128x128xf32>
    %342 = tpu.matmul %219, %341, %cst_92 {dimension_numbers = #tpu.dot_dimension_numbers<[1], [0], [0], [1], [0, 0, 1, 1], [], []>} : vector<128x32xbf16>, vector<32x128xbf16>, vector<128x128xf32> -> vector<128x128xf32>
    %343 = arith.addf %340, %342 : vector<128x128xf32>
    %344 = vector.extract_strided_slice %343 {offsets = [0, 0], sizes = [96, 128], strides = [1, 1]} : vector<128x128xf32> to vector<96x128xf32>
    %345 = arith.negf %344 : vector<96x128xf32>
    %346 = math.exp %345 : vector<96x128xf32>
    %cst_93 = arith.constant 1.000000e+00 : f32
    %347 = vector.broadcast %cst_93 : f32 to vector<96x128xf32>
    %348 = arith.addf %347, %346 : vector<96x128xf32>
    %349 = arith.divf %347, %348 : vector<96x128xf32>
    %350 = vector.extract_strided_slice %343 {offsets = [96, 0], sizes = [32, 128], strides = [1, 1]} : vector<128x128xf32> to vector<32x128xf32>
    %351 = math.tanh %350 : vector<32x128xf32>
    %352 = vector.extract_strided_slice %349 {offsets = [0, 0], sizes = [32, 128], strides = [1, 1]} : vector<96x128xf32> to vector<32x128xf32>
    %353 = vector.extract_strided_slice %349 {offsets = [32, 0], sizes = [32, 128], strides = [1, 1]} : vector<96x128xf32> to vector<32x128xf32>
    %354 = vector.extract_strided_slice %349 {offsets = [64, 0], sizes = [32, 128], strides = [1, 1]} : vector<96x128xf32> to vector<32x128xf32>
    %355 = arith.mulf %353, %334 : vector<32x128xf32>
    %356 = arith.mulf %352, %351 : vector<32x128xf32>
    %357 = arith.addf %355, %356 : vector<32x128xf32>
    %358 = math.tanh %357 : vector<32x128xf32>
    %359 = arith.mulf %354, %358 : vector<32x128xf32>
    %c6_i32_94 = arith.constant 6 : i32
    %c128_i32_95 = arith.constant 128 : i32
    %360 = arith.muli %c6_i32_94, %c128_i32_95 : i32
    %361 = tpu.assume_multiple %360, 128 : i32
    %c0_96 = arith.constant 0 : index
    %362 = arith.index_cast %361 : i32 to index
    %363 = vector.load %arg11[%c0_96, %362] : memref<128x1024xf32, #tpu.memory_space<vmem>>, vector<128x128xf32>
    %364 = arith.truncf %359 : vector<32x128xf32> to vector<32x128xbf16>
    %cst_97 = arith.constant dense<0.000000e+00> : vector<128x128xf32>
    %365 = tpu.matmul %219, %364, %cst_97 {dimension_numbers = #tpu.dot_dimension_numbers<[1], [0], [0], [1], [0, 0, 1, 1], [], []>} : vector<128x32xbf16>, vector<32x128xbf16>, vector<128x128xf32> -> vector<128x128xf32>
    %366 = arith.addf %363, %365 : vector<128x128xf32>
    %367 = vector.extract_strided_slice %366 {offsets = [0, 0], sizes = [96, 128], strides = [1, 1]} : vector<128x128xf32> to vector<96x128xf32>
    %368 = arith.negf %367 : vector<96x128xf32>
    %369 = math.exp %368 : vector<96x128xf32>
    %cst_98 = arith.constant 1.000000e+00 : f32
    %370 = vector.broadcast %cst_98 : f32 to vector<96x128xf32>
    %371 = arith.addf %370, %369 : vector<96x128xf32>
    %372 = arith.divf %370, %371 : vector<96x128xf32>
    %373 = vector.extract_strided_slice %366 {offsets = [96, 0], sizes = [32, 128], strides = [1, 1]} : vector<128x128xf32> to vector<32x128xf32>
    %374 = math.tanh %373 : vector<32x128xf32>
    %375 = vector.extract_strided_slice %372 {offsets = [0, 0], sizes = [32, 128], strides = [1, 1]} : vector<96x128xf32> to vector<32x128xf32>
    %376 = vector.extract_strided_slice %372 {offsets = [32, 0], sizes = [32, 128], strides = [1, 1]} : vector<96x128xf32> to vector<32x128xf32>
    %377 = vector.extract_strided_slice %372 {offsets = [64, 0], sizes = [32, 128], strides = [1, 1]} : vector<96x128xf32> to vector<32x128xf32>
    %378 = arith.mulf %376, %357 : vector<32x128xf32>
    %379 = arith.mulf %375, %374 : vector<32x128xf32>
    %380 = arith.addf %378, %379 : vector<32x128xf32>
    %381 = math.tanh %380 : vector<32x128xf32>
    %382 = arith.mulf %377, %381 : vector<32x128xf32>
    %c7_i32_99 = arith.constant 7 : i32
    %c128_i32_100 = arith.constant 128 : i32
    %383 = arith.muli %c7_i32_99, %c128_i32_100 : i32
    %384 = tpu.assume_multiple %383, 128 : i32
    %c0_101 = arith.constant 0 : index
    %385 = arith.index_cast %384 : i32 to index
    %386 = vector.load %arg11[%c0_101, %385] : memref<128x1024xf32, #tpu.memory_space<vmem>>, vector<128x128xf32>
    %387 = arith.truncf %382 : vector<32x128xf32> to vector<32x128xbf16>
    %cst_102 = arith.constant dense<0.000000e+00> : vector<128x128xf32>
    %388 = tpu.matmul %219, %387, %cst_102 {dimension_numbers = #tpu.dot_dimension_numbers<[1], [0], [0], [1], [0, 0, 1, 1], [], []>} : vector<128x32xbf16>, vector<32x128xbf16>, vector<128x128xf32> -> vector<128x128xf32>
    %389 = arith.addf %386, %388 : vector<128x128xf32>
    %390 = vector.extract_strided_slice %389 {offsets = [0, 0], sizes = [96, 128], strides = [1, 1]} : vector<128x128xf32> to vector<96x128xf32>
    %391 = arith.negf %390 : vector<96x128xf32>
    %392 = math.exp %391 : vector<96x128xf32>
    %cst_103 = arith.constant 1.000000e+00 : f32
    %393 = vector.broadcast %cst_103 : f32 to vector<96x128xf32>
    %394 = arith.addf %393, %392 : vector<96x128xf32>
    %395 = arith.divf %393, %394 : vector<96x128xf32>
    %396 = vector.extract_strided_slice %389 {offsets = [96, 0], sizes = [32, 128], strides = [1, 1]} : vector<128x128xf32> to vector<32x128xf32>
    %397 = math.tanh %396 : vector<32x128xf32>
    %398 = vector.extract_strided_slice %395 {offsets = [0, 0], sizes = [32, 128], strides = [1, 1]} : vector<96x128xf32> to vector<32x128xf32>
    %399 = vector.extract_strided_slice %395 {offsets = [32, 0], sizes = [32, 128], strides = [1, 1]} : vector<96x128xf32> to vector<32x128xf32>
    %400 = vector.extract_strided_slice %395 {offsets = [64, 0], sizes = [32, 128], strides = [1, 1]} : vector<96x128xf32> to vector<32x128xf32>
    %401 = arith.mulf %399, %380 : vector<32x128xf32>
    %402 = arith.mulf %398, %397 : vector<32x128xf32>
    %403 = arith.addf %401, %402 : vector<32x128xf32>
    %404 = math.tanh %403 : vector<32x128xf32>
    %405 = arith.mulf %400, %404 : vector<32x128xf32>
    %c8_i32_104 = arith.constant 8 : i32
    %c0_105 = arith.constant 0 : index
    %c0_106 = arith.constant 0 : index
    %406 = vector.load %arg8[%c0_105, %c0_106] : memref<12x32xbf16, #tpu.memory_space<vmem>>, vector<12x32xbf16>
    %407 = arith.truncf %405 : vector<32x128xf32> to vector<32x128xbf16>
    %cst_107 = arith.constant dense<0.000000e+00> : vector<12x128xf32>
    %408 = tpu.matmul %406, %407, %cst_107 {dimension_numbers = #tpu.dot_dimension_numbers<[1], [0], [0], [1], [0, 0, 1, 1], [], []>} : vector<12x32xbf16>, vector<32x128xbf16>, vector<12x128xf32> -> vector<12x128xf32>
    %c0_108 = arith.constant 0 : index
    %c0_109 = arith.constant 0 : index
    %409 = vector.load %arg9[%c0_108, %c0_109] : memref<12x1xf32, #tpu.memory_space<vmem>>, vector<12x1xf32>
    %410 = vector.broadcast %409 : vector<12x1xf32> to vector<12x128xf32>
    %411 = arith.addf %408, %410 : vector<12x128xf32>
    %c0_110 = arith.constant 0 : index
    %c0_111 = arith.constant 0 : index
    %c0_112 = arith.constant 0 : index
    %412 = vector.load %arg10[%c0_110, %c0_111, %c0_112] : memref<1x12x128xf32, #tpu.memory_space<vmem>>, vector<1x12x128xf32>
    %413 = vector.shape_cast %412 : vector<1x12x128xf32> to vector<12x128xf32>
    %414 = vector.shape_cast %411 : vector<12x128xf32> to vector<1x12x128xf32>
    tpu.vector_store %arg10[%c0_110, %c0_111, %c0_112], %414 {strides = array<i32>} : memref<1x12x128xf32, #tpu.memory_space<vmem>>, vector<1x12x128xf32>,
    return
  }
  func.func @transform_0(%arg0: i32) -> (i32, i32, i32) {
    %c0_i32 = arith.constant 0 : i32
    %c0_i32_0 = arith.constant 0 : i32
    %c0_i32_1 = arith.constant 0 : i32
    return %arg0, %c0_i32, %c0_i32_0 : i32, i32, i32
  }
  func.func @transform_1(%arg0: i32) -> (i32, i32) {
    %c0_i32 = arith.constant 0 : i32
    %c0_i32_0 = arith.constant 0 : i32
    %c0_i32_1 = arith.constant 0 : i32
    return %c0_i32, %c0_i32_0 : i32, i32
  }
  func.func @transform_2(%arg0: i32) -> (i32, i32) {
    %c0_i32 = arith.constant 0 : i32
    %c0_i32_0 = arith.constant 0 : i32
    %c0_i32_1 = arith.constant 0 : i32
    return %c0_i32, %c0_i32_0 : i32, i32
  }
  func.func @transform_3(%arg0: i32) -> (i32, i32) {
    %c0_i32 = arith.constant 0 : i32
    %c0_i32_0 = arith.constant 0 : i32
    %c0_i32_1 = arith.constant 0 : i32
    return %c0_i32, %c0_i32_0 : i32, i32
  }
  func.func @transform_4(%arg0: i32) -> (i32, i32) {
    %c0_i32 = arith.constant 0 : i32
    %c0_i32_0 = arith.constant 0 : i32
    %c0_i32_1 = arith.constant 0 : i32
    return %c0_i32, %c0_i32_0 : i32, i32
  }
  func.func @transform_5(%arg0: i32) -> (i32, i32) {
    %c0_i32 = arith.constant 0 : i32
    %c0_i32_0 = arith.constant 0 : i32
    %c0_i32_1 = arith.constant 0 : i32
    return %c0_i32, %c0_i32_0 : i32, i32
  }
  func.func @transform_6(%arg0: i32) -> (i32, i32) {
    %c0_i32 = arith.constant 0 : i32
    %c0_i32_0 = arith.constant 0 : i32
    %c0_i32_1 = arith.constant 0 : i32
    return %c0_i32, %c0_i32_0 : i32, i32
  }
  func.func @transform_7(%arg0: i32) -> (i32, i32) {
    %c0_i32 = arith.constant 0 : i32
    %c0_i32_0 = arith.constant 0 : i32
    %c0_i32_1 = arith.constant 0 : i32
    return %c0_i32, %c0_i32_0 : i32, i32
  }
  func.func @transform_8(%arg0: i32) -> (i32, i32) {
    %c0_i32 = arith.constant 0 : i32
    %c0_i32_0 = arith.constant 0 : i32
    %c0_i32_1 = arith.constant 0 : i32
    return %c0_i32, %c0_i32_0 : i32, i32
  }
  func.func @transform_9(%arg0: i32) -> (i32, i32, i32) {
    %c0_i32 = arith.constant 0 : i32
    %c0_i32_0 = arith.constant 0 : i32
    %c0_i32_1 = arith.constant 0 : i32
    return %arg0, %c0_i32, %c0_i32_0 : i32, i32, i32
  }
}

</mosaic_0001>

<bundles_post_ra>
// kernel: tpu_custom_call.1
= control target key start
LH: loop header
LB: loop body
LE: loop exit
PB: predicated region body
PF: predicated region fallthrough
CT: control target
= control target key end

     0   :  { %vm234_vm0 = vcmask 1043456   ;;  %v9899_v1 = vmov 0   ;;  %vm209_vm1 = vcmask 64512   ;;  %vm911_vm2 = vcmask 261120   ;;  %s9889_s0 = inlined_call_operand.vmem [shape: bf16[1,8,1024], index: 0, kind: input, shape index: {}]   ;;  %s9890_s1 = inlined_call_operand.vmem [shape: bf16[128,8], index: 1, kind: input, shape index: {}]   ;;  %s9891_s3 = inlined_call_operand.vmem [shape: f32[128,1], index: 3, kind: input, shape index: {}]   ;;  %s9892_s2 = inlined_call_operand.vmem [shape: bf16[128,32], index: 2, kind: input, shape index: {}]   ;;  %s9893_s6 = inlined_call_operand.vmem [shape: f32[128,1], index: 6, kind: input, shape index: {}]   ;;  %s9894_s8 = inlined_call_operand.vmem [shape: f32[12,1], index: 8, kind: input, shape index: {}]   ;;  %s9895_s4 = inlined_call_operand.vmem [shape: bf16[128,32], index: 4, kind: input, shape index: {}]   ;;  %s9896_s5 = inlined_call_operand.vmem [shape: bf16[128,32], index: 5, kind: input, shape index: {}]   ;;  %s9897_s7 = inlined_call_operand.vmem [shape: bf16[12,32], index: 7, kind: input, shape index: {}]   ;;  %s9898_s9 = inlined_call_operand.vmem [shape: f32[1,12,128], index: 9, kind: output, shape index: {}]  }
   0x1   :  { %v33_v0 = vld [vmem:[%s9889_s0] sm:$0xff]  ;;  %291 = vmatprep.mubr.bf16.mxu0 %v9899_v1  ;;  %404 = vmatprep.mubr.bf16.mxu1 %v9899_v1  ;;  %v34_v4 = vld [vmem:[%s9889_s0 + $0x8] sm:$0xff]  ;;  %v35_v10 = vld [vmem:[%s9889_s0 + $0x10] sm:$0xff]  ;;  %vm7575_vm3 = vmmov 0  }
   0x2   :  { %v5558_v2 = vcombine.high %v33_v0, %v33_v0  ;;  %v5557_v3 = vcombine.low %v33_v0, %v33_v0  ;;  %6467 = vset.pattern.permute.xlu0 %v9899_v1  ;;  %6468 = vset.pattern.permute.xlu1 %v9899_v1  ;;  %v5560_v5 = vcombine.high %v34_v4, %v34_v4  ;;  %v7641_v8 = vld [vmem:[%s9890_s1] sm:$0xff]   ;;  %v36_v13 = vld [vmem:[%s9889_s0 + $0x18] sm:$0xff]  ;;  %v7666_v18 = vld [vmem:[%s9890_s1 + $0x8] sm:$0xff]  }
   0x3   :  { %v5559_v6 = vcombine.low %v34_v4, %v34_v4  ;;  %v5562_v11 = vcombine.high %v35_v10, %v35_v10  ;;  %v5561_v12 = vcombine.low %v35_v10, %v35_v10  ;;  %v53_v14 = vld [vmem:[%s9891_s3] sm:$0xff]  ;;  %v5564_v16 = vcombine.high %v36_v13, %v36_v13  ;;  %v54_v20 = vld [vmem:[%s9891_s3 + $0x8] sm:$0xff]  ;;  %v55_v23 = vld [vmem:[%s9891_s3 + $0x10] sm:$0xff] }
   0x4   :  { %5565 = vmatprep.subr.msk.bf16.mxu0 %vm234_vm0, %v5558_v2  ;;  %v236_v7 = vsel %vm234_vm0, %v5557_v3, 0  ;;  %5574 = vmatprep.subr.msk.bf16.mxu1 %vm234_vm0, %v5560_v5  ;;  %v57_v15 = vld [vmem:[%s9891_s3 + $0x20] sm:$0xff]  ;;  %v5563_v17 = vcombine.low %v36_v13, %v36_v13  ;;  %v58_v21 = vld [vmem:[%s9891_s3 + $0x28] sm:$0xff]  ;;  %v56_v24 = vld [vmem:[%s9891_s3 + $0x18] sm:$0xff] }
   0x5   :  { %260 = vmatpush1.bf16.msra.mxu0 %v236_v7  ;;  %v242_v9 = vsel %vm234_vm0, %v5559_v6, 0  ;;  %71 = vperm.xlu0 %6467, %v53_v14   ;;  %v248_v19 = vsel %vm234_vm0, %v5561_v12, 0  ;;  %v7694_v25 = vld [vmem:[%s9890_s1 + $0x10] sm:$0xff]   ;;  %v60_v27 = vld [vmem:[%s9891_s3 + $0x38] sm:$0xff]  ;;  %v61_v28 = vld [vmem:[%s9891_s3 + $0x40] sm:$0xff] }
   0x6   :  { %373 = vmatpush1.bf16.msra.mxu1 %v242_v9  ;;  %91 = vperm.xlu1 %6468, %v57_v15   ;;  %v254_v22 = vsel %vm234_vm0, %v5563_v17, 0  ;;  %v59_v26 = vld [vmem:[%s9891_s3 + $0x30] sm:$0xff]  ;;  %v62_v29 = vld [vmem:[%s9891_s3 + $0x48] sm:$0xff]  ;;  %v7717_v30 = vld [vmem:[%s9890_s1 + $0x18] sm:$0xff]  }
   0x7   :  { %5583 = vmatprep.subr.msk.bf16.mxu0 %vm234_vm0, %v5562_v11  ;;  %5592 = vmatprep.subr.msk.bf16.mxu1 %vm234_vm0, %v5564_v16  ;;  %v65_v31 = vld [vmem:[%s9891_s3 + $0x60] sm:$0xff]  ;;  %v66_v32 = vld [vmem:[%s9891_s3 + $0x68] sm:$0xff]  ;;  %v63_v33 = vld [vmem:[%s9891_s3 + $0x50] sm:$0xff] }
   0x8   :  { %5566 = vmatmul.mubr.msk.bf16.vlgmr.msra.gmra.mrb[0].mxu0 %vm209_vm1, %v7641_v8  ;;  %v64_v34 = vld [vmem:[%s9891_s3 + $0x58] sm:$0xff]  ;;  %v7740_v35 = vld [vmem:[%s9890_s1 + $0x20] sm:$0xff]   ;;  %v67_v36 = vld [vmem:[%s9891_s3 + $0x70] sm:$0xff] }
   0x9   :  { %5575 = vmatmul.mubr.msk.bf16.vlgmr.msra.gmra.mrb[0].mxu1 %vm209_vm1, %v7641_v8  ;;  %301 = vmatprep.mubr.bf16.mxu0 %v9899_v1  ;;  %v68_v37 = vld [vmem:[%s9891_s3 + $0x78] sm:$0xff]  ;;  %v2845_v38 = vld [vmem:[%s9893_s6 + $0x8] sm:$0xff]  ;;  %v2844_v39 = vld [vmem:[%s9893_s6] sm:$0xff] }
   0xa   :  { %414 = vmatprep.mubr.bf16.mxu1 %v9899_v1  ;;  %486 = vmatpush1.bf16.msra.mxu0 %v248_v19  ;;  %v7763_v40 = vld [vmem:[%s9890_s1 + $0x28] sm:$0xff]   ;;  %v2848_v42 = vld [vmem:[%s9893_s6 + $0x20] sm:$0xff]  ;;  %v2847_v43 = vld [vmem:[%s9893_s6 + $0x18] sm:$0xff] }
   0xb   :  { %599 = vmatpush1.bf16.msra.mxu1 %v254_v22  ;;  %6140 = vmatprep.subr.bf16.mxu0 %v9899_v1  ;;  %v2849_v41 = vld [vmem:[%s9893_s6 + $0x28] sm:$0xff]  ;;  %v2846_v44 = vld [vmem:[%s9893_s6 + $0x10] sm:$0xff]  ;;  %v2851_v46 = vld [vmem:[%s9893_s6 + $0x38] sm:$0xff] }
   0xc   :  { %76 = vperm.xlu0 %6467, %v54_v20   ;;  %96 = vperm.xlu1 %6468, %v58_v21   ;;  %v6479_v45 = vld [vmem:[%s9890_s1 + $0x30] sm:$0xff]   ;;  %v2853_v48 = vld [vmem:[%s9893_s6 + $0x48] sm:$0xff]  ;;  %v2852_v49 = vld [vmem:[%s9893_s6 + $0x40] sm:$0xff] }
   0xd   :  { %v2850_v47 = vld [vmem:[%s9893_s6 + $0x30] sm:$0xff]  ;;  %v6480_v50 = vld [vmem:[%s9890_s1 + $0x38] sm:$0xff]   ;;  %v2857_v51 = vld [vmem:[%s9893_s6 + $0x68] sm:$0xff] }
   0xe   :  { %v2856_v52 = vld [vmem:[%s9893_s6 + $0x60] sm:$0xff]  ;;  %v2855_v53 = vld [vmem:[%s9893_s6 + $0x58] sm:$0xff]  ;;  %v2854_v54 = vld [vmem:[%s9893_s6 + $0x50] sm:$0xff] }
   0xf   :  { %v2859_v55 = vld [vmem:[%s9893_s6 + $0x78] sm:$0xff]  ;;  %v2858_v56 = vld [vmem:[%s9893_s6 + $0x70] sm:$0xff]  ;;  %v5483_v57 = vld [vmem:[%s9894_s8 + $0x8] sm:$0xf] }
  0x10   :  { %5567 = vmatmul.mubr.msk.bf16.gmra.mrb[4].mxu0 %vm209_vm1, %v7666_v18  ;;  %81 = vperm.xlu0 %6467, %v55_v23   ;;  %v5482_v58 = vld [vmem:[%s9894_s8] sm:$0xff]  ;;  %v7888_v60 = vld [vmem:[%s9892_s2 + $0x8] sm:$0xff]   ;;  %v7893_v61 = vld [vmem:[%s9892_s2 + $0x10] sm:$0xff]  }
  0x11   :  { %5576 = vmatmul.mubr.msk.bf16.gmra.mrb[4].mxu1 %vm209_vm1, %v7666_v18  ;;  %311 = vmatprep.mubr.bf16.mxu0 %v9899_v1  ;;  %v7877_v59 = vld [vmem:[%s9892_s2] sm:$0xff]   ;;  %v7902_v62 = vld [vmem:[%s9892_s2 + $0x18] sm:$0xff]   ;;  %v7916_v0 = vld [vmem:[%s9892_s2 + $0x28] sm:$0xff]  }
  0x12   :  { %424 = vmatprep.mubr.bf16.mxu1 %v9899_v1  ;;  %86 = vperm.xlu1 %6468, %v56_v24   ;;  %v7907_v63 = vld [vmem:[%s9892_s2 + $0x20] sm:$0xff]   ;;  %v7921_v2 = vld [vmem:[%s9892_s2 + $0x30] sm:$0xff]   ;;  %v7930_v3 = vld [vmem:[%s9892_s2 + $0x38] sm:$0xff]  }
  0x14   :  { %101 = vperm.xlu0 %6467, %v59_v26  }
  0x16   :  { %106 = vperm.xlu1 %6468, %v60_v27  }
  0x18   :  { %5568 = vmatmul.mubr.msk.bf16.gmra.mrb[8].mxu0 %vm209_vm1, %v7694_v25  ;;  %111 = vperm.xlu0 %6467, %v61_v28  }
  0x19   :  { %5577 = vmatmul.mubr.msk.bf16.gmra.mrb[8].mxu1 %vm209_vm1, %v7694_v25  ;;  %321 = vmatprep.mubr.bf16.mxu0 %v9899_v1 }
  0x1a   :  { %434 = vmatprep.mubr.bf16.mxu1 %v9899_v1  ;;  %116 = vperm.xlu1 %6468, %v62_v29  }
  0x1c   :  { %131 = vperm.xlu0 %6467, %v65_v31  }
  0x1e   :  { %136 = vperm.xlu1 %6468, %v66_v32  }
  0x20   :  { %5569 = vmatmul.mubr.msk.bf16.gmra.mrb[12].mxu0 %vm209_vm1, %v7717_v30  ;;  %121 = vperm.xlu0 %6467, %v63_v33  }
  0x21   :  { %5578 = vmatmul.mubr.msk.bf16.gmra.mrb[12].mxu1 %vm209_vm1, %v7717_v30  ;;  %331 = vmatprep.mubr.bf16.mxu0 %v9899_v1 }
  0x22   :  { %444 = vmatprep.mubr.bf16.mxu1 %v9899_v1  ;;  %126 = vperm.xlu1 %6468, %v64_v34  }
  0x24   :  { %141 = vperm.xlu0 %6467, %v67_v36  }
  0x26   :  { %146 = vperm.xlu1 %6468, %v68_v37  }
  0x28   :  { %5570 = vmatmul.mubr.msk.bf16.gmra.mrb[16].mxu0 %vm209_vm1, %v7740_v35  ;;  %2862 = vperm.xlu0 %6467, %v2844_v39  }
  0x29   :  { %5579 = vmatmul.mubr.msk.bf16.gmra.mrb[16].mxu1 %vm209_vm1, %v7740_v35  ;;  %341 = vmatprep.mubr.bf16.mxu0 %v9899_v1 }
  0x2a   :  { %454 = vmatprep.mubr.bf16.mxu1 %v9899_v1  ;;  %2867 = vperm.xlu1 %6468, %v2845_v38  }
  0x2c   :  { %2882 = vperm.xlu0 %6467, %v2848_v42  }
  0x2e   :  { %2887 = vperm.xlu1 %6468, %v2849_v41  }
  0x30   :  { %5571 = vmatmul.mubr.msk.bf16.gmra.mrb[20].mxu0 %vm209_vm1, %v7763_v40  ;;  %2872 = vperm.xlu0 %6467, %v2846_v44  }
  0x31   :  { %5580 = vmatmul.mubr.msk.bf16.gmra.mrb[20].mxu1 %vm209_vm1, %v7763_v40  ;;  %351 = vmatprep.mubr.bf16.mxu0 %v9899_v1 }
  0x32   :  { %464 = vmatprep.mubr.bf16.mxu1 %v9899_v1  ;;  %2877 = vperm.xlu1 %6468, %v2847_v43  }
  0x34   :  { %2892 = vperm.xlu0 %6467, %v2850_v47  }
  0x36   :  { %2897 = vperm.xlu1 %6468, %v2851_v46  }
  0x38   :  { %5572 = vmatmul.mubr.msk.bf16.gmra.mrb[24].mxu0 %vm209_vm1, %v6479_v45  ;;  %2902 = vperm.xlu0 %6467, %v2852_v49  }
  0x39   :  { %5581 = vmatmul.mubr.msk.bf16.gmra.mrb[24].mxu1 %vm209_vm1, %v6479_v45  ;;  %361 = vmatprep.mubr.bf16.mxu0 %v9899_v1 }
  0x3a   :  { %474 = vmatprep.mubr.bf16.mxu1 %v9899_v1  ;;  %2907 = vperm.xlu1 %6468, %v2853_v48  }
  0x3c   :  { %2922 = vperm.xlu0 %6467, %v2856_v52  }
  0x3e   :  { %2927 = vperm.xlu1 %6468, %v2857_v51  }
  0x40   :  { %5573 = vmatmul.mubr.msk.bf16.gmra.mrb[28].mxu0 %vm209_vm1, %v6480_v50  ;;  %2912 = vperm.xlu0 %6467, %v2854_v54  }
  0x41   :  { %5582 = vmatmul.mubr.msk.bf16.gmra.mrb[28].mxu1 %vm209_vm1, %v6480_v50  ;;  %517 = vmatprep.mubr.bf16.mxu0 %v9899_v1 }
  0x42   :  { %630 = vmatprep.mubr.bf16.mxu1 %v9899_v1  ;;  %2917 = vperm.xlu1 %6468, %v2855_v53  }
  0x44   :  { %2932 = vperm.xlu0 %6467, %v2858_v56  }
  0x46   :  { %2937 = vperm.xlu1 %6468, %v2859_v55  }
  0x48   :  { %5584 = vmatmul.mubr.msk.bf16.vlgmr.msra.gmra.mrb[32].mxu0 %vm209_vm1, %v7641_v8  ;;  %5486 = vperm.xlu0 %6467, %v5482_v58  }
  0x49   :  { %5593 = vmatmul.mubr.msk.bf16.vlgmr.msra.gmra.mrb[32].mxu1 %vm209_vm1, %v7641_v8  ;;  %527 = vmatprep.mubr.bf16.mxu0 %v9899_v1 }
  0x4a   :  { %640 = vmatprep.mubr.bf16.mxu1 %v9899_v1  ;;  %6141 = vmatpush3.bf16.msra.mxu0 %v9899_v1 }
  0x4b   :  { %5491 = vperm.xlu1 %6468, %v5483_v57  }
  0x50   :  { %5585 = vmatmul.mubr.msk.bf16.gmra.mrb[36].mxu0 %vm209_vm1, %v7666_v18 }
  0x51   :  { %5594 = vmatmul.mubr.msk.bf16.gmra.mrb[36].mxu1 %vm209_vm1, %v7666_v18  ;;  %537 = vmatprep.mubr.bf16.mxu0 %v9899_v1 }
  0x52   :  { %650 = vmatprep.mubr.bf16.mxu1 %v9899_v1 }
  0x58   :  { %5586 = vmatmul.mubr.msk.bf16.gmra.mrb[40].mxu0 %vm209_vm1, %v7694_v25 }
  0x59   :  { %5595 = vmatmul.mubr.msk.bf16.gmra.mrb[40].mxu1 %vm209_vm1, %v7694_v25  ;;  %547 = vmatprep.mubr.bf16.mxu0 %v9899_v1 }
  0x5a   :  { %660 = vmatprep.mubr.bf16.mxu1 %v9899_v1 }
  0x60   :  { %5587 = vmatmul.mubr.msk.bf16.gmra.mrb[44].mxu0 %vm209_vm1, %v7717_v30 }
  0x61   :  { %5596 = vmatmul.mubr.msk.bf16.gmra.mrb[44].mxu1 %vm209_vm1, %v7717_v30  ;;  %557 = vmatprep.mubr.bf16.mxu0 %v9899_v1 }
  0x62   :  { %670 = vmatprep.mubr.bf16.mxu1 %v9899_v1 }
  0x68   :  { %5588 = vmatmul.mubr.msk.bf16.gmra.mrb[48].mxu0 %vm209_vm1, %v7740_v35 }
  0x69   :  { %5597 = vmatmul.mubr.msk.bf16.gmra.mrb[48].mxu1 %vm209_vm1, %v7740_v35  ;;  %567 = vmatprep.mubr.bf16.mxu0 %v9899_v1 }
  0x6a   :  { %680 = vmatprep.mubr.bf16.mxu1 %v9899_v1 }
  0x70   :  { %5589 = vmatmul.mubr.msk.bf16.gmra.mrb[52].mxu0 %vm209_vm1, %v7763_v40 }
  0x71   :  { %5598 = vmatmul.mubr.msk.bf16.gmra.mrb[52].mxu1 %vm209_vm1, %v7763_v40  ;;  %577 = vmatprep.mubr.bf16.mxu0 %v9899_v1 }
  0x72   :  { %690 = vmatprep.mubr.bf16.mxu1 %v9899_v1 }
  0x78   :  { %5590 = vmatmul.mubr.msk.bf16.gmra.mrb[56].mxu0 %vm209_vm1, %v6479_v45 }
  0x79   :  { %5599 = vmatmul.mubr.msk.bf16.gmra.mrb[56].mxu1 %vm209_vm1, %v6479_v45  ;;  %587 = vmatprep.mubr.bf16.mxu0 %v9899_v1 }
  0x7a   :  { %700 = vmatprep.mubr.bf16.mxu1 %v9899_v1 }
  0x80   :  { %5591 = vmatmul.mubr.msk.bf16.gmra.mrb[60].mxu0 %vm209_vm1, %v6480_v50 }
  0x81   :  { %5600 = vmatmul.mubr.msk.bf16.gmra.mrb[60].mxu1 %vm209_vm1, %v6480_v50  ;;  %6142 = vmatprep.mubr.msk.bf16.mxu0 %vm911_vm2, %v7877_v59 }
  0x82   :  { %6162 = vmatprep.mubr.msk.bf16.mxu1 %vm911_vm2, %v7877_v59 }
  0x88   :  { %6143 = vmatmul.mubr.msk.bf16.vlgmr.msra.gmra.mrb[64].mxu0 %vm911_vm2, %v7888_v60 }
  0x89   :  { %6146 = vmatprep.mubr.msk.bf16.mxu0 %vm911_vm2, %v7893_v61 }
  0x90   :  { %6147 = vmatmul.mubr.msk.bf16.gmra.mrb[68].mxu0 %vm911_vm2, %v7902_v62 }
  0x91   :  { %6150 = vmatprep.mubr.msk.bf16.mxu0 %vm911_vm2, %v7907_v63 }
  0x98   :  { %6151 = vmatmul.mubr.msk.bf16.gmra.mrb[72].mxu0 %vm911_vm2, %v7916_v0 }
  0x99   :  { %6154 = vmatprep.mubr.msk.bf16.mxu0 %vm911_vm2, %v7921_v2 }
  0xa0   :  { %6155 = vmatmul.mubr.msk.bf16.gmra.mrb[76].mxu0 %vm911_vm2, %v7930_v3 }
  0xa1   :  { %6182 = vmatprep.mubr.msk.bf16.mxu0 %vm911_vm2, %v7877_v59 }
  0xdb   :  { %v7936_v4 = vpop.f32.mrb[0].mxu0 }
  0xdc   :  { %v7938_v5 = vpop.f32.mrb[1].mxu0  ;;  %v7940_v6 = vpop.f32.mrb[0].mxu1 }
  0xdd   :  { %9912 = vst [vmem:[#allocation4_spill] sm:$0xff] %v7940_v6  ;;  %v7942_v7 = vpop.f32.mrb[2].mxu0  ;;  %v7944_v8 = vpop.f32.mrb[1].mxu1 }
  0xde   :  { %9913 = vst [vmem:[#allocation5_spill] sm:$0xff] %v7944_v8  ;;  %v7946_v9 = vpop.f32.mrb[3].mxu0  ;;  %v7948_v10 = vpop.f32.mrb[2].mxu1 }
  0xdf   :  { %9914 = vst [vmem:[#allocation6_spill] sm:$0xff] %v7948_v10  ;;  %v7950_v11 = vpop.f32.mrb[3].mxu1 }
  0xe0   :  { %9915 = vst [vmem:[#allocation7_spill] sm:$0xff] %v7950_v11 }
  0xe3   :  { %v7952_v12 = vpop.f32.mrb[4].mxu0 }
  0xe4   :  { %v7954_v13 = vpop.f32.mrb[5].mxu0  ;;  %v7956_v14 = vpop.f32.mrb[4].mxu1 }
  0xe5   :  { %9916 = vst [vmem:[#allocation8_spill] sm:$0xff] %v7956_v14  ;;  %v7958_v15 = vpop.f32.mrb[6].mxu0  ;;  %v7960_v16 = vpop.f32.mrb[5].mxu1 }
  0xe6   :  { %9917 = vst [vmem:[#allocation9_spill] sm:$0xff] %v7960_v16  ;;  %v7962_v17 = vpop.f32.mrb[7].mxu0  ;;  %v7964_v18 = vpop.f32.mrb[6].mxu1 }
  0xe7   :  { %9918 = vst [vmem:[#allocation10_spill] sm:$0xff] %v7964_v18  ;;  %v7966_v19 = vpop.f32.mrb[7].mxu1 }
  0xe8   :  { %9919 = vst [vmem:[#allocation11_spill] sm:$0xff] %v7966_v19 }
  0xeb   :  { %v7968_v20 = vpop.f32.mrb[8].mxu0 }
  0xec   :  { %v7970_v21 = vpop.f32.mrb[9].mxu0  ;;  %v7972_v22 = vpop.f32.mrb[8].mxu1 }
  0xed   :  { %9920 = vst [vmem:[#allocation12_spill] sm:$0xff] %v7972_v22  ;;  %v7974_v23 = vpop.f32.mrb[10].mxu0  ;;  %v7976_v24 = vpop.f32.mrb[9].mxu1 }
  0xee   :  { %9921 = vst [vmem:[#allocation13_spill] sm:$0xff] %v7976_v24  ;;  %v7978_v25 = vpop.f32.mrb[11].mxu0  ;;  %v7980_v26 = vpop.f32.mrb[10].mxu1 }
  0xef   :  { %9922 = vst [vmem:[#allocation14_spill] sm:$0xff] %v7980_v26  ;;  %v7982_v27 = vpop.f32.mrb[11].mxu1 }
  0xf0   :  { %9923 = vst [vmem:[#allocation15_spill] sm:$0xff] %v7982_v27 }
  0xf3   :  { %v7984_v28 = vpop.f32.mrb[12].mxu0 }
  0xf4   :  { %v7986_v29 = vpop.f32.mrb[13].mxu0  ;;  %v7988_v30 = vpop.f32.mrb[12].mxu1 }
  0xf5   :  { %9924 = vst [vmem:[#allocation16_spill] sm:$0xff] %v7988_v30  ;;  %v7990_v31 = vpop.f32.mrb[14].mxu0  ;;  %v7992_v32 = vpop.f32.mrb[13].mxu1 }
  0xf6   :  { %9925 = vst [vmem:[#allocation17_spill] sm:$0xff] %v7992_v32  ;;  %v7994_v33 = vpop.f32.mrb[15].mxu0  ;;  %v7996_v34 = vpop.f32.mrb[14].mxu1 }
  0xf7   :  { %9926 = vst [vmem:[#allocation18_spill] sm:$0xff] %v7996_v34  ;;  %v7998_v35 = vpop.f32.mrb[15].mxu1 }
  0xf8   :  { %9927 = vst [vmem:[#allocation19_spill] sm:$0xff] %v7998_v35 }
  0xfb   :  { %v8000_v36 = vpop.f32.mrb[16].mxu0 }
  0xfc   :  { %v8002_v37 = vpop.f32.mrb[17].mxu0  ;;  %v8004_v38 = vpop.f32.mrb[16].mxu1 }
  0xfd   :  { %9928 = vst [vmem:[#allocation20_spill] sm:$0xff] %v8004_v38  ;;  %v8006_v39 = vpop.f32.mrb[18].mxu0  ;;  %v8008_v40 = vpop.f32.mrb[17].mxu1 }
  0xfe   :  { %9929 = vst [vmem:[#allocation21_spill] sm:$0xff] %v8008_v40  ;;  %v8010_v41 = vpop.f32.mrb[19].mxu0  ;;  %v8012_v42 = vpop.f32.mrb[18].mxu1 }
  0xff   :  { %9930 = vst [vmem:[#allocation22_spill] sm:$0xff] %v8012_v42  ;;  %v8014_v43 = vpop.f32.mrb[19].mxu1 }
 0x100   :  { %9931 = vst [vmem:[#allocation23_spill] sm:$0xff] %v8014_v43 }
 0x103   :  { %v8016_v44 = vpop.f32.mrb[20].mxu0 }
 0x104   :  { %v8018_v45 = vpop.f32.mrb[21].mxu0  ;;  %v8020_v46 = vpop.f32.mrb[20].mxu1 }
 0x105   :  { %9932 = vst [vmem:[#allocation24_spill] sm:$0xff] %v8020_v46  ;;  %v8022_v47 = vpop.f32.mrb[22].mxu0  ;;  %v8024_v48 = vpop.f32.mrb[21].mxu1 }
 0x106   :  { %9933 = vst [vmem:[#allocation25_spill] sm:$0xff] %v8024_v48  ;;  %v8026_v49 = vpop.f32.mrb[23].mxu0  ;;  %v8028_v50 = vpop.f32.mrb[22].mxu1 }
 0x107   :  { %9934 = vst [vmem:[#allocation26_spill] sm:$0xff] %v8028_v50  ;;  %v8030_v51 = vpop.f32.mrb[23].mxu1 }
 0x108   :  { %9935 = vst [vmem:[#allocation27_spill] sm:$0xff] %v8030_v51 }
 0x10b   :  { %v8032_v52 = vpop.f32.mrb[24].mxu0 }
 0x10c   :  { %v8034_v53 = vpop.f32.mrb[25].mxu0  ;;  %v8036_v54 = vpop.f32.mrb[24].mxu1 }
 0x10d   :  { %9936 = vst [vmem:[#allocation28_spill] sm:$0xff] %v8036_v54  ;;  %v8038_v55 = vpop.f32.mrb[26].mxu0  ;;  %v8040_v56 = vpop.f32.mrb[25].mxu1 }
 0x10e   :  { %9937 = vst [vmem:[#allocation29_spill] sm:$0xff] %v8040_v56  ;;  %v8042_v57 = vpop.f32.mrb[27].mxu0  ;;  %v8044_v58 = vpop.f32.mrb[26].mxu1 }
 0x10f   :  { %9938 = vst [vmem:[#allocation30_spill] sm:$0xff] %v8042_v57  ;;  %9939 = vst [vmem:[#allocation31_spill] sm:$0xff] %v8044_v58  ;;  %v8046_v1 = vpop.f32.mrb[27].mxu1 }
 0x110   :  { %9940 = vst [vmem:[#allocation32_spill] sm:$0xff] %v8046_v1 }
 0x113   :  { %v8048_v43 = vpop.f32.mrb[28].mxu0 }
 0x114   :  { %v8050_v40 = vpop.f32.mrb[29].mxu0  ;;  %v8052_v51 = vpop.f32.mrb[28].mxu1 }
 0x115   :  { %9941 = vst [vmem:[#allocation33_spill] sm:$0xff] %v8052_v51  ;;  %v8054_v48 = vpop.f32.mrb[30].mxu0  ;;  %v8056_v27 = vpop.f32.mrb[29].mxu1 }
 0x116   :  { %9942 = vst [vmem:[#allocation34_spill] sm:$0xff] %v8056_v27  ;;  %v8058_v35 = vpop.f32.mrb[31].mxu0  ;;  %v8060_v24 = vpop.f32.mrb[30].mxu1 }
 0x117   :  { %9943 = vst [vmem:[#allocation35_spill] sm:$0xff] %v8058_v35  ;;  %9944 = vst [vmem:[#allocation36_spill] sm:$0xff] %v8060_v24  ;;  %v8062_v56 = vpop.f32.mrb[31].mxu1 }
 0x118   :  { %9945 = vst [vmem:[#allocation37_spill] sm:$0xff] %v8062_v56 }
 0x11b   :  { %v8064_v32 = vpop.f32.mrb[32].mxu0 }
 0x11c   :  { %9946 = vst [vmem:[#allocation38_spill] sm:$0xff] %v8064_v32  ;;  %v8066_v11 = vpop.f32.mrb[33].mxu0  ;;  %v8068_v1 = vpop.f32.mrb[32].mxu1 }
 0x11d   :  { %9947 = vst [vmem:[#allocation39_spill] sm:$0xff] %v8066_v11  ;;  %9948 = vst [vmem:[#allocation40_spill] sm:$0xff] %v8068_v1  ;;  %v8070_v19 = vpop.f32.mrb[34].mxu0  ;;  %v8072_v8 = vpop.f32.mrb[33].mxu1 }
 0x11e   :  { %9949 = vst [vmem:[#allocation41_spill] sm:$0xff] %v8070_v19  ;;  %9950 = vst [vmem:[#allocation42_spill] sm:$0xff] %v8072_v8  ;;  %v8074_v16 = vpop.f32.mrb[35].mxu0  ;;  %v8076_v58 = vpop.f32.mrb[34].mxu1 }
 0x11f   :  { %9951 = vst [vmem:[#allocation43_spill] sm:$0xff] %v8074_v16  ;;  %9952 = vst [vmem:[#allocation44_spill] sm:$0xff] %v8076_v58  ;;  %v8078_v27 = vpop.f32.mrb[35].mxu1 }
 0x120   :  { %9953 = vst [vmem:[#allocation45_spill] sm:$0xff] %v8078_v27 }
 0x123   :  { %v8080_v54 = vpop.f32.mrb[36].mxu0 }
 0x124   :  { %9954 = vst [vmem:[#allocation46_spill] sm:$0xff] %v8080_v54  ;;  %v8082_v24 = vpop.f32.mrb[37].mxu0  ;;  %v8084_v56 = vpop.f32.mrb[36].mxu1 }
 0x125   :  { %9955 = vst [vmem:[#allocation47_spill] sm:$0xff] %v8082_v24  ;;  %9956 = vst [vmem:[#allocation48_spill] sm:$0xff] %v8084_v56  ;;  %v8086_v32 = vpop.f32.mrb[38].mxu0  ;;  %v8088_v11 = vpop.f32.mrb[37].mxu1 }
 0x126   :  { %9957 = vst [vmem:[#allocation49_spill] sm:$0xff] %v8086_v32  ;;  %9958 = vst [vmem:[#allocation50_spill] sm:$0xff] %v8088_v11  ;;  %v8090_v1 = vpop.f32.mrb[39].mxu0  ;;  %v8092_v19 = vpop.f32.mrb[38].mxu1 }
 0x127   :  { %9959 = vst [vmem:[#allocation51_spill] sm:$0xff] %v8090_v1  ;;  %9960 = vst [vmem:[#allocation52_spill] sm:$0xff] %v8092_v19  ;;  %v8094_v8 = vpop.f32.mrb[39].mxu1 }
 0x128   :  { %9961 = vst [vmem:[#allocation53_spill] sm:$0xff] %v8094_v8 }
 0x12b   :  { %v8096_v16 = vpop.f32.mrb[40].mxu0 }
 0x12c   :  { %9962 = vst [vmem:[#allocation54_spill] sm:$0xff] %v8096_v16  ;;  %v8098_v58 = vpop.f32.mrb[41].mxu0  ;;  %v8100_v27 = vpop.f32.mrb[40].mxu1 }
 0x12d   :  { %9963 = vst [vmem:[#allocation55_spill] sm:$0xff] %v8098_v58  ;;  %9964 = vst [vmem:[#allocation56_spill] sm:$0xff] %v8100_v27  ;;  %v8102_v54 = vpop.f32.mrb[42].mxu0  ;;  %v8104_v24 = vpop.f32.mrb[41].mxu1 }
 0x12e   :  { %9965 = vst [vmem:[#allocation57_spill] sm:$0xff] %v8102_v54  ;;  %9966 = vst [vmem:[#allocation58_spill] sm:$0xff] %v8104_v24  ;;  %v8106_v56 = vpop.f32.mrb[43].mxu0  ;;  %v8108_v32 = vpop.f32.mrb[42].mxu1 }
 0x12f   :  { %9967 = vst [vmem:[#allocation59_spill] sm:$0xff] %v8106_v56  ;;  %9968 = vst [vmem:[#allocation60_spill] sm:$0xff] %v8108_v32  ;;  %v8110_v11 = vpop.f32.mrb[43].mxu1 }
 0x130   :  { %9969 = vst [vmem:[#allocation61_spill] sm:$0xff] %v8110_v11 }
 0x133   :  { %v8112_v1 = vpop.f32.mrb[44].mxu0 }
 0x134   :  { %9970 = vst [vmem:[#allocation62_spill] sm:$0xff] %v8112_v1  ;;  %v8114_v19 = vpop.f32.mrb[45].mxu0  ;;  %v8116_v8 = vpop.f32.mrb[44].mxu1 }
 0x135   :  { %9971 = vst [vmem:[#allocation63_spill] sm:$0xff] %v8114_v19  ;;  %9972 = vst [vmem:[#allocation64_spill] sm:$0xff] %v8116_v8  ;;  %v8118_v16 = vpop.f32.mrb[46].mxu0  ;;  %v8120_v58 = vpop.f32.mrb[45].mxu1 }
 0x136   :  { %9973 = vst [vmem:[#allocation65_spill] sm:$0xff] %v8118_v16  ;;  %9974 = vst [vmem:[#allocation66_spill] sm:$0xff] %v8120_v58  ;;  %v8122_v27 = vpop.f32.mrb[47].mxu0  ;;  %v8124_v54 = vpop.f32.mrb[46].mxu1 }
 0x137   :  { %9975 = vst [vmem:[#allocation67_spill] sm:$0xff] %v8122_v27  ;;  %9976 = vst [vmem:[#allocation68_spill] sm:$0xff] %v8124_v54  ;;  %v8126_v24 = vpop.f32.mrb[47].mxu1  ;;  %v8144_v27 = vpop.permute.xlu0 %71 }
 0x138   :  { %9977 = vst [vmem:[#allocation69_spill] sm:$0xff] %v8126_v24  ;;  %v8146_v54 = vpop.permute.xlu1 %91 }
 0x13b   :  { %v8128_v56 = vpop.f32.mrb[48].mxu0 }
 0x13c   :  { %9978 = vst [vmem:[#allocation70_spill] sm:$0xff] %v8128_v56  ;;  %v8130_v32 = vpop.f32.mrb[49].mxu0  ;;  %v8132_v11 = vpop.f32.mrb[48].mxu1 }
 0x13d   :  { %9979 = vst [vmem:[#allocation71_spill] sm:$0xff] %v8130_v32  ;;  %9980 = vst [vmem:[#allocation72_spill] sm:$0xff] %v8132_v11  ;;  %v8134_v1 = vpop.f32.mrb[50].mxu0  ;;  %v8136_v19 = vpop.f32.mrb[49].mxu1 }
 0x13e   :  { %9981 = vst [vmem:[#allocation73_spill] sm:$0xff] %v8134_v1  ;;  %9982 = vst [vmem:[#allocation74_spill] sm:$0xff] %v8136_v19  ;;  %v8138_v8 = vpop.f32.mrb[51].mxu0  ;;  %v8140_v16 = vpop.f32.mrb[50].mxu1 }
 0x13f   :  { %9983 = vst [vmem:[#allocation75_spill] sm:$0xff] %v8138_v8  ;;  %9984 = vst [vmem:[#allocation76_spill] sm:$0xff] %v8140_v16  ;;  %v8142_v58 = vpop.f32.mrb[51].mxu1  ;;  %v8166_v51 = vpop.permute.xlu1 %96 }
 0x140   :  { %9985 = vst [vmem:[#allocation77_spill] sm:$0xff] %v8142_v58  ;;  %v8164_v58 = vpop.permute.xlu0 %76 }
 0x141   :  { %v298_v22 = vadd.f32 %v7942_v7, %v8164_v58 }
 0x143   :  { %v8148_v24 = vpop.f32.mrb[52].mxu0  ;;  %v8186_v50 = vpop.permute.xlu1 %86 }
 0x144   :  { %9986 = vst [vmem:[#allocation78_spill] sm:$0xff] %v8148_v24  ;;  %v8150_v56 = vpop.f32.mrb[53].mxu0  ;;  %v8152_v32 = vpop.f32.mrb[52].mxu1 }
 0x145   :  { %9987 = vst [vmem:[#allocation79_spill] sm:$0xff] %v8150_v56  ;;  %9988 = vst [vmem:[#allocation80_spill] sm:$0xff] %v8152_v32  ;;  %v8154_v11 = vpop.f32.mrb[54].mxu0  ;;  %v8156_v1 = vpop.f32.mrb[53].mxu1 }
 0x146   :  { %9989 = vst [vmem:[#allocation81_spill] sm:$0xff] %v8154_v11  ;;  %9990 = vst [vmem:[#allocation82_spill] sm:$0xff] %v8156_v1  ;;  %v8158_v19 = vpop.f32.mrb[55].mxu0  ;;  %v8160_v8 = vpop.f32.mrb[54].mxu1 }
 0x147   :  { %9991 = vst [vmem:[#allocation83_spill] sm:$0xff] %v8158_v19  ;;  %9992 = vst [vmem:[#allocation84_spill] sm:$0xff] %v8160_v8  ;;  %v8162_v16 = vpop.f32.mrb[55].mxu1  ;;  %v8206_v46 = vpop.permute.xlu1 %106 }
 0x148   :  { %9993 = vst [vmem:[#allocation85_spill] sm:$0xff] %v8162_v16  ;;  %v8184_v16 = vpop.permute.xlu0 %81 }
 0x14b   :  { %v8168_v42 = vpop.f32.mrb[56].mxu0  ;;  %v8216_v26 = vpop.permute.xlu1 %116 }
 0x14c   :  { %9994 = vst [vmem:[#allocation86_spill] sm:$0xff] %v8168_v42  ;;  %v8170_v24 = vpop.f32.mrb[57].mxu0  ;;  %v8172_v56 = vpop.f32.mrb[56].mxu1 }
 0x14d   :  { %9995 = vst [vmem:[#allocation87_spill] sm:$0xff] %v8170_v24  ;;  %9996 = vst [vmem:[#allocation88_spill] sm:$0xff] %v8172_v56  ;;  %v8174_v32 = vpop.f32.mrb[58].mxu0  ;;  %v8176_v11 = vpop.f32.mrb[57].mxu1 }
 0x14e   :  { %9997 = vst [vmem:[#allocation89_spill] sm:$0xff] %v8174_v32  ;;  %9998 = vst [vmem:[#allocation90_spill] sm:$0xff] %v8176_v11  ;;  %v8178_v1 = vpop.f32.mrb[59].mxu0  ;;  %v8180_v19 = vpop.f32.mrb[58].mxu1 }
 0x14f   :  { %9999 = vst [vmem:[#allocation91_spill] sm:$0xff] %v8178_v1  ;;  %10000 = vst [vmem:[#allocation92_spill] sm:$0xff] %v8180_v19  ;;  %v8182_v8 = vpop.f32.mrb[59].mxu1  ;;  %v8202_v19 = vpop.permute.xlu0 %101 }
 0x150   :  { %10001 = vst [vmem:[#allocation93_spill] sm:$0xff] %v8182_v8 }
 0x153   :  { %v8188_v38 = vpop.f32.mrb[60].mxu0 }
 0x154   :  { %10002 = vst [vmem:[#allocation94_spill] sm:$0xff] %v8188_v38  ;;  %v8190_v42 = vpop.f32.mrb[61].mxu0  ;;  %v8192_v24 = vpop.f32.mrb[60].mxu1  ;;  %v304_v38 = vadd.f32 %v7952_v12, %v8184_v16 }
 0x155   :  { %10003 = vst [vmem:[#allocation95_spill] sm:$0xff] %v8190_v42  ;;  %10004 = vst [vmem:[#allocation96_spill] sm:$0xff] %v8192_v24  ;;  %v8194_v56 = vpop.f32.mrb[62].mxu0  ;;  %v8196_v32 = vpop.f32.mrb[61].mxu1 }
 0x156   :  { %10005 = vst [vmem:[#allocation97_spill] sm:$0xff] %v8194_v56  ;;  %10006 = vst [vmem:[#allocation98_spill] sm:$0xff] %v8196_v32  ;;  %v8198_v11 = vpop.f32.mrb[63].mxu0  ;;  %v8200_v1 = vpop.f32.mrb[62].mxu1  ;;  %v294_v56 = vadd.f32 %v7936_v4, %v8144_v27  ;;  %v308_v32 = vadd.f32 %v7958_v15, %v8186_v50 }
 0x157   :  { %10007 = vst [vmem:[#allocation99_spill] sm:$0xff] %v8198_v11  ;;  %10008 = vst [vmem:[#allocation100_spill] sm:$0xff] %v8200_v1  ;;  %v8204_v8 = vpop.f32.mrb[63].mxu1  ;;  %v8210_v42 = vpop.permute.xlu0 %111 }
 0x158   :  { %10009 = vst [vmem:[#allocation101_spill] sm:$0xff] %v8204_v8 }
 0x15b   :  { %v6144_v24 = vpop.f32.mrb[64].mxu0  ;;  %v8220_v4 = vpop.permute.xlu0 %131 }
 0x15c   :  { %v1035_v11 = vadd.f32 %v6144_v24, %v304_v38  ;;  %v970_v1 = vpop.f32.mrb[65].mxu0  ;;  %10010 = vst [vmem:[#allocation102_spill] sm:$0xff] %v8220_v4  ;;  %v324_v24 = vadd.f32 %v7984_v28, %v8202_v19  ;;  %v8226_v38 = vpop.permute.xlu1 %136 }
 0x15d   :  { %v1033_v34 = vadd.f32 %v970_v1, %v294_v56  ;;  %v6145_v8 = vpop.f32.mrb[66].mxu0  ;;  %v314_v1 = vadd.f32 %v7968_v20, %v8146_v54  ;;  %10011 = vst [vmem:[#allocation103_spill] sm:$0xff] %v8226_v38 }
 0x15e   :  { %v5619_v30 = vmul.f32 -1.442695, %v1035_v11  ;;  %v1036_v12 = vadd.f32 %v6145_v8, %v308_v32  ;;  %v973_v10 = vpop.f32.mrb[67].mxu0  ;;  %v328_v8 = vadd.f32 %v7990_v31, %v8206_v46 }
 0x15f   :  { %v5617_v18 = vmul.f32 -1.442695, %v1033_v34  ;;  %v1034_v6 = vadd.f32 %v973_v10, %v298_v22  ;;  %v8232_v32 = vpop.permute.xlu0 %121 }
 0x160   :  { %6510 = vpow2.f32 %v5619_v30  ;;  %v5620_v14 = vmul.f32 -1.442695, %v1036_v12  ;;  %v8234_v12 = vpop.permute.xlu1 %126 }
 0x161   :  { %6512 = vpow2.f32 %v5617_v18  ;;  %v5618_v15 = vmul.f32 -1.442695, %v1034_v6  ;;  %v318_v18 = vadd.f32 %v7974_v23, %v8166_v51 }
 0x162   :  { %6514 = vpow2.f32 %v5620_v14 }
 0x163   :  { %6516 = vpow2.f32 %v5618_v15  ;;  %v6148_v7 = vpop.f32.mrb[68].mxu0 }
 0x164   :  { %v1039_v10 = vadd.f32 %v6148_v7, %v324_v24  ;;  %v986_v11 = vpop.f32.mrb[69].mxu0  ;;  %v344_v24 = vadd.f32 %v8016_v44, %v8232_v32 }
 0x165   :  { %v1037_v6 = vadd.f32 %v986_v11, %v314_v1  ;;  %v6149_v22 = vpop.f32.mrb[70].mxu0  ;;  %v334_v1 = vadd.f32 %v8000_v36, %v8210_v42  ;;  %v348_v11 = vadd.f32 %v8022_v47, %v8234_v12 }
 0x166   :  { %v5623_v30 = vmul.f32 -1.442695, %v1039_v10  ;;  %v1040_v28 = vadd.f32 %v6149_v22, %v328_v8  ;;  %v989_v14 = vpop.f32.mrb[71].mxu0 }
 0x167   :  { %v5621_v20 = vmul.f32 -1.442695, %v1037_v6  ;;  %v1038_v34 = vadd.f32 %v989_v14, %v318_v18 }
 0x168   :  { %6518 = vpow2.f32 %v5623_v30  ;;  %v5624_v56 = vmul.f32 -1.442695, %v1040_v28  ;;  %v338_v28 = vadd.f32 %v8006_v39, %v8216_v26 }
 0x169   :  { %6520 = vpow2.f32 %v5621_v20  ;;  %v5622_v31 = vmul.f32 -1.442695, %v1038_v34 }
 0x16a   :  { %v6511_v15 = vpop.eup %6510  ;;  %6522 = vpow2.f32 %v5624_v56 }
 0x16b   :  { %v6513_v23 = vpop.eup %6512  ;;  %v1087_v7 = vadd.f32 1.0, %v6511_v15  ;;  %6524 = vpow2.f32 %v5622_v31  ;;  %v6152_v8 = vpop.f32.mrb[72].mxu0 }
 0x16c   :  { %v6515_v10 = vpop.eup %6514  ;;  %v1085_v18 = vadd.f32 1.0, %v6513_v23  ;;  %v1043_v6 = vadd.f32 %v6152_v8, %v344_v24  ;;  %v1002_v22 = vpop.f32.mrb[73].mxu0 }
 0x16d   :  { %v6517_v30 = vpop.eup %6516  ;;  %6526 = vrcp.f32 %v1087_v7  ;;  %v1088_v44 = vadd.f32 1.0, %v6515_v10  ;;  %v1041_v14 = vadd.f32 %v1002_v22, %v334_v1  ;;  %v6153_v20 = vpop.f32.mrb[74].mxu0 }
 0x16e   :  { %6528 = vrcp.f32 %v1085_v18  ;;  %v1086_v36 = vadd.f32 1.0, %v6517_v30  ;;  %v5627_v34 = vmul.f32 -1.442695, %v1043_v6  ;;  %v1044_v56 = vadd.f32 %v6153_v20, %v348_v11  ;;  %v1005_v31 = vpop.f32.mrb[75].mxu0  ;;  %v8244_v15 = vpop.permute.xlu0 %141 }
 0x16f   :  { %6530 = vrcp.f32 %v1088_v44  ;;  %v5625_v47 = vmul.f32 -1.442695, %v1041_v14  ;;  %v1042_v23 = vadd.f32 %v1005_v31, %v338_v28  ;;  %v8246_v8 = vpop.permute.xlu1 %146  ;;  %v364_v1 = vadd.f32 %v8048_v43, %v8244_v15 }
 0x170   :  { %6532 = vrcp.f32 %v1086_v36  ;;  %v5628_v24 = vmul.f32 -1.442695, %v1044_v56  ;;  %10012 = vst [vmem:[#allocation104_spill] sm:$0xff] %v8246_v8  ;;  %v354_v11 = vadd.f32 %v8032_v52, %v8220_v4  ;;  %v368_v30 = vadd.f32 %v8054_v48, %v8246_v8 }
 0x171   :  { %6534 = vpow2.f32 %v5627_v34  ;;  %v5626_v39 = vmul.f32 -1.442695, %v1042_v23  ;;  %v358_v43 = vadd.f32 %v8038_v55, %v8226_v38 }
 0x172   :  { %v6519_v7 = vpop.eup %6518  ;;  %6536 = vpow2.f32 %v5625_v47 }
 0x173   :  { %v6521_v10 = vpop.eup %6520  ;;  %v1091_v18 = vadd.f32 1.0, %v6519_v7  ;;  %6538 = vpow2.f32 %v5628_v24  ;;  %v6156_v6 = vpop.f32.mrb[76].mxu0 }
 0x174   :  { %v6523_v22 = vpop.eup %6522  ;;  %v1089_v28 = vadd.f32 1.0, %v6521_v10  ;;  %6540 = vpow2.f32 %v5626_v39  ;;  %v1047_v44 = vadd.f32 %v6156_v6, %v364_v1  ;;  %v1018_v14 = vpop.f32.mrb[77].mxu0 }
 0x175   :  { %v6525_v20 = vpop.eup %6524  ;;  %6542 = vrcp.f32 %v1091_v18  ;;  %v1092_v36 = vadd.f32 1.0, %v6523_v22  ;;  %v1045_v34 = vadd.f32 %v1018_v14, %v354_v11  ;;  %v6157_v56 = vpop.f32.mrb[78].mxu0 }
 0x176   :  { %6544 = vrcp.f32 %v1089_v28  ;;  %v1090_v52 = vadd.f32 1.0, %v6525_v20  ;;  %v1048_v31 = vadd.f32 %v6157_v56, %v368_v30  ;;  %v1021_v47 = vpop.f32.mrb[79].mxu0 }
 0x177   :  { %v6527_v23 = vpop.eup %6526  ;;  %6546 = vrcp.f32 %v1092_v36  ;;  %v1046_v24 = vadd.f32 %v1021_v47, %v358_v43 }
 0x178   :  { %v6529_v48 = vpop.eup %6528  ;;  %6548 = vrcp.f32 %v1090_v52 }
 0x179   :  { %v6531_v39 = vpop.eup %6530  ;;  %6550 = vtanh.f32 %v1047_v44 }
 0x17a   :  { %v6533_v7 = vpop.eup %6532  ;;  %6552 = vtanh.f32 %v1045_v34 }
 0x17b   :  { %v6535_v1 = vpop.eup %6534  ;;  %6554 = vtanh.f32 %v1048_v31 }
 0x17c   :  { %v6537_v55 = vpop.eup %6536  ;;  %6556 = vtanh.f32 %v1046_v24  ;;  %v1095_v22 = vadd.f32 1.0, %v6535_v1 }
 0x17d   :  { %v6539_v10 = vpop.eup %6538  ;;  %v1093_v28 = vadd.f32 1.0, %v6537_v55 }
 0x17e   :  { %v6541_v11 = vpop.eup %6540  ;;  %v1096_v43 = vadd.f32 1.0, %v6539_v10  ;;  %6558 = vrcp.f32 %v1095_v22 }
 0x17f   :  { %v6543_v18 = vpop.eup %6542  ;;  %v1094_v52 = vadd.f32 1.0, %v6541_v11  ;;  %6560 = vrcp.f32 %v1093_v28 }
 0x180   :  { %v6545_v6 = vpop.eup %6544  ;;  %v1127_v20 = vmul.f32 0.0, %v6543_v18  ;;  %6562 = vrcp.f32 %v1096_v43 }
 0x181   :  { %v6547_v30 = vpop.eup %6546  ;;  %v1125_v56 = vmul.f32 0.0, %v6545_v6  ;;  %6564 = vrcp.f32 %v1094_v52 }
 0x182   :  { %v6549_v14 = vpop.eup %6548  ;;  %v1128_v47 = vmul.f32 0.0, %v6547_v30 }
 0x183   :  { %v6551_v36 = vpop.eup %6550  ;;  %v1126_v57 = vmul.f32 0.0, %v6549_v14 }
 0x184   :  { %v6553_v44 = vpop.eup %6552  ;;  %v1131_v34 = vmul.f32 %v6551_v36, %v6527_v23 }
 0x185   :  { %v6555_v31 = vpop.eup %6554  ;;  %v1129_v24 = vmul.f32 %v6553_v44, %v6529_v48  ;;  %v296_v44 = vadd.f32 %v7938_v5, %v8144_v27  ;;  %v326_v5 = vadd.f32 %v7986_v29, %v8202_v19 }
 0x186   :  { %v6557_v38 = vpop.eup %6556  ;;  %v8256_v35 = vadd.f32 %v1131_v34, %v1127_v20  ;;  %v1132_v1 = vmul.f32 %v6555_v31, %v6531_v39 }
 0x187   :  { %v8258_v55 = vadd.f32 %v1129_v24, %v1125_v56  ;;  %v1130_v10 = vmul.f32 %v6557_v38, %v6533_v7  ;;  %v306_v56 = vadd.f32 %v7954_v13, %v8184_v16 }
 0x188   :  { %6566 = vtanh.f32 %v8256_v35  ;;  %v8261_v11 = vadd.f32 %v1132_v1, %v1128_v47  ;;  %v6559_v48 = vpop.eup %6558  ;;  %v310_v47 = vadd.f32 %v7962_v17, %v8186_v50  ;;  %v316_v17 = vadd.f32 %v7970_v21, %v8146_v54 }
 0x189   :  { %6568 = vtanh.f32 %v8258_v55  ;;  %v8264_v23 = vadd.f32 %v1130_v10, %v1126_v57  ;;  %v6561_v18 = vpop.eup %6560  ;;  %v300_v10 = vadd.f32 %v7946_v9, %v8164_v58  ;;  %v330_v9 = vadd.f32 %v7994_v33, %v8206_v46 }
 0x18a   :  { %6570 = vtanh.f32 %v8261_v11  ;;  %v6563_v6 = vpop.eup %6562  ;;  %v346_v33 = vadd.f32 %v8018_v45, %v8232_v32 }
 0x18b   :  { %6572 = vtanh.f32 %v8264_v23  ;;  %v6565_v39 = vpop.eup %6564 }
 0x192   :  { %v6567_v22 = vpop.eup %6566 }
 0x193   :  { %v6569_v30 = vpop.eup %6568  ;;  %v1143_v7 = vmul.f32 %v6567_v22, %v6559_v48 }
 0x194   :  { %v6571_v28 = vpop.eup %6570  ;;  %v1141_v20 = vmul.f32 %v6569_v30, %v6561_v18 }
 0x195   :  { %v6573_v38 = vpop.eup %6572  ;;  %v1144_v14 = vmul.f32 %v6571_v28, %v6563_v6 }
 0x196   :  { %v1142_v43 = vmul.f32 %v6573_v38, %v6565_v39 }
 0x197   :  { %v8268_v36 = vpack.c.bf16 %v1144_v14, %v1143_v7  ;;  %v320_v14 = vadd.f32 %v7978_v25, %v8166_v51  ;;  %v336_v25 = vadd.f32 %v8002_v37, %v8210_v42 }
 0x198   :  { %v8270_v57 = vpack.c.bf16 %v1142_v43, %v1141_v20 }
 0x19a   :  { %6158 = vmatprep.subr.bf16.mxu1 %v8270_v57 }
 0x19b   :  { %6159 = vmatpush3.bf16.msra.mxu1 %v8270_v57 }
 0x19c   :  { %6160 = vmatprep.subr.bf16.mxu1 %v8268_v36 }
 0x19f   :  { %6161 = vmatpush3.bf16.msra.mxu1 %v8268_v36 }
 0x1a2   :  { %6163 = vmatmul.mubr.msk.bf16.vlgmr.msra.gmra.mrb[64].mxu1 %vm911_vm2, %v7888_v60 }
 0x1a3   :  { %6166 = vmatprep.mubr.msk.bf16.mxu1 %vm911_vm2, %v7893_v61 }
 0x1aa   :  { %6167 = vmatmul.mubr.msk.bf16.gmra.mrb[68].mxu1 %vm911_vm2, %v7902_v62 }
 0x1ab   :  { %6170 = vmatprep.mubr.msk.bf16.mxu1 %vm911_vm2, %v7907_v63 }
 0x1b2   :  { %6171 = vmatmul.mubr.msk.bf16.gmra.mrb[72].mxu1 %vm911_vm2, %v7916_v0 }
 0x1b3   :  { %6174 = vmatprep.mubr.msk.bf16.mxu1 %vm911_vm2, %v7921_v2 }
 0x1ba   :  { %6175 = vmatmul.mubr.msk.bf16.gmra.mrb[76].mxu1 %vm911_vm2, %v7930_v3 }
 0x1bb   :  { %6202 = vmatprep.mubr.msk.bf16.mxu1 %vm911_vm2, %v7877_v59 }
 0x275   :  { %v6164_v52 = vpop.f32.mrb[64].mxu1 }
 0x276   :  { %v1267_v34 = vadd.f32 %v6164_v52, %v306_v56  ;;  %v1202_v31 = vpop.f32.mrb[65].mxu1 }
 0x277   :  { %v1265_v24 = vadd.f32 %v1202_v31, %v296_v44  ;;  %v6165_v1 = vpop.f32.mrb[66].mxu1 }
 0x278   :  { %v5639_v48 = vmul.f32 -1.442695, %v1267_v34  ;;  %v1268_v18 = vadd.f32 %v6165_v1, %v310_v47  ;;  %v1205_v6 = vpop.f32.mrb[67].mxu1 }
 0x279   :  { %v5637_v39 = vmul.f32 -1.442695, %v1265_v24  ;;  %v1266_v22 = vadd.f32 %v1205_v6, %v300_v10 }
 0x27a   :  { %6574 = vpow2.f32 %v5639_v48  ;;  %v5640_v13 = vmul.f32 -1.442695, %v1268_v18  ;;  %v350_v18 = vadd.f32 %v8026_v49, %v8234_v12 }
 0x27b   :  { %6576 = vpow2.f32 %v5637_v39  ;;  %v5638_v30 = vmul.f32 -1.442695, %v1266_v22 }
 0x27c   :  { %6578 = vpow2.f32 %v5640_v13 }
 0x27d   :  { %6580 = vpow2.f32 %v5638_v30  ;;  %v6168_v28 = vpop.f32.mrb[68].mxu1  ;;  %v340_v30 = vadd.f32 %v8010_v41, %v8216_v26  ;;  %v366_v41 = vadd.f32 %v8050_v40, %v8244_v15 }
 0x27e   :  { %v1271_v38 = vadd.f32 %v6168_v28, %v326_v5  ;;  %v1218_v7 = vpop.f32.mrb[69].mxu1 }
 0x27f   :  { %v1269_v20 = vadd.f32 %v1218_v7, %v316_v17  ;;  %v6169_v43 = vpop.f32.mrb[70].mxu1 }
 0x280   :  { %v5643_v56 = vmul.f32 -1.442695, %v1271_v38  ;;  %v1272_v52 = vadd.f32 %v6169_v43, %v330_v9  ;;  %v1221_v44 = vpop.f32.mrb[71].mxu1 }
 0x281   :  { %v5641_v29 = vmul.f32 -1.442695, %v1269_v20  ;;  %v1270_v47 = vadd.f32 %v1221_v44, %v320_v14 }
 0x282   :  { %6582 = vpow2.f32 %v5643_v56  ;;  %v5644_v34 = vmul.f32 -1.442695, %v1272_v52  ;;  %v356_v52 = vadd.f32 %v8034_v53, %v8220_v4 }
 0x283   :  { %6584 = vpow2.f32 %v5641_v29  ;;  %v5642_v21 = vmul.f32 -1.442695, %v1270_v47 }
 0x284   :  { %v6575_v31 = vpop.eup %6574  ;;  %6586 = vpow2.f32 %v5644_v34  ;;  %v10013_v34 = vld [vmem:[#allocation35_spill] sm:$0xff] }
 0x285   :  { %v6577_v24 = vpop.eup %6576  ;;  %v1319_v1 = vadd.f32 1.0, %v6575_v31  ;;  %6588 = vpow2.f32 %v5642_v21  ;;  %v6172_v10 = vpop.f32.mrb[72].mxu1  ;;  %v370_v21 = vadd.f32 %v10013_v34, %v8246_v8 }
 0x286   :  { %v6579_v48 = vpop.eup %6578  ;;  %v1317_v6 = vadd.f32 1.0, %v6577_v24  ;;  %v1275_v39 = vadd.f32 %v6172_v10, %v346_v33  ;;  %v1234_v22 = vpop.f32.mrb[73].mxu1  ;;  %v10015_v10 = vld [vmem:[#allocation30_spill] sm:$0xff] }
 0x287   :  { %v6581_v13 = vpop.eup %6580  ;;  %6590 = vrcp.f32 %v1319_v1  ;;  %v1320_v45 = vadd.f32 1.0, %v6579_v48  ;;  %v1273_v5 = vadd.f32 %v1234_v22, %v336_v25  ;;  %v6173_v17 = vpop.f32.mrb[74].mxu1  ;;  %v10014_v1 = vld [vmem:[#allocation103_spill] sm:$0xff] }
 0x288   :  { %6592 = vrcp.f32 %v1317_v6  ;;  %v1318_v37 = vadd.f32 1.0, %v6581_v13  ;;  %v5647_v28 = vmul.f32 -1.442695, %v1275_v39  ;;  %v1276_v9 = vadd.f32 %v6173_v17, %v350_v18  ;;  %v1237_v38 = vpop.f32.mrb[75].mxu1 }
 0x289   :  { %6594 = vrcp.f32 %v1320_v45  ;;  %v5645_v7 = vmul.f32 -1.442695, %v1273_v5  ;;  %v1274_v14 = vadd.f32 %v1237_v38, %v340_v30  ;;  %v360_v40 = vadd.f32 %v10015_v10, %v10014_v1 }
 0x28a   :  { %6596 = vrcp.f32 %v1318_v37  ;;  %v5648_v49 = vmul.f32 -1.442695, %v1276_v9 }
 0x28b   :  { %6598 = vpow2.f32 %v5647_v28  ;;  %v5646_v20 = vmul.f32 -1.442695, %v1274_v14 }
 0x28c   :  { %v6583_v43 = vpop.eup %6582  ;;  %6600 = vpow2.f32 %v5645_v7 }
 0x28d   :  { %v6585_v56 = vpop.eup %6584  ;;  %v1323_v44 = vadd.f32 1.0, %v6583_v43  ;;  %6602 = vpow2.f32 %v5648_v49  ;;  %v6176_v29 = vpop.f32.mrb[76].mxu1 }
 0x28e   :  { %v6587_v47 = vpop.eup %6586  ;;  %v1321_v31 = vadd.f32 1.0, %v6585_v56  ;;  %6604 = vpow2.f32 %v5646_v20  ;;  %v1279_v33 = vadd.f32 %v6176_v29, %v366_v41  ;;  %v1250_v24 = vpop.f32.mrb[77].mxu1 }
 0x28f   :  { %v6589_v25 = vpop.eup %6588  ;;  %6606 = vrcp.f32 %v1323_v44  ;;  %v1324_v48 = vadd.f32 1.0, %v6587_v47  ;;  %v1277_v18 = vadd.f32 %v1250_v24, %v356_v52  ;;  %v6177_v6 = vpop.f32.mrb[78].mxu1 }
 0x290   :  { %6608 = vrcp.f32 %v1321_v31  ;;  %v1322_v53 = vadd.f32 1.0, %v6589_v25  ;;  %v1280_v39 = vadd.f32 %v6177_v6, %v370_v21  ;;  %v1253_v22 = vpop.f32.mrb[79].mxu1 }
 0x291   :  { %v6591_v13 = vpop.eup %6590  ;;  %6610 = vrcp.f32 %v1324_v48  ;;  %v1278_v30 = vadd.f32 %v1253_v22, %v360_v40 }
 0x292   :  { %v6593_v45 = vpop.eup %6592  ;;  %6612 = vrcp.f32 %v1322_v53 }
 0x293   :  { %v6595_v5 = vpop.eup %6594  ;;  %6614 = vtanh.f32 %v1279_v33 }
 0x294   :  { %v6597_v17 = vpop.eup %6596  ;;  %6616 = vtanh.f32 %v1277_v18 }
 0x295   :  { %v6599_v37 = vpop.eup %6598  ;;  %6618 = vtanh.f32 %v1280_v39 }
 0x296   :  { %v6601_v28 = vpop.eup %6600  ;;  %6620 = vtanh.f32 %v1278_v30  ;;  %v1327_v49 = vadd.f32 1.0, %v6599_v37 }
 0x297   :  { %v6603_v9 = vpop.eup %6602  ;;  %v1325_v43 = vadd.f32 1.0, %v6601_v28 }
 0x298   :  { %v6605_v38 = vpop.eup %6604  ;;  %v1328_v52 = vadd.f32 1.0, %v6603_v9  ;;  %6622 = vrcp.f32 %v1327_v49 }
 0x299   :  { %v6607_v7 = vpop.eup %6606  ;;  %v1326_v47 = vadd.f32 1.0, %v6605_v38  ;;  %6624 = vrcp.f32 %v1325_v43 }
 0x29a   :  { %v6609_v14 = vpop.eup %6608  ;;  %v1359_v56 = vmul.f32 %v6607_v7, %v8256_v35  ;;  %6626 = vrcp.f32 %v1328_v52 }
 0x29b   :  { %v6611_v20 = vpop.eup %6610  ;;  %v1357_v29 = vmul.f32 %v6609_v14, %v8258_v55  ;;  %6628 = vrcp.f32 %v1326_v47 }
 0x29c   :  { %v6613_v41 = vpop.eup %6612  ;;  %v1360_v21 = vmul.f32 %v6611_v20, %v8261_v11 }
 0x29d   :  { %v6615_v44 = vpop.eup %6614  ;;  %v1358_v24 = vmul.f32 %v6613_v41, %v8264_v23 }
 0x29e   :  { %v6617_v34 = vpop.eup %6616  ;;  %v1363_v31 = vmul.f32 %v6615_v44, %v6591_v13 }
 0x29f   :  { %v6619_v33 = vpop.eup %6618  ;;  %v1361_v25 = vmul.f32 %v6617_v34, %v6593_v45 }
 0x2a0   :  { %v6621_v10 = vpop.eup %6620  ;;  %v8328_v40 = vadd.f32 %v1363_v31, %v1359_v56  ;;  %v1364_v35 = vmul.f32 %v6619_v33, %v6595_v5  ;;  %v10021_v33 = vld [vmem:[#allocation12_spill] sm:$0xff] }
 0x2a1   :  { %v8330_v48 = vadd.f32 %v1361_v25, %v1357_v29  ;;  %v1362_v55 = vmul.f32 %v6621_v10, %v6597_v17  ;;  %v10022_v10 = vld [vmem:[#allocation18_spill] sm:$0xff] }
 0x2a2   :  { %6630 = vtanh.f32 %v8328_v40  ;;  %v8333_v18 = vadd.f32 %v1364_v35, %v1360_v21  ;;  %v6623_v23 = vpop.eup %6622  ;;  %v10020_v21 = vld [vmem:[#allocation16_spill] sm:$0xff]  ;;  %v441_v35 = vadd.f32 %v10022_v10, %v8206_v46 }
 0x2a3   :  { %6632 = vtanh.f32 %v8330_v48  ;;  %v8336_v11 = vadd.f32 %v1362_v55, %v1358_v24  ;;  %v6625_v6 = vpop.eup %6624  ;;  %v437_v31 = vadd.f32 %v10020_v21, %v8202_v19  ;;  %v427_v24 = vadd.f32 %v10021_v33, %v8146_v54 }
 0x2a4   :  { %6634 = vtanh.f32 %v8333_v18  ;;  %v6627_v53 = vpop.eup %6626 }
 0x2a5   :  { %6636 = vtanh.f32 %v8336_v11  ;;  %v6629_v39 = vpop.eup %6628 }
 0x2ac   :  { %v6631_v22 = vpop.eup %6630 }
 0x2ad   :  { %v6633_v13 = vpop.eup %6632  ;;  %v1375_v5 = vmul.f32 %v6631_v22, %v6623_v23 }
 0x2ae   :  { %v6635_v30 = vpop.eup %6634  ;;  %v1373_v37 = vmul.f32 %v6633_v13, %v6625_v6  ;;  %v10023_v6 = vld [vmem:[#allocation14_spill] sm:$0xff] }
 0x2af   :  { %v6637_v45 = vpop.eup %6636  ;;  %v1376_v17 = vmul.f32 %v6635_v30, %v6627_v53  ;;  %v431_v53 = vadd.f32 %v10023_v6, %v8166_v51  ;;  %v10028_v6 = vld [vmem:[#allocation33_spill] sm:$0xff] }
 0x2b0   :  { %v1374_v28 = vmul.f32 %v6637_v45, %v6629_v39 }
 0x2b1   :  { %v8340_v9 = vpack.c.bf16 %v1376_v17, %v1375_v5 }
 0x2b2   :  { %v8342_v38 = vpack.c.bf16 %v1374_v28, %v1373_v37 }
 0x2b4   :  { %6178 = vmatprep.subr.bf16.mxu0 %v8342_v38 }
 0x2b5   :  { %6179 = vmatpush3.bf16.msra.mxu0 %v8342_v38 }
 0x2b6   :  { %6180 = vmatprep.subr.bf16.mxu0 %v8340_v9 }
 0x2b9   :  { %6181 = vmatpush3.bf16.msra.mxu0 %v8340_v9 }
 0x2bc   :  { %6183 = vmatmul.mubr.msk.bf16.vlgmr.msra.gmra.mrb[80].mxu0 %vm911_vm2, %v7888_v60  ;;  %v10016_v60 = vld [vmem:[#allocation8_spill] sm:$0xff] }
 0x2bd   :  { %6186 = vmatprep.mubr.msk.bf16.mxu0 %vm911_vm2, %v7893_v61  ;;  %v417_v61 = vadd.f32 %v10016_v60, %v8184_v16 }
 0x2c4   :  { %6187 = vmatmul.mubr.msk.bf16.gmra.mrb[84].mxu0 %vm911_vm2, %v7902_v62  ;;  %v10017_v62 = vld [vmem:[#allocation4_spill] sm:$0xff] }
 0x2c5   :  { %6190 = vmatprep.mubr.msk.bf16.mxu0 %vm911_vm2, %v7907_v63  ;;  %v407_v7 = vadd.f32 %v10017_v62, %v8144_v27  ;;  %v10018_v63 = vld [vmem:[#allocation10_spill] sm:$0xff] }
 0x2c6   :  { %v421_v49 = vadd.f32 %v10018_v63, %v8186_v50 }
 0x2cc   :  { %6191 = vmatmul.mubr.msk.bf16.gmra.mrb[88].mxu0 %vm911_vm2, %v7916_v0 }
 0x2cd   :  { %6194 = vmatprep.mubr.msk.bf16.mxu0 %vm911_vm2, %v7921_v2  ;;  %v10019_v2 = vld [vmem:[#allocation6_spill] sm:$0xff] }
 0x2ce   :  { %v411_v43 = vadd.f32 %v10019_v2, %v8164_v58  ;;  %v10026_v2 = vld [vmem:[#allocation26_spill] sm:$0xff] }
 0x2d4   :  { %6195 = vmatmul.mubr.msk.bf16.gmra.mrb[92].mxu0 %vm911_vm2, %v7930_v3 }
 0x2d5   :  { %6222 = vmatprep.mubr.msk.bf16.mxu0 %vm911_vm2, %v7877_v59 }
 0x38f   :  { %v6184_v14 = vpop.f32.mrb[80].mxu0 }
 0x390   :  { %v1500_v0 = vadd.f32 %v6184_v14, %v417_v61  ;;  %v1435_v20 = vpop.f32.mrb[81].mxu0  ;;  %v10024_v61 = vld [vmem:[#allocation24_spill] sm:$0xff] }
 0x391   :  { %v1498_v41 = vadd.f32 %v1435_v20, %v407_v7  ;;  %v6185_v3 = vpop.f32.mrb[82].mxu0  ;;  %v457_v62 = vadd.f32 %v10024_v61, %v8232_v32  ;;  %v10025_v14 = vld [vmem:[#allocation20_spill] sm:$0xff] }
 0x392   :  { %v5659_v56 = vmul.f32 -1.442695, %v1500_v0  ;;  %v1501_v52 = vadd.f32 %v6185_v3, %v421_v49  ;;  %v1438_v59 = vpop.f32.mrb[83].mxu0  ;;  %v447_v63 = vadd.f32 %v10025_v14, %v8210_v42 }
 0x393   :  { %v5657_v44 = vmul.f32 -1.442695, %v1498_v41  ;;  %v1499_v29 = vadd.f32 %v1438_v59, %v411_v43  ;;  %v461_v43 = vadd.f32 %v10026_v2, %v8234_v12  ;;  %v10027_v59 = vld [vmem:[#allocation22_spill] sm:$0xff] }
 0x394   :  { %6638 = vpow2.f32 %v5659_v56  ;;  %v5660_v47 = vmul.f32 -1.442695, %v1501_v52 }
 0x395   :  { %6640 = vpow2.f32 %v5657_v44  ;;  %v5658_v34 = vmul.f32 -1.442695, %v1499_v29  ;;  %v451_v44 = vadd.f32 %v10027_v59, %v8216_v26 }
 0x396   :  { %6642 = vpow2.f32 %v5660_v47 }
 0x397   :  { %6644 = vpow2.f32 %v5658_v34  ;;  %v6188_v25 = vpop.f32.mrb[84].mxu0 }
 0x398   :  { %v1504_v55 = vadd.f32 %v6188_v25, %v437_v31  ;;  %v1451_v23 = vpop.f32.mrb[85].mxu0 }
 0x399   :  { %v1502_v39 = vadd.f32 %v1451_v23, %v427_v24  ;;  %v6189_v22 = vpop.f32.mrb[86].mxu0 }
 0x39a   :  { %v5663_v13 = vmul.f32 -1.442695, %v1504_v55  ;;  %v1505_v30 = vadd.f32 %v6189_v22, %v441_v35  ;;  %v1454_v45 = vpop.f32.mrb[87].mxu0  ;;  %v10029_v22 = vld [vmem:[#allocation28_spill] sm:$0xff] }
 0x39b   :  { %v5661_v5 = vmul.f32 -1.442695, %v1502_v39  ;;  %v1503_v17 = vadd.f32 %v1454_v45, %v431_v53  ;;  %v477_v53 = vadd.f32 %v10028_v6, %v8244_v15 }
 0x39c   :  { %6646 = vpow2.f32 %v5663_v13  ;;  %v5664_v37 = vmul.f32 -1.442695, %v1505_v30  ;;  %v467_v13 = vadd.f32 %v10029_v22, %v8220_v4 }
 0x39d   :  { %6648 = vpow2.f32 %v5661_v5  ;;  %v5662_v28 = vmul.f32 -1.442695, %v1503_v17  ;;  %v10030_v17 = vld [vmem:[#allocation36_spill] sm:$0xff] }
 0x39e   :  { %v6639_v60 = vpop.eup %6638  ;;  %6650 = vpow2.f32 %v5664_v37  ;;  %v481_v37 = vadd.f32 %v10030_v17, %v8246_v8 }
 0x39f   :  { %v6641_v7 = vpop.eup %6640  ;;  %v1552_v49 = vadd.f32 1.0, %v6639_v60  ;;  %6652 = vpow2.f32 %v5662_v28  ;;  %v6192_v0 = vpop.f32.mrb[88].mxu0 }
 0x3a0   :  { %v6643_v20 = vpop.eup %6642  ;;  %v1550_v41 = vadd.f32 1.0, %v6641_v7  ;;  %v1508_v3 = vadd.f32 %v6192_v0, %v457_v62  ;;  %v1467_v56 = vpop.f32.mrb[89].mxu0  ;;  %v10031_v7 = vld [vmem:[#allocation31_spill] sm:$0xff] }
 0x3a1   :  { %v6645_v52 = vpop.eup %6644  ;;  %6654 = vrcp.f32 %v1552_v49  ;;  %v1553_v29 = vadd.f32 1.0, %v6643_v20  ;;  %v1506_v47 = vadd.f32 %v1467_v56, %v447_v63  ;;  %v6193_v34 = vpop.f32.mrb[90].mxu0  ;;  %v471_v14 = vadd.f32 %v10031_v7, %v10014_v1 }
 0x3a2   :  { %6656 = vrcp.f32 %v1550_v41  ;;  %v1551_v21 = vadd.f32 1.0, %v6645_v52  ;;  %v5667_v31 = vmul.f32 -1.442695, %v1508_v3  ;;  %v1509_v33 = vadd.f32 %v6193_v34, %v461_v43  ;;  %v1470_v24 = vpop.f32.mrb[91].mxu0 }
 0x3a3   :  { %6658 = vrcp.f32 %v1553_v29  ;;  %v5665_v25 = vmul.f32 -1.442695, %v1506_v47  ;;  %v1507_v10 = vadd.f32 %v1470_v24, %v451_v44 }
 0x3a4   :  { %6660 = vrcp.f32 %v1551_v21  ;;  %v5668_v35 = vmul.f32 -1.442695, %v1509_v33 }
 0x3a5   :  { %6662 = vpow2.f32 %v5667_v31  ;;  %v5666_v55 = vmul.f32 -1.442695, %v1507_v10 }
 0x3a6   :  { %v6647_v23 = vpop.eup %6646  ;;  %6664 = vpow2.f32 %v5665_v25 }
 0x3a7   :  { %v6649_v39 = vpop.eup %6648  ;;  %v1556_v30 = vadd.f32 1.0, %v6647_v23  ;;  %6666 = vpow2.f32 %v5668_v35  ;;  %v6196_v45 = vpop.f32.mrb[92].mxu0 }
 0x3a8   :  { %v6651_v5 = vpop.eup %6650  ;;  %v1554_v28 = vadd.f32 1.0, %v6649_v39  ;;  %6668 = vpow2.f32 %v5666_v55  ;;  %v1512_v60 = vadd.f32 %v6196_v45, %v477_v53  ;;  %v1483_v61 = vpop.f32.mrb[93].mxu0 }
 0x3a9   :  { %v6653_v62 = vpop.eup %6652  ;;  %6670 = vrcp.f32 %v1556_v30  ;;  %v1557_v63 = vadd.f32 1.0, %v6651_v5  ;;  %v1510_v49 = vadd.f32 %v1483_v61, %v467_v13  ;;  %v6197_v0 = vpop.f32.mrb[94].mxu0 }
 0x3aa   :  { %6672 = vrcp.f32 %v1554_v28  ;;  %v1555_v20 = vadd.f32 1.0, %v6653_v62  ;;  %v1513_v2 = vadd.f32 %v6197_v0, %v481_v37  ;;  %v1486_v43 = vpop.f32.mrb[95].mxu0 }
 0x3ab   :  { %v6655_v41 = vpop.eup %6654  ;;  %6674 = vrcp.f32 %v1557_v63  ;;  %v1511_v3 = vadd.f32 %v1486_v43, %v471_v14 }
 0x3ac   :  { %v6657_v56 = vpop.eup %6656  ;;  %6676 = vrcp.f32 %v1555_v20 }
 0x3ad   :  { %v6659_v52 = vpop.eup %6658  ;;  %6678 = vtanh.f32 %v1512_v60 }
 0x3ae   :  { %v6661_v59 = vpop.eup %6660  ;;  %6680 = vtanh.f32 %v1510_v49 }
 0x3af   :  { %v6663_v44 = vpop.eup %6662  ;;  %6682 = vtanh.f32 %v1513_v2 }
 0x3b0   :  { %v6665_v29 = vpop.eup %6664  ;;  %6684 = vtanh.f32 %v1511_v3  ;;  %v1560_v33 = vadd.f32 1.0, %v6663_v44  ;;  %v8437_v44 = vld [vmem:[%s9892_s2 + $0x18] sm:$0xff]  }
 0x3b1   :  { %v6667_v47 = vpop.eup %6666  ;;  %v1558_v25 = vadd.f32 1.0, %v6665_v29  ;;  %v8444_v29 = vld [vmem:[%s9892_s2 + $0x20] sm:$0xff]  }
 0x3b2   :  { %v6669_v34 = vpop.eup %6668  ;;  %v1561_v55 = vadd.f32 1.0, %v6667_v47  ;;  %6686 = vrcp.f32 %v1560_v33  ;;  %v8451_v47 = vld [vmem:[%s9892_s2 + $0x28] sm:$0xff]  }
 0x3b3   :  { %v6671_v21 = vpop.eup %6670  ;;  %v1559_v53 = vadd.f32 1.0, %v6669_v34  ;;  %6688 = vrcp.f32 %v1558_v25  ;;  %v8458_v34 = vld [vmem:[%s9892_s2 + $0x30] sm:$0xff]   ;;  %v10032_v33 = vld [vmem:[#allocation9_spill] sm:$0xff] }
 0x3b4   :  { %v6673_v31 = vpop.eup %6672  ;;  %v1592_v35 = vmul.f32 %v6671_v21, %v8328_v40  ;;  %6690 = vrcp.f32 %v1561_v55  ;;  %v8465_v21 = vld [vmem:[%s9892_s2 + $0x38] sm:$0xff]   ;;  %v10033_v25 = vld [vmem:[#allocation5_spill] sm:$0xff] }
 0x3b5   :  { %v6675_v24 = vpop.eup %6674  ;;  %v1590_v6 = vmul.f32 %v6673_v31, %v8330_v48  ;;  %6692 = vrcp.f32 %v1559_v53  ;;  %v8472_v31 = vld [vmem:[%s9892_s2] sm:$0xff]   ;;  %v10034_v55 = vld [vmem:[#allocation11_spill] sm:$0xff] }
 0x3b6   :  { %v6677_v10 = vpop.eup %6676  ;;  %v1593_v22 = vmul.f32 %v6675_v24, %v8333_v18  ;;  %v419_v24 = vadd.f32 %v10032_v33, %v8184_v16 }
 0x3b7   :  { %v6679_v23 = vpop.eup %6678  ;;  %v1591_v45 = vmul.f32 %v6677_v10, %v8336_v11  ;;  %v409_v10 = vadd.f32 %v10033_v25, %v8144_v27 }
 0x3b8   :  { %v6681_v39 = vpop.eup %6680  ;;  %v1596_v13 = vmul.f32 %v6679_v23, %v6655_v41  ;;  %v423_v23 = vadd.f32 %v10034_v55, %v8186_v50 }
 0x3b9   :  { %v6683_v30 = vpop.eup %6682  ;;  %v1594_v5 = vmul.f32 %v6681_v39, %v6657_v56  ;;  %v10035_v39 = vld [vmem:[#allocation7_spill] sm:$0xff] }
 0x3ba   :  { %v6685_v17 = vpop.eup %6684  ;;  %v8400_v37 = vadd.f32 %v1596_v13, %v1592_v35  ;;  %v1597_v40 = vmul.f32 %v6683_v30, %v6659_v52  ;;  %v8423_v52 = vld [vmem:[%s9892_s2 + $0x8] sm:$0xff]  }
 0x3bb   :  { %v8402_v28 = vadd.f32 %v1594_v5, %v1590_v6  ;;  %v1595_v48 = vmul.f32 %v6685_v17, %v6661_v59  ;;  %v8430_v59 = vld [vmem:[%s9892_s2 + $0x10] sm:$0xff]  }
 0x3bc   :  { %6694 = vtanh.f32 %v8400_v37  ;;  %v8405_v60 = vadd.f32 %v1597_v40, %v1593_v22  ;;  %v6687_v11 = vpop.eup %6686  ;;  %v413_v22 = vadd.f32 %v10035_v39, %v8164_v58 }
 0x3bd   :  { %6696 = vtanh.f32 %v8402_v28  ;;  %v8408_v18 = vadd.f32 %v1595_v48, %v1591_v45  ;;  %v6689_v61 = vpop.eup %6688 }
 0x3be   :  { %6698 = vtanh.f32 %v8405_v60  ;;  %v6691_v62 = vpop.eup %6690 }
 0x3bf   :  { %6700 = vtanh.f32 %v8408_v18  ;;  %v6693_v7 = vpop.eup %6692 }
 0x3c6   :  { %v6695_v14 = vpop.eup %6694 }
 0x3c7   :  { %v6697_v63 = vpop.eup %6696  ;;  %v1608_v20 = vmul.f32 %v6695_v14, %v6687_v11  ;;  %v10037_v14 = vld [vmem:[#allocation13_spill] sm:$0xff] }
 0x3c8   :  { %v6699_v49 = vpop.eup %6698  ;;  %v1606_v43 = vmul.f32 %v6697_v63, %v6689_v61  ;;  %v429_v63 = vadd.f32 %v10037_v14, %v8146_v54 }
 0x3c9   :  { %v6701_v0 = vpop.eup %6700  ;;  %v1609_v2 = vmul.f32 %v6699_v49, %v6691_v62  ;;  %v10036_v62 = vld [vmem:[#allocation17_spill] sm:$0xff] }
 0x3ca   :  { %v1607_v41 = vmul.f32 %v6701_v0, %v6693_v7  ;;  %v439_v7 = vadd.f32 %v10036_v62, %v8202_v19  ;;  %v10038_v0 = vld [vmem:[#allocation19_spill] sm:$0xff] }
 0x3cb   :  { %v8412_v3 = vpack.c.bf16 %v1609_v2, %v1608_v20  ;;  %v443_v20 = vadd.f32 %v10038_v0, %v8206_v46  ;;  %v10043_v0 = vld [vmem:[#allocation23_spill] sm:$0xff] }
 0x3cc   :  { %v8414_v56 = vpack.c.bf16 %v1607_v41, %v1606_v43  ;;  %v10039_v41 = vld [vmem:[#allocation15_spill] sm:$0xff] }
 0x3cd   :  { %v433_v33 = vadd.f32 %v10039_v41, %v8166_v51 }
 0x3ce   :  { %6198 = vmatprep.subr.bf16.mxu1 %v8414_v56 }
 0x3cf   :  { %6199 = vmatpush3.bf16.msra.mxu1 %v8414_v56 }
 0x3d0   :  { %6200 = vmatprep.subr.bf16.mxu1 %v8412_v3 }
 0x3d3   :  { %6201 = vmatpush3.bf16.msra.mxu1 %v8412_v3 }
 0x3d6   :  { %6203 = vmatmul.mubr.msk.bf16.vlgmr.msra.gmra.mrb[80].mxu1 %vm911_vm2, %v8423_v52 }
 0x3d7   :  { %6206 = vmatprep.mubr.msk.bf16.mxu1 %vm911_vm2, %v8430_v59 }
 0x3de   :  { %6207 = vmatmul.mubr.msk.bf16.gmra.mrb[84].mxu1 %vm911_vm2, %v8437_v44 }
 0x3df   :  { %6210 = vmatprep.mubr.msk.bf16.mxu1 %vm911_vm2, %v8444_v29 }
 0x3e6   :  { %6211 = vmatmul.mubr.msk.bf16.gmra.mrb[88].mxu1 %vm911_vm2, %v8451_v47 }
 0x3e7   :  { %6214 = vmatprep.mubr.msk.bf16.mxu1 %vm911_vm2, %v8458_v34 }
 0x3ee   :  { %6215 = vmatmul.mubr.msk.bf16.gmra.mrb[92].mxu1 %vm911_vm2, %v8465_v21 }
 0x3ef   :  { %6242 = vmatprep.mubr.msk.bf16.mxu1 %vm911_vm2, %v8472_v31 }
 0x4a9   :  { %v6204_v35 = vpop.f32.mrb[80].mxu1 }
 0x4aa   :  { %v1733_v6 = vadd.f32 %v6204_v35, %v419_v24  ;;  %v1668_v53 = vpop.f32.mrb[81].mxu1 }
 0x4ab   :  { %v1731_v13 = vadd.f32 %v1668_v53, %v409_v10  ;;  %v6205_v30 = vpop.f32.mrb[82].mxu1 }
 0x4ac   :  { %v5679_v45 = vmul.f32 -1.442695, %v1733_v6  ;;  %v1734_v5 = vadd.f32 %v6205_v30, %v423_v23  ;;  %v1671_v17 = vpop.f32.mrb[83].mxu1 }
 0x4ad   :  { %v5677_v40 = vmul.f32 -1.442695, %v1731_v13  ;;  %v1732_v48 = vadd.f32 %v1671_v17, %v413_v22  ;;  %v10040_v13 = vld [vmem:[#allocation25_spill] sm:$0xff] }
 0x4ae   :  { %6702 = vpow2.f32 %v5679_v45  ;;  %v5680_v11 = vmul.f32 -1.442695, %v1734_v5  ;;  %v459_v30 = vadd.f32 %v10040_v13, %v8232_v32  ;;  %v10041_v5 = vld [vmem:[#allocation21_spill] sm:$0xff] }
 0x4af   :  { %6704 = vpow2.f32 %v5677_v40  ;;  %v5678_v61 = vmul.f32 -1.442695, %v1732_v48  ;;  %v449_v17 = vadd.f32 %v10041_v5, %v8210_v42 }
 0x4b0   :  { %6706 = vpow2.f32 %v5680_v11 }
 0x4b1   :  { %6708 = vpow2.f32 %v5678_v61  ;;  %v6208_v49 = vpop.f32.mrb[84].mxu1  ;;  %v10042_v61 = vld [vmem:[#allocation27_spill] sm:$0xff] }
 0x4b2   :  { %v1737_v2 = vadd.f32 %v6208_v49, %v439_v7  ;;  %v1684_v43 = vpop.f32.mrb[85].mxu1  ;;  %v463_v62 = vadd.f32 %v10042_v61, %v8234_v12 }
 0x4b3   :  { %v1735_v24 = vadd.f32 %v1684_v43, %v429_v63  ;;  %v6209_v25 = vpop.f32.mrb[86].mxu1 }
 0x4b4   :  { %v5683_v10 = vmul.f32 -1.442695, %v1737_v2  ;;  %v1738_v35 = vadd.f32 %v6209_v25, %v443_v20  ;;  %v1687_v55 = vpop.f32.mrb[87].mxu1  ;;  %v453_v20 = vadd.f32 %v10043_v0, %v8216_v26 }
 0x4b5   :  { %v5681_v23 = vmul.f32 -1.442695, %v1735_v24  ;;  %v1736_v6 = vadd.f32 %v1687_v55, %v433_v33 }
 0x4b6   :  { %6710 = vpow2.f32 %v5683_v10  ;;  %v5684_v53 = vmul.f32 -1.442695, %v1738_v35 }
 0x4b7   :  { %6712 = vpow2.f32 %v5681_v23  ;;  %v5682_v39 = vmul.f32 -1.442695, %v1736_v6 }
 0x4b8   :  { %v6703_v22 = vpop.eup %6702  ;;  %6714 = vpow2.f32 %v5684_v53 }
 0x4b9   :  { %v6705_v45 = vpop.eup %6704  ;;  %v1785_v40 = vadd.f32 1.0, %v6703_v22  ;;  %6716 = vpow2.f32 %v5682_v39  ;;  %v6212_v48 = vpop.f32.mrb[88].mxu1  ;;  %v10044_v39 = vld [vmem:[#allocation34_spill] sm:$0xff] }
 0x4ba   :  { %v6707_v11 = vpop.eup %6706  ;;  %v1783_v7 = vadd.f32 1.0, %v6705_v45  ;;  %v1741_v14 = vadd.f32 %v6212_v48, %v459_v30  ;;  %v1700_v63 = vpop.f32.mrb[89].mxu1  ;;  %v479_v22 = vadd.f32 %v10044_v39, %v8244_v15  ;;  %v10045_v30 = vld [vmem:[#allocation29_spill] sm:$0xff] }
 0x4bb   :  { %v6709_v49 = vpop.eup %6708  ;;  %6718 = vrcp.f32 %v1785_v40  ;;  %v1786_v2 = vadd.f32 1.0, %v6707_v11  ;;  %v1739_v43 = vadd.f32 %v1700_v63, %v449_v17  ;;  %v6213_v41 = vpop.f32.mrb[90].mxu1  ;;  %v469_v45 = vadd.f32 %v10045_v30, %v8220_v4  ;;  %v10046_v48 = vld [vmem:[#allocation37_spill] sm:$0xff]  ;;  %v10047_v63 = vld [vmem:[#allocation32_spill] sm:$0xff] }
 0x4bc   :  { %6720 = vrcp.f32 %v1783_v7  ;;  %v1784_v33 = vadd.f32 1.0, %v6709_v49  ;;  %v5687_v24 = vmul.f32 -1.442695, %v1741_v14  ;;  %v1742_v25 = vadd.f32 %v6213_v41, %v463_v62  ;;  %v1703_v10 = vpop.f32.mrb[91].mxu1 }
 0x4bd   :  { %6722 = vrcp.f32 %v1786_v2  ;;  %v5685_v35 = vmul.f32 -1.442695, %v1739_v43  ;;  %v1740_v55 = vadd.f32 %v1703_v10, %v453_v20  ;;  %v483_v11 = vadd.f32 %v10046_v48, %v8246_v8 }
 0x4be   :  { %6724 = vrcp.f32 %v1784_v33  ;;  %v5688_v23 = vmul.f32 -1.442695, %v1742_v25  ;;  %v473_v49 = vadd.f32 %v10047_v63, %v10014_v1 }
 0x4bf   :  { %6726 = vpow2.f32 %v5687_v24  ;;  %v5686_v6 = vmul.f32 -1.442695, %v1740_v55 }
 0x4c0   :  { %v6711_v53 = vpop.eup %6710  ;;  %6728 = vpow2.f32 %v5685_v35 }
 0x4c1   :  { %v6713_v13 = vpop.eup %6712  ;;  %v1789_v5 = vadd.f32 1.0, %v6711_v53  ;;  %6730 = vpow2.f32 %v5688_v23  ;;  %v6216_v17 = vpop.f32.mrb[92].mxu1 }
 0x4c2   :  { %v6715_v40 = vpop.eup %6714  ;;  %v1787_v61 = vadd.f32 1.0, %v6713_v13  ;;  %6732 = vpow2.f32 %v5686_v6  ;;  %v1745_v62 = vadd.f32 %v6216_v17, %v479_v22  ;;  %v1716_v7 = vpop.f32.mrb[93].mxu1 }
 0x4c3   :  { %v6717_v14 = vpop.eup %6716  ;;  %6734 = vrcp.f32 %v1789_v5  ;;  %v1790_v0 = vadd.f32 1.0, %v6715_v40  ;;  %v1743_v20 = vadd.f32 %v1716_v7, %v469_v45  ;;  %v6217_v2 = vpop.f32.mrb[94].mxu1 }
 0x4c4   :  { %6736 = vrcp.f32 %v1787_v61  ;;  %v1788_v43 = vadd.f32 1.0, %v6717_v14  ;;  %v1746_v41 = vadd.f32 %v6217_v2, %v483_v11  ;;  %v1719_v33 = vpop.f32.mrb[95].mxu1 }
 0x4c5   :  { %v6719_v24 = vpop.eup %6718  ;;  %6738 = vrcp.f32 %v1790_v0  ;;  %v1744_v25 = vadd.f32 %v1719_v33, %v473_v49 }
 0x4c6   :  { %v6721_v10 = vpop.eup %6720  ;;  %6740 = vrcp.f32 %v1788_v43 }
 0x4c7   :  { %v6723_v35 = vpop.eup %6722  ;;  %6742 = vtanh.f32 %v1745_v62 }
 0x4c8   :  { %v6725_v55 = vpop.eup %6724  ;;  %6744 = vtanh.f32 %v1743_v20 }
 0x4c9   :  { %v6727_v23 = vpop.eup %6726  ;;  %6746 = vtanh.f32 %v1746_v41 }
 0x4ca   :  { %v6729_v6 = vpop.eup %6728  ;;  %6748 = vtanh.f32 %v1744_v25  ;;  %v1793_v30 = vadd.f32 1.0, %v6727_v23 }
 0x4cb   :  { %v6731_v53 = vpop.eup %6730  ;;  %v1791_v5 = vadd.f32 1.0, %v6729_v6 }
 0x4cc   :  { %v6733_v39 = vpop.eup %6732  ;;  %v1794_v48 = vadd.f32 1.0, %v6731_v53  ;;  %6750 = vrcp.f32 %v1793_v30 }
 0x4cd   :  { %v6735_v22 = vpop.eup %6734  ;;  %v1792_v62 = vadd.f32 1.0, %v6733_v39  ;;  %6752 = vrcp.f32 %v1791_v5  ;;  %v10048_v5 = vld [vmem:[#allocation46_spill] sm:$0xff] }
 0x4ce   :  { %v6737_v13 = vpop.eup %6736  ;;  %v1825_v40 = vmul.f32 %v6735_v22, %v8400_v37  ;;  %6754 = vrcp.f32 %v1794_v48 }
 0x4cf   :  { %v6739_v45 = vpop.eup %6738  ;;  %v1823_v61 = vmul.f32 %v6737_v13, %v8402_v28  ;;  %6756 = vrcp.f32 %v1792_v62 }
 0x4d0   :  { %v6741_v17 = vpop.eup %6740  ;;  %v1826_v14 = vmul.f32 %v6739_v45, %v8405_v60 }
 0x4d1   :  { %v6743_v11 = vpop.eup %6742  ;;  %v1824_v0 = vmul.f32 %v6741_v17, %v8408_v18  ;;  %v530_v17 = vadd.f32 %v10048_v5, %v8184_v16 }
 0x4d2   :  { %v6745_v7 = vpop.eup %6744  ;;  %v1829_v63 = vmul.f32 %v6743_v11, %v6719_v24 }
 0x4d3   :  { %v6747_v49 = vpop.eup %6746  ;;  %v1827_v20 = vmul.f32 %v6745_v7, %v6721_v10 }
 0x4d4   :  { %v6749_v2 = vpop.eup %6748  ;;  %v8512_v43 = vadd.f32 %v1829_v63, %v1825_v40  ;;  %v1830_v37 = vmul.f32 %v6747_v49, %v6723_v35  ;;  %v10049_v40 = vld [vmem:[#allocation38_spill] sm:$0xff]  ;;  %v10051_v63 = vld [vmem:[#allocation41_spill] sm:$0xff] }
 0x4d5   :  { %v8514_v41 = vadd.f32 %v1827_v20, %v1823_v61  ;;  %v1828_v28 = vmul.f32 %v6749_v2, %v6725_v55  ;;  %v520_v48 = vadd.f32 %v10049_v40, %v8144_v27  ;;  %v10050_v61 = vld [vmem:[#allocation49_spill] sm:$0xff]  ;;  %v524_v49 = vadd.f32 %v10051_v63, %v8164_v58 }
 0x4d6   :  { %6758 = vtanh.f32 %v8512_v43  ;;  %v8517_v33 = vadd.f32 %v1830_v37, %v1826_v14  ;;  %v6751_v18 = vpop.eup %6750  ;;  %v534_v62 = vadd.f32 %v10050_v61, %v8186_v50 }
 0x4d7   :  { %6760 = vtanh.f32 %v8514_v41  ;;  %v8520_v60 = vadd.f32 %v1828_v28, %v1824_v0  ;;  %v6753_v24 = vpop.eup %6752 }
 0x4d8   :  { %6762 = vtanh.f32 %v8517_v33  ;;  %v6755_v25 = vpop.eup %6754 }
 0x4d9   :  { %6764 = vtanh.f32 %v8520_v60  ;;  %v6757_v10 = vpop.eup %6756 }
 0x4e0   :  { %v6759_v35 = vpop.eup %6758 }
 0x4e1   :  { %v6761_v23 = vpop.eup %6760  ;;  %v1841_v53 = vmul.f32 %v6759_v35, %v6751_v18  ;;  %v10052_v35 = vld [vmem:[#allocation62_spill] sm:$0xff] }
 0x4e2   :  { %v6763_v6 = vpop.eup %6762  ;;  %v1839_v22 = vmul.f32 %v6761_v23, %v6753_v24  ;;  %v550_v23 = vadd.f32 %v10052_v35, %v8202_v19 }
 0x4e3   :  { %v6765_v55 = vpop.eup %6764  ;;  %v1842_v39 = vmul.f32 %v6763_v6, %v6755_v25  ;;  %v10053_v6 = vld [vmem:[#allocation54_spill] sm:$0xff] }
 0x4e4   :  { %v1840_v13 = vmul.f32 %v6765_v55, %v6757_v10  ;;  %v540_v55 = vadd.f32 %v10053_v6, %v8146_v54 }
 0x4e5   :  { %v8524_v30 = vpack.c.bf16 %v1842_v39, %v1841_v53  ;;  %v10054_v39 = vld [vmem:[#allocation65_spill] sm:$0xff] }
 0x4e6   :  { %v8526_v45 = vpack.c.bf16 %v1840_v13, %v1839_v22  ;;  %v554_v22 = vadd.f32 %v10054_v39, %v8206_v46 }
 0x4e8   :  { %6218 = vmatprep.subr.bf16.mxu0 %v8526_v45 }
 0x4e9   :  { %6219 = vmatpush3.bf16.msra.mxu0 %v8526_v45 }
 0x4ea   :  { %6220 = vmatprep.subr.bf16.mxu0 %v8524_v30 }
 0x4ed   :  { %6221 = vmatpush3.bf16.msra.mxu0 %v8524_v30 }
 0x4f0   :  { %6223 = vmatmul.mubr.msk.bf16.vlgmr.msra.gmra.mrb[96].mxu0 %vm911_vm2, %v8423_v52 }
 0x4f1   :  { %6226 = vmatprep.mubr.msk.bf16.mxu0 %vm911_vm2, %v8430_v59 }
 0x4f8   :  { %6227 = vmatmul.mubr.msk.bf16.gmra.mrb[100].mxu0 %vm911_vm2, %v8437_v44 }
 0x4f9   :  { %6230 = vmatprep.mubr.msk.bf16.mxu0 %vm911_vm2, %v8444_v29 }
 0x500   :  { %6231 = vmatmul.mubr.msk.bf16.gmra.mrb[104].mxu0 %vm911_vm2, %v8451_v47 }
 0x501   :  { %6234 = vmatprep.mubr.msk.bf16.mxu0 %vm911_vm2, %v8458_v34 }
 0x508   :  { %6235 = vmatmul.mubr.msk.bf16.gmra.mrb[108].mxu0 %vm911_vm2, %v8465_v21 }
 0x509   :  { %6262 = vmatprep.mubr.msk.bf16.mxu0 %vm911_vm2, %v8472_v31 }
 0x5c3   :  { %v6224_v11 = vpop.f32.mrb[96].mxu0 }
 0x5c4   :  { %v1966_v7 = vadd.f32 %v6224_v11, %v530_v17  ;;  %v1901_v14 = vpop.f32.mrb[97].mxu0  ;;  %v10055_v17 = vld [vmem:[#allocation57_spill] sm:$0xff] }
 0x5c5   :  { %v1964_v0 = vadd.f32 %v1901_v14, %v520_v48  ;;  %v6225_v20 = vpop.f32.mrb[98].mxu0  ;;  %v544_v40 = vadd.f32 %v10055_v17, %v8166_v51 }
 0x5c6   :  { %v5699_v2 = vmul.f32 -1.442695, %v1966_v7  ;;  %v1967_v37 = vadd.f32 %v6225_v20, %v534_v62  ;;  %v1904_v28 = vpop.f32.mrb[99].mxu0 }
 0x5c7   :  { %v5697_v18 = vmul.f32 -1.442695, %v1964_v0  ;;  %v1965_v24 = vadd.f32 %v1904_v28, %v524_v49 }
 0x5c8   :  { %6766 = vpow2.f32 %v5699_v2  ;;  %v5700_v25 = vmul.f32 -1.442695, %v1967_v37  ;;  %v10056_v2 = vld [vmem:[#allocation78_spill] sm:$0xff] }
 0x5c9   :  { %6768 = vpow2.f32 %v5697_v18  ;;  %v5698_v10 = vmul.f32 -1.442695, %v1965_v24  ;;  %v570_v37 = vadd.f32 %v10056_v2, %v8232_v32  ;;  %v10057_v18 = vld [vmem:[#allocation70_spill] sm:$0xff] }
 0x5ca   :  { %6770 = vpow2.f32 %v5700_v25  ;;  %v560_v24 = vadd.f32 %v10057_v18, %v8210_v42  ;;  %v10060_v2 = vld [vmem:[#allocation94_spill] sm:$0xff] }
 0x5cb   :  { %6772 = vpow2.f32 %v5698_v10  ;;  %v6228_v53 = vpop.f32.mrb[100].mxu0  ;;  %v10061_v18 = vld [vmem:[#allocation86_spill] sm:$0xff] }
 0x5cc   :  { %v1970_v13 = vadd.f32 %v6228_v53, %v550_v23  ;;  %v1917_v5 = vpop.f32.mrb[101].mxu0  ;;  %v10058_v23 = vld [vmem:[#allocation81_spill] sm:$0xff] }
 0x5cd   :  { %v1968_v48 = vadd.f32 %v1917_v5, %v540_v55  ;;  %v6229_v11 = vpop.f32.mrb[102].mxu0  ;;  %v574_v6 = vadd.f32 %v10058_v23, %v8234_v12  ;;  %v10062_v23 = vld [vmem:[#allocation97_spill] sm:$0xff] }
 0x5ce   :  { %v5703_v61 = vmul.f32 -1.442695, %v1970_v13  ;;  %v1971_v62 = vadd.f32 %v6229_v11, %v554_v22  ;;  %v1920_v7 = vpop.f32.mrb[103].mxu0  ;;  %v10059_v13 = vld [vmem:[#allocation73_spill] sm:$0xff] }
 0x5cf   :  { %v5701_v14 = vmul.f32 -1.442695, %v1968_v48  ;;  %v1969_v63 = vadd.f32 %v1920_v7, %v544_v40  ;;  %v564_v5 = vadd.f32 %v10059_v13, %v8216_v26  ;;  %v10063_v13 = vld [vmem:[#allocation89_spill] sm:$0xff] }
 0x5d0   :  { %6774 = vpow2.f32 %v5703_v61  ;;  %v5704_v49 = vmul.f32 -1.442695, %v1971_v62 }
 0x5d1   :  { %6776 = vpow2.f32 %v5701_v14  ;;  %v5702_v0 = vmul.f32 -1.442695, %v1969_v63 }
 0x5d2   :  { %v6767_v20 = vpop.eup %6766  ;;  %6778 = vpow2.f32 %v5704_v49 }
 0x5d3   :  { %v6769_v28 = vpop.eup %6768  ;;  %v2018_v25 = vadd.f32 1.0, %v6767_v20  ;;  %6780 = vpow2.f32 %v5702_v0  ;;  %v6232_v10 = vpop.f32.mrb[104].mxu0 }
 0x5d4   :  { %v6771_v35 = vpop.eup %6770  ;;  %v2016_v55 = vadd.f32 1.0, %v6769_v28  ;;  %v1974_v53 = vadd.f32 %v6232_v10, %v570_v37  ;;  %v1933_v39 = vpop.f32.mrb[105].mxu0  ;;  %v590_v37 = vadd.f32 %v10060_v2, %v8244_v15 }
 0x5d5   :  { %v6773_v22 = vpop.eup %6772  ;;  %6782 = vrcp.f32 %v2018_v25  ;;  %v2019_v17 = vadd.f32 1.0, %v6771_v35  ;;  %v1972_v40 = vadd.f32 %v1933_v39, %v560_v24  ;;  %v6233_v48 = vpop.f32.mrb[106].mxu0  ;;  %v580_v24 = vadd.f32 %v10061_v18, %v8220_v4 }
 0x5d6   :  { %6784 = vrcp.f32 %v2016_v55  ;;  %v2017_v11 = vadd.f32 1.0, %v6773_v22  ;;  %v5707_v61 = vmul.f32 -1.442695, %v1974_v53  ;;  %v1975_v62 = vadd.f32 %v6233_v48, %v574_v6  ;;  %v1936_v7 = vpop.f32.mrb[107].mxu0 }
 0x5d7   :  { %6786 = vrcp.f32 %v2019_v17  ;;  %v5705_v14 = vmul.f32 -1.442695, %v1972_v40  ;;  %v1973_v63 = vadd.f32 %v1936_v7, %v564_v5  ;;  %v594_v6 = vadd.f32 %v10062_v23, %v8246_v8 }
 0x5d8   :  { %6788 = vrcp.f32 %v2017_v11  ;;  %v5708_v49 = vmul.f32 -1.442695, %v1975_v62  ;;  %v584_v5 = vadd.f32 %v10063_v13, %v10014_v1 }
 0x5d9   :  { %6790 = vpow2.f32 %v5707_v61  ;;  %v5706_v0 = vmul.f32 -1.442695, %v1973_v63 }
 0x5da   :  { %v6775_v20 = vpop.eup %6774  ;;  %6792 = vpow2.f32 %v5705_v14 }
 0x5db   :  { %v6777_v28 = vpop.eup %6776  ;;  %v2022_v25 = vadd.f32 1.0, %v6775_v20  ;;  %6794 = vpow2.f32 %v5708_v49  ;;  %v6236_v10 = vpop.f32.mrb[108].mxu0 }
 0x5dc   :  { %v6779_v35 = vpop.eup %6778  ;;  %v2020_v55 = vadd.f32 1.0, %v6777_v28  ;;  %6796 = vpow2.f32 %v5706_v0  ;;  %v1978_v53 = vadd.f32 %v6236_v10, %v590_v37  ;;  %v1949_v39 = vpop.f32.mrb[109].mxu0 }
 0x5dd   :  { %v6781_v22 = vpop.eup %6780  ;;  %6798 = vrcp.f32 %v2022_v25  ;;  %v2023_v17 = vadd.f32 1.0, %v6779_v35  ;;  %v1976_v40 = vadd.f32 %v1949_v39, %v580_v24  ;;  %v6237_v48 = vpop.f32.mrb[110].mxu0 }
 0x5de   :  { %6800 = vrcp.f32 %v2020_v55  ;;  %v2021_v11 = vadd.f32 1.0, %v6781_v22  ;;  %v1979_v61 = vadd.f32 %v6237_v48, %v594_v6  ;;  %v1952_v62 = vpop.f32.mrb[111].mxu0 }
 0x5df   :  { %v6783_v7 = vpop.eup %6782  ;;  %6802 = vrcp.f32 %v2023_v17  ;;  %v1977_v14 = vadd.f32 %v1952_v62, %v584_v5 }
 0x5e0   :  { %v6785_v63 = vpop.eup %6784  ;;  %6804 = vrcp.f32 %v2021_v11 }
 0x5e1   :  { %v6787_v49 = vpop.eup %6786  ;;  %6806 = vtanh.f32 %v1978_v53 }
 0x5e2   :  { %v6789_v0 = vpop.eup %6788  ;;  %6808 = vtanh.f32 %v1976_v40 }
 0x5e3   :  { %v6791_v20 = vpop.eup %6790  ;;  %6810 = vtanh.f32 %v1979_v61 }
 0x5e4   :  { %v6793_v2 = vpop.eup %6792  ;;  %6812 = vtanh.f32 %v1977_v14  ;;  %v2026_v25 = vadd.f32 1.0, %v6791_v20 }
 0x5e5   :  { %v6795_v37 = vpop.eup %6794  ;;  %v2024_v35 = vadd.f32 1.0, %v6793_v2 }
 0x5e6   :  { %v6797_v28 = vpop.eup %6796  ;;  %v2027_v55 = vadd.f32 1.0, %v6795_v37  ;;  %6814 = vrcp.f32 %v2026_v25 }
 0x5e7   :  { %v6799_v18 = vpop.eup %6798  ;;  %v2025_v22 = vadd.f32 1.0, %v6797_v28  ;;  %6816 = vrcp.f32 %v2024_v35 }
 0x5e8   :  { %v6801_v24 = vpop.eup %6800  ;;  %v2058_v6 = vmul.f32 %v6799_v18, %v8512_v43  ;;  %6818 = vrcp.f32 %v2027_v55 }
 0x5e9   :  { %v6803_v10 = vpop.eup %6802  ;;  %v2056_v53 = vmul.f32 %v6801_v24, %v8514_v41  ;;  %6820 = vrcp.f32 %v2025_v22 }
 0x5ea   :  { %v6805_v23 = vpop.eup %6804  ;;  %v2059_v5 = vmul.f32 %v6803_v10, %v8517_v33 }
 0x5eb   :  { %v6807_v39 = vpop.eup %6806  ;;  %v2057_v48 = vmul.f32 %v6805_v23, %v8520_v60 }
 0x5ec   :  { %v6809_v13 = vpop.eup %6808  ;;  %v2062_v17 = vmul.f32 %v6807_v39, %v6783_v7 }
 0x5ed   :  { %v6811_v40 = vpop.eup %6810  ;;  %v2060_v11 = vmul.f32 %v6809_v13, %v6785_v63 }
 0x5ee   :  { %v6813_v61 = vpop.eup %6812  ;;  %v8584_v62 = vadd.f32 %v2062_v17, %v2058_v6  ;;  %v2063_v43 = vmul.f32 %v6811_v40, %v6787_v49 }
 0x5ef   :  { %v8586_v14 = vadd.f32 %v2060_v11, %v2056_v53  ;;  %v2061_v41 = vmul.f32 %v6813_v61, %v6789_v0 }
 0x5f0   :  { %6822 = vtanh.f32 %v8584_v62  ;;  %v8589_v20 = vadd.f32 %v2063_v43, %v2059_v5  ;;  %v6815_v60 = vpop.eup %6814  ;;  %v10068_v43 = vld [vmem:[#allocation63_spill] sm:$0xff] }
 0x5f1   :  { %6824 = vtanh.f32 %v8586_v14  ;;  %v8592_v33 = vadd.f32 %v2061_v41, %v2057_v48  ;;  %v6817_v7 = vpop.eup %6816  ;;  %v552_v41 = vadd.f32 %v10068_v43, %v8202_v19 }
 0x5f2   :  { %6826 = vtanh.f32 %v8589_v20  ;;  %v6819_v63 = vpop.eup %6818 }
 0x5f3   :  { %6828 = vtanh.f32 %v8592_v33  ;;  %v6821_v49 = vpop.eup %6820 }
 0x5fa   :  { %v6823_v2 = vpop.eup %6822 }
 0x5fb   :  { %v6825_v37 = vpop.eup %6824  ;;  %v2074_v18 = vmul.f32 %v6823_v2, %v6815_v60  ;;  %v10069_v60 = vld [vmem:[#allocation55_spill] sm:$0xff] }
 0x5fc   :  { %v6827_v28 = vpop.eup %6826  ;;  %v2072_v25 = vmul.f32 %v6825_v37, %v6817_v7  ;;  %v542_v7 = vadd.f32 %v10069_v60, %v8146_v54 }
 0x5fd   :  { %v6829_v0 = vpop.eup %6828  ;;  %v2075_v24 = vmul.f32 %v6827_v28, %v6819_v63 }
 0x5fe   :  { %v2073_v10 = vmul.f32 %v6829_v0, %v6821_v49  ;;  %v10070_v49 = vld [vmem:[#allocation67_spill] sm:$0xff] }
 0x5ff   :  { %v8596_v35 = vpack.c.bf16 %v2075_v24, %v2074_v18  ;;  %v556_v2 = vadd.f32 %v10070_v49, %v8206_v46  ;;  %v10071_v0 = vld [vmem:[#allocation59_spill] sm:$0xff] }
 0x600   :  { %v8598_v23 = vpack.c.bf16 %v2073_v10, %v2072_v25  ;;  %v546_v18 = vadd.f32 %v10071_v0, %v8166_v51 }
 0x602   :  { %6238 = vmatprep.subr.bf16.mxu1 %v8598_v23 }
 0x603   :  { %6239 = vmatpush3.bf16.msra.mxu1 %v8598_v23 }
 0x604   :  { %6240 = vmatprep.subr.bf16.mxu1 %v8596_v35 }
 0x607   :  { %6241 = vmatpush3.bf16.msra.mxu1 %v8596_v35 }
 0x60a   :  { %6243 = vmatmul.mubr.msk.bf16.vlgmr.msra.gmra.mrb[96].mxu1 %vm911_vm2, %v8423_v52  ;;  %v10064_v52 = vld [vmem:[#allocation47_spill] sm:$0xff] }
 0x60b   :  { %6246 = vmatprep.mubr.msk.bf16.mxu1 %vm911_vm2, %v8430_v59  ;;  %v532_v59 = vadd.f32 %v10064_v52, %v8184_v16 }
 0x612   :  { %6247 = vmatmul.mubr.msk.bf16.gmra.mrb[100].mxu1 %vm911_vm2, %v8437_v44  ;;  %v10065_v44 = vld [vmem:[#allocation39_spill] sm:$0xff] }
 0x613   :  { %6250 = vmatprep.mubr.msk.bf16.mxu1 %vm911_vm2, %v8444_v29  ;;  %v522_v6 = vadd.f32 %v10065_v44, %v8144_v27  ;;  %v10066_v29 = vld [vmem:[#allocation51_spill] sm:$0xff] }
 0x614   :  { %v536_v39 = vadd.f32 %v10066_v29, %v8186_v50 }
 0x61a   :  { %6251 = vmatmul.mubr.msk.bf16.gmra.mrb[104].mxu1 %vm911_vm2, %v8451_v47 }
 0x61b   :  { %6254 = vmatprep.mubr.msk.bf16.mxu1 %vm911_vm2, %v8458_v34  ;;  %v10067_v34 = vld [vmem:[#allocation43_spill] sm:$0xff] }
 0x61c   :  { %v526_v22 = vadd.f32 %v10067_v34, %v8164_v58 }
 0x622   :  { %6255 = vmatmul.mubr.msk.bf16.gmra.mrb[108].mxu1 %vm911_vm2, %v8465_v21 }
 0x623   :  { %6282 = vmatprep.mubr.msk.bf16.mxu1 %vm911_vm2, %v8472_v31 }
 0x6dd   :  { %v6244_v55 = vpop.f32.mrb[96].mxu1 }
 0x6de   :  { %v2199_v47 = vadd.f32 %v6244_v55, %v532_v59  ;;  %v2134_v53 = vpop.f32.mrb[97].mxu1 }
 0x6df   :  { %v2197_v13 = vadd.f32 %v2134_v53, %v522_v6  ;;  %v6245_v21 = vpop.f32.mrb[98].mxu1 }
 0x6e0   :  { %v5719_v5 = vmul.f32 -1.442695, %v2199_v47  ;;  %v2200_v17 = vadd.f32 %v6245_v21, %v536_v39  ;;  %v2137_v31 = vpop.f32.mrb[99].mxu1  ;;  %v10072_v47 = vld [vmem:[#allocation79_spill] sm:$0xff] }
 0x6e1   :  { %v5717_v40 = vmul.f32 -1.442695, %v2197_v13  ;;  %v2198_v48 = vadd.f32 %v2137_v31, %v526_v22  ;;  %v572_v53 = vadd.f32 %v10072_v47, %v8232_v32  ;;  %v10073_v22 = vld [vmem:[#allocation71_spill] sm:$0xff] }
 0x6e2   :  { %6830 = vpow2.f32 %v5719_v5  ;;  %v5720_v11 = vmul.f32 -1.442695, %v2200_v17  ;;  %v562_v13 = vadd.f32 %v10073_v22, %v8210_v42  ;;  %v10074_v31 = vld [vmem:[#allocation83_spill] sm:$0xff] }
 0x6e3   :  { %6832 = vpow2.f32 %v5717_v40  ;;  %v5718_v61 = vmul.f32 -1.442695, %v2198_v48  ;;  %v576_v40 = vadd.f32 %v10074_v31, %v8234_v12  ;;  %v10079_v31 = vld [vmem:[#allocation91_spill] sm:$0xff] }
 0x6e4   :  { %6834 = vpow2.f32 %v5720_v11 }
 0x6e5   :  { %6836 = vpow2.f32 %v5718_v61  ;;  %v6248_v63 = vpop.f32.mrb[100].mxu1 }
 0x6e6   :  { %v2203_v37 = vadd.f32 %v6248_v63, %v552_v41  ;;  %v2150_v28 = vpop.f32.mrb[101].mxu1  ;;  %v10075_v41 = vld [vmem:[#allocation75_spill] sm:$0xff] }
 0x6e7   :  { %v2201_v24 = vadd.f32 %v2150_v28, %v542_v7  ;;  %v6249_v25 = vpop.f32.mrb[102].mxu1  ;;  %v566_v60 = vadd.f32 %v10075_v41, %v8216_v26 }
 0x6e8   :  { %v5723_v10 = vmul.f32 -1.442695, %v2203_v37  ;;  %v2204_v52 = vadd.f32 %v6249_v25, %v556_v2  ;;  %v2153_v59 = vpop.f32.mrb[103].mxu1 }
 0x6e9   :  { %v5721_v44 = vmul.f32 -1.442695, %v2201_v24  ;;  %v2202_v6 = vadd.f32 %v2153_v59, %v546_v18  ;;  %v10076_v59 = vld [vmem:[#allocation95_spill] sm:$0xff] }
 0x6ea   :  { %6838 = vpow2.f32 %v5723_v10  ;;  %v5724_v55 = vmul.f32 -1.442695, %v2204_v52 }
 0x6eb   :  { %6840 = vpow2.f32 %v5721_v44  ;;  %v5722_v29 = vmul.f32 -1.442695, %v2202_v6  ;;  %v592_v44 = vadd.f32 %v10076_v59, %v8244_v15 }
 0x6ec   :  { %v6831_v39 = vpop.eup %6830  ;;  %6842 = vpow2.f32 %v5724_v55  ;;  %v10077_v55 = vld [vmem:[#allocation87_spill] sm:$0xff] }
 0x6ed   :  { %v6833_v34 = vpop.eup %6832  ;;  %v2251_v21 = vadd.f32 1.0, %v6831_v39  ;;  %6844 = vpow2.f32 %v5722_v29  ;;  %v6252_v5 = vpop.f32.mrb[104].mxu1  ;;  %v582_v29 = vadd.f32 %v10077_v55, %v8220_v4 }
 0x6ee   :  { %v6835_v17 = vpop.eup %6834  ;;  %v2249_v48 = vadd.f32 1.0, %v6833_v34  ;;  %v2207_v11 = vadd.f32 %v6252_v5, %v572_v53  ;;  %v2166_v61 = vpop.f32.mrb[105].mxu1  ;;  %v10078_v34 = vld [vmem:[#allocation99_spill] sm:$0xff] }
 0x6ef   :  { %v6837_v43 = vpop.eup %6836  ;;  %6846 = vrcp.f32 %v2251_v21  ;;  %v2252_v7 = vadd.f32 1.0, %v6835_v17  ;;  %v2205_v63 = vadd.f32 %v2166_v61, %v562_v13  ;;  %v6253_v49 = vpop.f32.mrb[106].mxu1  ;;  %v596_v22 = vadd.f32 %v10078_v34, %v8246_v8 }
 0x6f0   :  { %6848 = vrcp.f32 %v2249_v48  ;;  %v2250_v2 = vadd.f32 1.0, %v6837_v43  ;;  %v5727_v37 = vmul.f32 -1.442695, %v2207_v11  ;;  %v2208_v28 = vadd.f32 %v6253_v49, %v576_v40  ;;  %v2169_v0 = vpop.f32.mrb[107].mxu1 }
 0x6f1   :  { %6850 = vrcp.f32 %v2252_v7  ;;  %v5725_v18 = vmul.f32 -1.442695, %v2205_v63  ;;  %v2206_v24 = vadd.f32 %v2169_v0, %v566_v60  ;;  %v586_v40 = vadd.f32 %v10079_v31, %v10014_v1 }
 0x6f2   :  { %6852 = vrcp.f32 %v2250_v2  ;;  %v5728_v25 = vmul.f32 -1.442695, %v2208_v28 }
 0x6f3   :  { %6854 = vpow2.f32 %v5727_v37  ;;  %v5726_v10 = vmul.f32 -1.442695, %v2206_v24 }
 0x6f4   :  { %v6839_v52 = vpop.eup %6838  ;;  %6856 = vpow2.f32 %v5725_v18 }
 0x6f5   :  { %v6841_v6 = vpop.eup %6840  ;;  %v2255_v39 = vadd.f32 1.0, %v6839_v52  ;;  %6858 = vpow2.f32 %v5728_v25  ;;  %v6256_v47 = vpop.f32.mrb[108].mxu1 }
 0x6f6   :  { %v6843_v53 = vpop.eup %6842  ;;  %v2253_v13 = vadd.f32 1.0, %v6841_v6  ;;  %6860 = vpow2.f32 %v5726_v10  ;;  %v2211_v21 = vadd.f32 %v6256_v47, %v592_v44  ;;  %v2182_v5 = vpop.f32.mrb[109].mxu1 }
 0x6f7   :  { %v6845_v17 = vpop.eup %6844  ;;  %6862 = vrcp.f32 %v2255_v39  ;;  %v2256_v48 = vadd.f32 1.0, %v6843_v53  ;;  %v2209_v11 = vadd.f32 %v2182_v5, %v582_v29  ;;  %v6257_v61 = vpop.f32.mrb[110].mxu1 }
 0x6f8   :  { %6864 = vrcp.f32 %v2253_v13  ;;  %v2254_v43 = vadd.f32 1.0, %v6845_v17  ;;  %v2212_v41 = vadd.f32 %v6257_v61, %v596_v22  ;;  %v2185_v60 = vpop.f32.mrb[111].mxu1 }
 0x6f9   :  { %v6847_v7 = vpop.eup %6846  ;;  %6866 = vrcp.f32 %v2256_v48  ;;  %v2210_v63 = vadd.f32 %v2185_v60, %v586_v40 }
 0x6fa   :  { %v6849_v49 = vpop.eup %6848  ;;  %6868 = vrcp.f32 %v2254_v43 }
 0x6fb   :  { %v6851_v2 = vpop.eup %6850  ;;  %6870 = vtanh.f32 %v2211_v21 }
 0x6fc   :  { %v6853_v37 = vpop.eup %6852  ;;  %6872 = vtanh.f32 %v2209_v11 }
 0x6fd   :  { %v6855_v28 = vpop.eup %6854  ;;  %6874 = vtanh.f32 %v2212_v41 }
 0x6fe   :  { %v6857_v0 = vpop.eup %6856  ;;  %6876 = vtanh.f32 %v2210_v63  ;;  %v2259_v52 = vadd.f32 1.0, %v6855_v28 }
 0x6ff   :  { %v6859_v18 = vpop.eup %6858  ;;  %v2257_v44 = vadd.f32 1.0, %v6857_v0 }
 0x700   :  { %v6861_v24 = vpop.eup %6860  ;;  %v2260_v29 = vadd.f32 1.0, %v6859_v18  ;;  %6878 = vrcp.f32 %v2259_v52  ;;  %v8717_v52 = vld [vmem:[%s9892_s2 + $0x38] sm:$0xff]  }
 0x701   :  { %v6863_v25 = vpop.eup %6862  ;;  %v2258_v53 = vadd.f32 1.0, %v6861_v24  ;;  %6880 = vrcp.f32 %v2257_v44  ;;  %v8725_v44 = vld [vmem:[%s9895_s4] sm:$0xff]  }
 0x702   :  { %v6865_v10 = vpop.eup %6864  ;;  %v2291_v55 = vmul.f32 %v6863_v25, %v8584_v62  ;;  %6882 = vrcp.f32 %v2260_v29  ;;  %v8672_v25 = vld [vmem:[%s9892_s2 + $0x8] sm:$0xff]  }
 0x703   :  { %v6867_v59 = vpop.eup %6866  ;;  %v2289_v47 = vmul.f32 %v6865_v10, %v8586_v14  ;;  %6884 = vrcp.f32 %v2258_v53  ;;  %v8680_v10 = vld [vmem:[%s9892_s2 + $0x10] sm:$0xff]   ;;  %v8768_v29 = vld [vmem:[%s9895_s4 + $0x28] sm:$0xff]   ;;  %v6501_v53 = vld [vmem:[%s9896_s5] sm:$0xff]  }
 0x704   :  { %v6869_v6 = vpop.eup %6868  ;;  %v2292_v22 = vmul.f32 %v6867_v59, %v8589_v20  ;;  %v10080_v59 = vmov 0  }
 0x705   :  { %v6871_v39 = vpop.eup %6870  ;;  %v2290_v5 = vmul.f32 %v6869_v6, %v8592_v33  ;;  %v8734_v6 = vld [vmem:[%s9895_s4 + $0x8] sm:$0xff]  }
 0x706   :  { %v6873_v34 = vpop.eup %6872  ;;  %v2295_v13 = vmul.f32 %v6871_v39, %v6847_v7  ;;  %v8776_v39 = vld [vmem:[%s9895_s4 + $0x30] sm:$0xff]  }
 0x707   :  { %v6875_v21 = vpop.eup %6874  ;;  %v2293_v17 = vmul.f32 %v6873_v34, %v6849_v49  ;;  %v6502_v34 = vld [vmem:[%s9896_s5 + $0x8] sm:$0xff]  }
 0x708   :  { %v6877_v31 = vpop.eup %6876  ;;  %v8656_v40 = vadd.f32 %v2295_v13, %v2291_v55  ;;  %v2296_v62 = vmul.f32 %v6875_v21, %v6851_v2  ;;  %v8760_v55 = vld [vmem:[%s9895_s4 + $0x20] sm:$0xff]   ;;  %v6504_v13 = vld [vmem:[%s9896_s5 + $0x18] sm:$0xff]  }
 0x709   :  { %v8658_v48 = vadd.f32 %v2293_v17, %v2289_v47  ;;  %v2294_v14 = vmul.f32 %v6877_v31, %v6853_v37  ;;  %v8784_v47 = vld [vmem:[%s9895_s4 + $0x38] sm:$0xff]   ;;  %v6505_v21 = vld [vmem:[%s9896_s5 + $0x20] sm:$0xff]   ;;  %v6507_v17 = vld [vmem:[%s9896_s5 + $0x30] sm:$0xff]  }
 0x70a   :  { %6886 = vtanh.f32 %v8656_v40  ;;  %v8661_v11 = vadd.f32 %v2296_v62, %v2292_v22  ;;  %v6879_v33 = vpop.eup %6878  ;;  %v6503_v22 = vld [vmem:[%s9896_s5 + $0x10] sm:$0xff]   ;;  %v6508_v31 = vld [vmem:[%s9896_s5 + $0x38] sm:$0xff]   ;;  %v10081_v62 = vld [vmem:[#allocation48_spill] sm:$0xff] }
 0x70b   :  { %6888 = vtanh.f32 %v8658_v48  ;;  %v8664_v20 = vadd.f32 %v2294_v14, %v2290_v5  ;;  %v6881_v61 = vpop.eup %6880  ;;  %v6506_v5 = vld [vmem:[%s9896_s5 + $0x28] sm:$0xff]   ;;  %v643_v14 = vadd.f32 %v10081_v62, %v8184_v16 }
 0x70c   :  { %6890 = vtanh.f32 %v8661_v11  ;;  %v6883_v43 = vpop.eup %6882 }
 0x70d   :  { %6892 = vtanh.f32 %v8664_v20  ;;  %v6885_v41 = vpop.eup %6884 }
 0x714   :  { %v6887_v60 = vpop.eup %6886 }
 0x715   :  { %v6889_v7 = vpop.eup %6888  ;;  %v2307_v2 = vmul.f32 %v6887_v60, %v6879_v33  ;;  %v10082_v33 = vld [vmem:[#allocation40_spill] sm:$0xff] }
 0x716   :  { %v6891_v63 = vpop.eup %6890  ;;  %v2305_v28 = vmul.f32 %v6889_v7, %v6881_v61  ;;  %v633_v61 = vadd.f32 %v10082_v33, %v8144_v27 }
 0x717   :  { %v6893_v49 = vpop.eup %6892  ;;  %v2308_v37 = vmul.f32 %v6891_v63, %v6883_v43 }
 0x718   :  { %v2306_v0 = vmul.f32 %v6893_v49, %v6885_v41  ;;  %v10083_v41 = vld [vmem:[#allocation52_spill] sm:$0xff] }
 0x719   :  { %v2332_v18 = vpack.c.bf16 %v2308_v37, %v2307_v2  ;;  %v647_v60 = vadd.f32 %v10083_v41, %v8186_v50  ;;  %v10084_v49 = vld [vmem:[#allocation44_spill] sm:$0xff] }
 0x71a   :  { %v2331_v24 = vpack.c.bf16 %v2306_v0, %v2305_v28  ;;  %v637_v2 = vadd.f32 %v10084_v49, %v8164_v58  ;;  %v10088_v41 = vld [vmem:[#allocation60_spill] sm:$0xff] }
 0x71c   :  { %6258 = vmatprep.subr.bf16.mxu0 %v2331_v24 }
 0x71d   :  { %6259 = vmatpush3.bf16.msra.mxu0 %v2331_v24 }
 0x71e   :  { %6260 = vmatprep.subr.bf16.mxu0 %v2332_v18 }
 0x721   :  { %6261 = vmatpush3.bf16.msra.mxu0 %v2332_v18 }
 0x722   :  { %3004 = vmatprep.subr.bf16.mxu0 %v8342_v38  ;;  %v8689_v38 = vld [vmem:[%s9892_s2 + $0x18] sm:$0xff]  }
 0x724   :  { %6263 = vmatmul.mubr.msk.bf16.vlgmr.msra.gmra.mrb[112].mxu0 %vm911_vm2, %v8672_v25 }
 0x725   :  { %3005 = vmatpush1.bf16.msra.mxu0 %v8270_v57  ;;  %6266 = vmatprep.mubr.msk.bf16.mxu0 %vm911_vm2, %v8680_v10  ;;  %v8696_v57 = vld [vmem:[%s9892_s2 + $0x20] sm:$0xff]  }
 0x726   :  { %3006 = vmatprep.subr.bf16.mxu0 %v8340_v9  ;;  %v8710_v9 = vld [vmem:[%s9892_s2 + $0x30] sm:$0xff]  }
 0x729   :  { %3007 = vmatpush1.bf16.msra.mxu0 %v8268_v36  ;;  %v8703_v36 = vld [vmem:[%s9892_s2 + $0x28] sm:$0xff]  }
 0x72a   :  { %3230 = vmatprep.subr.bf16.mxu0 %v2331_v24 }
 0x72c   :  { %6267 = vmatmul.mubr.msk.bf16.gmra.mrb[116].mxu0 %vm911_vm2, %v8689_v38 }
 0x72d   :  { %6270 = vmatprep.mubr.msk.bf16.mxu0 %vm911_vm2, %v8696_v57 }
 0x734   :  { %6271 = vmatmul.mubr.msk.bf16.gmra.mrb[120].mxu0 %vm911_vm2, %v8703_v36 }
 0x735   :  { %6274 = vmatprep.mubr.msk.bf16.mxu0 %vm911_vm2, %v8710_v9 }
 0x73c   :  { %6275 = vmatmul.mubr.msk.bf16.gmra.mrb[124].mxu0 %vm911_vm2, %v8717_v52 }
 0x73d   :  { %3036 = vmatprep.mubr.bf16.mxu0 %v10080_v59 }
 0x744   :  { %5777 = vmatmul.mubr.msk.bf16.vlgmr.msra.gmra.mrb[128].mxu0 %vm911_vm2, %v8725_v44 }
 0x745   :  { %3231 = vmatpush1.bf16.msra.mxu0 %v8598_v23  ;;  %3046 = vmatprep.mubr.bf16.mxu0 %v10080_v59  ;;  %v8744_v23 = vld [vmem:[%s9895_s4 + $0x10] sm:$0xff]  }
 0x746   :  { %3232 = vmatprep.subr.bf16.mxu0 %v2332_v18 }
 0x749   :  { %3233 = vmatpush1.bf16.msra.mxu0 %v8596_v35  ;;  %v8752_v35 = vld [vmem:[%s9895_s4 + $0x18] sm:$0xff]  }
 0x74a   :  { %6298 = vmatprep.subr.bf16.mxu0 %v10080_v59 }
 0x74c   :  { %5778 = vmatmul.mubr.msk.bf16.gmra.mrb[132].mxu0 %vm911_vm2, %v8734_v6 }
 0x74d   :  { %3056 = vmatprep.mubr.bf16.mxu0 %v10080_v59 }
 0x754   :  { %5779 = vmatmul.mubr.msk.bf16.gmra.mrb[136].mxu0 %vm911_vm2, %v8744_v23 }
 0x755   :  { %3066 = vmatprep.mubr.bf16.mxu0 %v10080_v59 }
 0x75c   :  { %5780 = vmatmul.mubr.msk.bf16.gmra.mrb[140].mxu0 %vm911_vm2, %v8752_v35 }
 0x75d   :  { %3076 = vmatprep.mubr.bf16.mxu0 %v10080_v59 }
 0x764   :  { %5781 = vmatmul.mubr.msk.bf16.gmra.mrb[144].mxu0 %vm911_vm2, %v8760_v55 }
 0x765   :  { %3086 = vmatprep.mubr.bf16.mxu0 %v10080_v59 }
 0x76c   :  { %5782 = vmatmul.mubr.msk.bf16.gmra.mrb[148].mxu0 %vm911_vm2, %v8768_v29 }
 0x76d   :  { %3096 = vmatprep.mubr.bf16.mxu0 %v10080_v59 }
 0x774   :  { %5783 = vmatmul.mubr.msk.bf16.gmra.mrb[152].mxu0 %vm911_vm2, %v8776_v39 }
 0x775   :  { %3106 = vmatprep.mubr.bf16.mxu0 %v10080_v59 }
 0x77c   :  { %5784 = vmatmul.mubr.msk.bf16.gmra.mrb[156].mxu0 %vm911_vm2, %v8784_v47 }
 0x77d   :  { %3262 = vmatprep.mubr.bf16.mxu0 %v10080_v59 }
 0x784   :  { %5793 = vmatmul.mubr.msk.bf16.vlgmr.msra.gmra.mrb[160].mxu0 %vm911_vm2, %v8725_v44 }
 0x785   :  { %3272 = vmatprep.mubr.bf16.mxu0 %v10080_v59  ;;  %6299 = vmatpush3.bf16.msra.mxu0 %v10080_v59 }
 0x78c   :  { %5794 = vmatmul.mubr.msk.bf16.gmra.mrb[164].mxu0 %vm911_vm2, %v8734_v6 }
 0x78d   :  { %3282 = vmatprep.mubr.bf16.mxu0 %v10080_v59 }
 0x794   :  { %5795 = vmatmul.mubr.msk.bf16.gmra.mrb[168].mxu0 %vm911_vm2, %v8744_v23 }
 0x795   :  { %3292 = vmatprep.mubr.bf16.mxu0 %v10080_v59 }
 0x79c   :  { %5796 = vmatmul.mubr.msk.bf16.gmra.mrb[172].mxu0 %vm911_vm2, %v8752_v35 }
 0x79d   :  { %3302 = vmatprep.mubr.bf16.mxu0 %v10080_v59 }
 0x7a4   :  { %5797 = vmatmul.mubr.msk.bf16.gmra.mrb[176].mxu0 %vm911_vm2, %v8760_v55 }
 0x7a5   :  { %3312 = vmatprep.mubr.bf16.mxu0 %v10080_v59 }
 0x7ac   :  { %5798 = vmatmul.mubr.msk.bf16.gmra.mrb[180].mxu0 %vm911_vm2, %v8768_v29 }
 0x7ad   :  { %3322 = vmatprep.mubr.bf16.mxu0 %v10080_v59 }
 0x7b4   :  { %5799 = vmatmul.mubr.msk.bf16.gmra.mrb[184].mxu0 %vm911_vm2, %v8776_v39 }
 0x7b5   :  { %3332 = vmatprep.mubr.bf16.mxu0 %v10080_v59 }
 0x7bc   :  { %5800 = vmatmul.mubr.msk.bf16.gmra.mrb[188].mxu0 %vm911_vm2, %v8784_v47 }
 0x7bd   :  { %6300 = vmatprep.mubr.msk.bf16.mxu0 %vm911_vm2, %v6501_v53 }
 0x7c4   :  { %6301 = vmatmul.mubr.msk.bf16.vlgmr.msra.gmra.mrb[192].mxu0 %vm911_vm2, %v6502_v34 }
 0x7c5   :  { %6304 = vmatprep.mubr.msk.bf16.mxu0 %vm911_vm2, %v6503_v22 }
 0x7cc   :  { %6305 = vmatmul.mubr.msk.bf16.gmra.mrb[196].mxu0 %vm911_vm2, %v6504_v13 }
 0x7cd   :  { %6308 = vmatprep.mubr.msk.bf16.mxu0 %vm911_vm2, %v6505_v21  ;;  %v10085_v21 = vld [vmem:[#allocation64_spill] sm:$0xff] }
 0x7d4   :  { %6309 = vmatmul.mubr.msk.bf16.gmra.mrb[200].mxu0 %vm911_vm2, %v6506_v5  ;;  %v663_v5 = vadd.f32 %v10085_v21, %v8202_v19  ;;  %v10090_v21 = vld [vmem:[#allocation72_spill] sm:$0xff] }
 0x7d5   :  { %6312 = vmatprep.mubr.msk.bf16.mxu0 %vm911_vm2, %v6507_v17  ;;  %v10086_v17 = vld [vmem:[#allocation56_spill] sm:$0xff] }
 0x7dc   :  { %6313 = vmatmul.mubr.msk.bf16.gmra.mrb[204].mxu0 %vm911_vm2, %v6508_v31  ;;  %v653_v31 = vadd.f32 %v10086_v17, %v8146_v54 }
 0x7dd   :  { %6340 = vmatprep.mubr.msk.bf16.mxu0 %vm911_vm2, %v6501_v53 }
 0x7f7   :  { %v6264_v43 = vpop.f32.mrb[112].mxu0 }
 0x7f8   :  { %v2432_v7 = vadd.f32 %v6264_v43, %v643_v14  ;;  %v2367_v63 = vpop.f32.mrb[113].mxu0  ;;  %v10087_v14 = vld [vmem:[#allocation68_spill] sm:$0xff] }
 0x7f9   :  { %v2430_v37 = vadd.f32 %v2367_v63, %v633_v61  ;;  %v6265_v28 = vpop.f32.mrb[114].mxu0  ;;  %v667_v33 = vadd.f32 %v10087_v14, %v8206_v46  ;;  %v10091_v14 = vld [vmem:[#allocation84_spill] sm:$0xff] }
 0x7fa   :  { %v5739_v0 = vmul.f32 -1.442695, %v2432_v7  ;;  %v2433_v18 = vadd.f32 %v6265_v28, %v647_v60  ;;  %v2370_v24 = vpop.f32.mrb[115].mxu0  ;;  %v657_v60 = vadd.f32 %v10088_v41, %v8166_v51 }
 0x7fb   :  { %v5737_v53 = vmul.f32 -1.442695, %v2430_v37  ;;  %v2431_v34 = vadd.f32 %v2370_v24, %v637_v2 }
 0x7fc   :  { %6894 = vpow2.f32 %v5739_v0  ;;  %v5740_v22 = vmul.f32 -1.442695, %v2433_v18 }
 0x7fd   :  { %6896 = vpow2.f32 %v5737_v53  ;;  %v5738_v13 = vmul.f32 -1.442695, %v2431_v34  ;;  %v10089_v34 = vld [vmem:[#allocation80_spill] sm:$0xff] }
 0x7fe   :  { %6898 = vpow2.f32 %v5740_v22  ;;  %v683_v22 = vadd.f32 %v10089_v34, %v8232_v32 }
 0x7ff   :  { %6900 = vpow2.f32 %v5738_v13  ;;  %v6268_v62 = vpop.f32.mrb[116].mxu0 }
 0x800   :  { %v2436_v61 = vadd.f32 %v6268_v62, %v663_v5  ;;  %v2383_v43 = vpop.f32.mrb[117].mxu0  ;;  %v673_v5 = vadd.f32 %v10090_v21, %v8210_v42 }
 0x801   :  { %v2434_v7 = vadd.f32 %v2383_v43, %v653_v31  ;;  %v6269_v63 = vpop.f32.mrb[118].mxu0 }
 0x802   :  { %v5743_v49 = vmul.f32 -1.442695, %v2436_v61  ;;  %v2437_v2 = vadd.f32 %v6269_v63, %v667_v33  ;;  %v2386_v37 = vpop.f32.mrb[119].mxu0  ;;  %v687_v33 = vadd.f32 %v10091_v14, %v8234_v12 }
 0x803   :  { %v5741_v28 = vmul.f32 -1.442695, %v2434_v7  ;;  %v2435_v0 = vadd.f32 %v2386_v37, %v657_v60  ;;  %v10092_v7 = vld [vmem:[#allocation76_spill] sm:$0xff] }
 0x804   :  { %6902 = vpow2.f32 %v5743_v49  ;;  %v5744_v18 = vmul.f32 -1.442695, %v2437_v2  ;;  %v677_v63 = vadd.f32 %v10092_v7, %v8216_v26 }
 0x805   :  { %6904 = vpow2.f32 %v5741_v28  ;;  %v5742_v24 = vmul.f32 -1.442695, %v2435_v0 }
 0x806   :  { %v6895_v53 = vpop.eup %6894  ;;  %6906 = vpow2.f32 %v5744_v18 }
 0x807   :  { %v6897_v13 = vpop.eup %6896  ;;  %v2484_v17 = vadd.f32 1.0, %v6895_v53  ;;  %6908 = vpow2.f32 %v5742_v24  ;;  %v6272_v31 = vpop.f32.mrb[120].mxu0 }
 0x808   :  { %v6899_v62 = vpop.eup %6898  ;;  %v2482_v61 = vadd.f32 1.0, %v6897_v13  ;;  %v2440_v43 = vadd.f32 %v6272_v31, %v683_v22  ;;  %v2399_v41 = vpop.f32.mrb[121].mxu0  ;;  %v10093_v31 = vld [vmem:[#allocation96_spill] sm:$0xff] }
 0x809   :  { %v6901_v60 = vpop.eup %6900  ;;  %6910 = vrcp.f32 %v2484_v17  ;;  %v2485_v49 = vadd.f32 1.0, %v6899_v62  ;;  %v2438_v2 = vadd.f32 %v2399_v41, %v673_v5  ;;  %v6273_v37 = vpop.f32.mrb[122].mxu0  ;;  %v703_v14 = vadd.f32 %v10093_v31, %v8244_v15  ;;  %v10094_v5 = vld [vmem:[#allocation88_spill] sm:$0xff] }
 0x80a   :  { %6912 = vrcp.f32 %v2482_v61  ;;  %v2483_v28 = vadd.f32 1.0, %v6901_v60  ;;  %v5747_v0 = vmul.f32 -1.442695, %v2440_v43  ;;  %v2441_v18 = vadd.f32 %v6273_v37, %v687_v33  ;;  %v2402_v24 = vpop.f32.mrb[123].mxu0  ;;  %v10095_v41 = vld [vmem:[#allocation100_spill] sm:$0xff] }
 0x80b   :  { %6914 = vrcp.f32 %v2485_v49  ;;  %v5745_v53 = vmul.f32 -1.442695, %v2438_v2  ;;  %v2439_v34 = vadd.f32 %v2402_v24, %v677_v63  ;;  %v693_v62 = vadd.f32 %v10094_v5, %v8220_v4  ;;  %v10096_v37 = vld [vmem:[#allocation92_spill] sm:$0xff] }
 0x80c   :  { %6916 = vrcp.f32 %v2483_v28  ;;  %v5748_v13 = vmul.f32 -1.442695, %v2441_v18  ;;  %v707_v60 = vadd.f32 %v10095_v41, %v8246_v8  ;;  %v697_v28 = vadd.f32 %v10096_v37, %v10014_v1 }
 0x80d   :  { %6918 = vpow2.f32 %v5747_v0  ;;  %v5746_v22 = vmul.f32 -1.442695, %v2439_v34 }
 0x80e   :  { %v6903_v21 = vpop.eup %6902  ;;  %6920 = vpow2.f32 %v5745_v53 }
 0x80f   :  { %v6905_v17 = vpop.eup %6904  ;;  %v2488_v61 = vadd.f32 1.0, %v6903_v21  ;;  %6922 = vpow2.f32 %v5748_v13  ;;  %v6276_v33 = vpop.f32.mrb[124].mxu0 }
 0x810   :  { %v6907_v43 = vpop.eup %6906  ;;  %v2486_v7 = vadd.f32 1.0, %v6905_v17  ;;  %6924 = vpow2.f32 %v5746_v22  ;;  %v2444_v63 = vadd.f32 %v6276_v33, %v703_v14  ;;  %v2415_v49 = vpop.f32.mrb[125].mxu0 }
 0x811   :  { %v6909_v2 = vpop.eup %6908  ;;  %6926 = vrcp.f32 %v2488_v61  ;;  %v2489_v0 = vadd.f32 1.0, %v6907_v43  ;;  %v2442_v18 = vadd.f32 %v2415_v49, %v693_v62  ;;  %v6277_v24 = vpop.f32.mrb[126].mxu0 }
 0x812   :  { %6928 = vrcp.f32 %v2486_v7  ;;  %v2487_v53 = vadd.f32 1.0, %v6909_v2  ;;  %v2445_v34 = vadd.f32 %v6277_v24, %v707_v60  ;;  %v2418_v13 = vpop.f32.mrb[127].mxu0 }
 0x813   :  { %v6911_v21 = vpop.eup %6910  ;;  %6930 = vrcp.f32 %v2489_v0  ;;  %v2443_v31 = vadd.f32 %v2418_v13, %v697_v28 }
 0x814   :  { %v6913_v5 = vpop.eup %6912  ;;  %6932 = vrcp.f32 %v2487_v53 }
 0x815   :  { %v6915_v22 = vpop.eup %6914  ;;  %6934 = vtanh.f32 %v2444_v63 }
 0x816   :  { %v6917_v14 = vpop.eup %6916  ;;  %6936 = vtanh.f32 %v2442_v18 }
 0x817   :  { %v6919_v17 = vpop.eup %6918  ;;  %6938 = vtanh.f32 %v2445_v34  ;;  %v8878_v33 = vpop.f32.mrb[128].mxu0 }
 0x818   :  { %v6921_v61 = vpop.eup %6920  ;;  %6940 = vtanh.f32 %v2443_v31  ;;  %v8880_v62 = vpop.f32.mrb[129].mxu0  ;;  %v2492_v37 = vadd.f32 1.0, %v6919_v17 }
 0x819   :  { %10097 = vst [vmem:[#allocation35_spill] sm:$0xff] %v8880_v62  ;;  %v6923_v43 = vpop.eup %6922  ;;  %v8882_v41 = vpop.f32.mrb[130].mxu0  ;;  %v2490_v28 = vadd.f32 1.0, %v6921_v61 }
 0x81a   :  { %v6925_v60 = vpop.eup %6924  ;;  %v8884_v7 = vpop.f32.mrb[131].mxu0  ;;  %v2493_v24 = vadd.f32 1.0, %v6923_v43  ;;  %6942 = vrcp.f32 %v2492_v37 }
 0x81b   :  { %10098 = vst [vmem:[#allocation30_spill] sm:$0xff] %v8884_v7  ;;  %v6927_v49 = vpop.eup %6926  ;;  %v2491_v13 = vadd.f32 1.0, %v6925_v60  ;;  %6944 = vrcp.f32 %v2490_v28 }
 0x81c   :  { %v6929_v2 = vpop.eup %6928  ;;  %v2524_v18 = vmul.f32 %v6927_v49, %v8656_v40  ;;  %6946 = vrcp.f32 %v2493_v24 }
 0x81d   :  { %v6931_v63 = vpop.eup %6930  ;;  %v2522_v34 = vmul.f32 %v6929_v2, %v8658_v48  ;;  %6948 = vrcp.f32 %v2491_v13 }
 0x81e   :  { %v6933_v0 = vpop.eup %6932  ;;  %v2525_v1 = vmul.f32 %v6931_v63, %v8661_v11 }
 0x81f   :  { %v6935_v53 = vpop.eup %6934  ;;  %v8888_v31 = vpop.f32.mrb[132].mxu0  ;;  %v2523_v61 = vmul.f32 %v6933_v0, %v8664_v20 }
 0x820   :  { %v6937_v62 = vpop.eup %6936  ;;  %v2528_v7 = vmul.f32 %v6935_v53, %v6911_v21  ;;  %v8891_v8 = vpop.f32.mrb[133].mxu0 }
 0x821   :  { %v6939_v17 = vpop.eup %6938  ;;  %v2526_v4 = vmul.f32 %v6937_v62, %v6913_v5  ;;  %v8894_v40 = vpop.f32.mrb[134].mxu0 }
 0x822   :  { %v6941_v43 = vpop.eup %6940  ;;  %v8896_v48 = vadd.f32 %v2528_v7, %v2524_v18  ;;  %v2529_v60 = vmul.f32 %v6939_v17, %v6915_v22  ;;  %v8898_v49 = vpop.f32.mrb[135].mxu0 }
 0x823   :  { %v8900_v11 = vadd.f32 %v2526_v4, %v2522_v34  ;;  %v2527_v21 = vmul.f32 %v6941_v43, %v6917_v14 }
 0x824   :  { %6950 = vtanh.f32 %v8896_v48  ;;  %v8903_v2 = vadd.f32 %v2529_v60, %v2525_v1  ;;  %v6943_v4 = vpop.eup %6942 }
 0x825   :  { %6952 = vtanh.f32 %v8900_v11  ;;  %v8906_v20 = vadd.f32 %v2527_v21, %v2523_v61  ;;  %v6945_v7 = vpop.eup %6944 }
 0x826   :  { %6954 = vtanh.f32 %v8903_v2  ;;  %v6947_v1 = vpop.eup %6946 }
 0x827   :  { %6956 = vtanh.f32 %v8906_v20  ;;  %v8910_v5 = vpop.f32.mrb[136].mxu0  ;;  %v6949_v37 = vpop.eup %6948 }
 0x828   :  { %v8912_v22 = vpop.f32.mrb[137].mxu0 }
 0x829   :  { %10099 = vst [vmem:[#allocation8_spill] sm:$0xff] %v8912_v22  ;;  %v8914_v62 = vpop.f32.mrb[138].mxu0 }
 0x82a   :  { %v8916_v14 = vpop.f32.mrb[139].mxu0 }
 0x82b   :  { %10100 = vst [vmem:[#allocation4_spill] sm:$0xff] %v8916_v14 }
 0x82e   :  { %v6951_v63 = vpop.eup %6950 }
 0x82f   :  { %v6953_v28 = vpop.eup %6952  ;;  %v8918_v0 = vpop.f32.mrb[140].mxu0  ;;  %v2540_v13 = vmul.f32 %v6951_v63, %v6943_v4 }
 0x830   :  { %v6955_v18 = vpop.eup %6954  ;;  %v8920_v24 = vpop.f32.mrb[141].mxu0  ;;  %v2538_v43 = vmul.f32 %v6953_v28, %v6945_v7 }
 0x831   :  { %10101 = vst [vmem:[#allocation10_spill] sm:$0xff] %v8920_v24  ;;  %v6957_v53 = vpop.eup %6956  ;;  %v8922_v34 = vpop.f32.mrb[142].mxu0  ;;  %v2541_v17 = vmul.f32 %v6955_v18, %v6947_v1 }
 0x832   :  { %v8924_v61 = vpop.f32.mrb[143].mxu0  ;;  %v2539_v60 = vmul.f32 %v6957_v53, %v6949_v37 }
 0x833   :  { %v8926_v21 = vpack.c.bf16 %v2541_v17, %v2540_v13 }
 0x834   :  { %v8928_v14 = vpack.c.bf16 %v2539_v60, %v2538_v43 }
 0x836   :  { %6278 = vmatprep.subr.bf16.mxu1 %v8928_v14 }
 0x837   :  { %6279 = vmatpush3.bf16.msra.mxu1 %v8928_v14  ;;  %v8932_v22 = vpop.f32.mrb[144].mxu0 }
 0x838   :  { %6280 = vmatprep.subr.bf16.mxu1 %v8926_v21  ;;  %v8935_v24 = vpop.f32.mrb[145].mxu0 }
 0x839   :  { %10102 = vst [vmem:[#allocation6_spill] sm:$0xff] %v8935_v24  ;;  %v8937_v4 = vpop.f32.mrb[146].mxu0 }
 0x83a   :  { %v8939_v1 = vpop.f32.mrb[147].mxu0 }
 0x83b   :  { %10103 = vst [vmem:[#allocation16_spill] sm:$0xff] %v8939_v1  ;;  %6281 = vmatpush3.bf16.msra.mxu1 %v8926_v21 }
 0x83c   :  { %3117 = vmatprep.subr.bf16.mxu1 %v8526_v45 }
 0x83e   :  { %6283 = vmatmul.mubr.msk.bf16.vlgmr.msra.gmra.mrb[112].mxu1 %vm911_vm2, %v8672_v25 }
 0x83f   :  { %3118 = vmatpush1.bf16.msra.mxu1 %v8414_v56  ;;  %v8946_v7 = vpop.f32.mrb[148].mxu0  ;;  %6286 = vmatprep.mubr.msk.bf16.mxu1 %vm911_vm2, %v8680_v10 }
 0x840   :  { %3119 = vmatprep.subr.bf16.mxu1 %v8524_v30  ;;  %v8951_v37 = vpop.f32.mrb[149].mxu0 }
 0x841   :  { %v8953_v63 = vpop.f32.mrb[150].mxu0 }
 0x842   :  { %v8955_v28 = vpop.f32.mrb[151].mxu0 }
 0x843   :  { %10104 = vst [vmem:[#allocation12_spill] sm:$0xff] %v8955_v28  ;;  %3120 = vmatpush1.bf16.msra.mxu1 %v8412_v3 }
 0x846   :  { %6287 = vmatmul.mubr.msk.bf16.gmra.mrb[116].mxu1 %vm911_vm2, %v8689_v38 }
 0x847   :  { %v8960_v45 = vpop.f32.mrb[152].mxu0  ;;  %6290 = vmatprep.mubr.msk.bf16.mxu1 %vm911_vm2, %v8696_v57 }
 0x848   :  { %v8964_v56 = vpop.f32.mrb[153].mxu0 }
 0x849   :  { %10105 = vst [vmem:[#allocation18_spill] sm:$0xff] %v8964_v56  ;;  %v8966_v25 = vpop.f32.mrb[154].mxu0 }
 0x84a   :  { %v8968_v30 = vpop.f32.mrb[155].mxu0 }
 0x84b   :  { %10106 = vst [vmem:[#allocation14_spill] sm:$0xff] %v8968_v30 }
 0x84e   :  { %6291 = vmatmul.mubr.msk.bf16.gmra.mrb[120].mxu1 %vm911_vm2, %v8703_v36 }
 0x84f   :  { %v8972_v10 = vpop.f32.mrb[156].mxu0  ;;  %6294 = vmatprep.mubr.msk.bf16.mxu1 %vm911_vm2, %v8710_v9 }
 0x850   :  { %v8976_v3 = vpop.f32.mrb[157].mxu0 }
 0x851   :  { %10107 = vst [vmem:[#allocation24_spill] sm:$0xff] %v8976_v3  ;;  %v8978_v38 = vpop.f32.mrb[158].mxu0 }
 0x852   :  { %v8980_v18 = vpop.f32.mrb[159].mxu0 }
 0x853   :  { %10108 = vst [vmem:[#allocation20_spill] sm:$0xff] %v8980_v18 }
 0x856   :  { %6295 = vmatmul.mubr.msk.bf16.gmra.mrb[124].mxu1 %vm911_vm2, %v8717_v52 }
 0x857   :  { %v8984_v57 = vpop.f32.mrb[160].mxu0  ;;  %3149 = vmatprep.mubr.bf16.mxu1 %v10080_v59 }
 0x858   :  { %10109 = vst [vmem:[#allocation26_spill] sm:$0xff] %v8984_v57  ;;  %v8987_v53 = vpop.f32.mrb[161].mxu0 }
 0x859   :  { %10110 = vst [vmem:[#allocation22_spill] sm:$0xff] %v8987_v53  ;;  %v8989_v36 = vpop.f32.mrb[162].mxu0 }
 0x85a   :  { %10111 = vst [vmem:[#allocation33_spill] sm:$0xff] %v8989_v36  ;;  %v8991_v13 = vpop.f32.mrb[163].mxu0 }
 0x85b   :  { %10112 = vst [vmem:[#allocation28_spill] sm:$0xff] %v8991_v13 }
 0x85e   :  { %5785 = vmatmul.mubr.msk.bf16.vlgmr.msra.gmra.mrb[128].mxu1 %vm911_vm2, %v8725_v44 }
 0x85f   :  { %v8995_v9 = vpop.f32.mrb[164].mxu0  ;;  %3159 = vmatprep.mubr.bf16.mxu1 %v10080_v59 }
 0x860   :  { %10113 = vst [vmem:[#allocation36_spill] sm:$0xff] %v8995_v9  ;;  %v8998_v17 = vpop.f32.mrb[165].mxu0 }
 0x861   :  { %10114 = vst [vmem:[#allocation31_spill] sm:$0xff] %v8998_v17  ;;  %v9000_v52 = vpop.f32.mrb[166].mxu0 }
 0x862   :  { %10115 = vst [vmem:[#allocation9_spill] sm:$0xff] %v9000_v52  ;;  %v9002_v43 = vpop.f32.mrb[167].mxu0 }
 0x863   :  { %10116 = vst [vmem:[#allocation5_spill] sm:$0xff] %v9002_v43 }
 0x866   :  { %5786 = vmatmul.mubr.msk.bf16.gmra.mrb[132].mxu1 %vm911_vm2, %v8734_v6 }
 0x867   :  { %v9006_v60 = vpop.f32.mrb[168].mxu0  ;;  %3169 = vmatprep.mubr.bf16.mxu1 %v10080_v59 }
 0x868   :  { %10117 = vst [vmem:[#allocation11_spill] sm:$0xff] %v9006_v60  ;;  %v9009_v13 = vpop.f32.mrb[169].mxu0 }
 0x869   :  { %10118 = vst [vmem:[#allocation7_spill] sm:$0xff] %v9009_v13  ;;  %v9011_v44 = vpop.f32.mrb[170].mxu0 }
 0x86a   :  { %10119 = vst [vmem:[#allocation17_spill] sm:$0xff] %v9011_v44  ;;  %v9013_v53 = vpop.f32.mrb[171].mxu0 }
 0x86b   :  { %10120 = vst [vmem:[#allocation13_spill] sm:$0xff] %v9013_v53 }
 0x86e   :  { %5787 = vmatmul.mubr.msk.bf16.gmra.mrb[136].mxu1 %vm911_vm2, %v8744_v23 }
 0x86f   :  { %v9017_v17 = vpop.f32.mrb[172].mxu0  ;;  %3179 = vmatprep.mubr.bf16.mxu1 %v10080_v59 }
 0x870   :  { %10121 = vst [vmem:[#allocation19_spill] sm:$0xff] %v9017_v17  ;;  %v9020_v43 = vpop.f32.mrb[173].mxu0 }
 0x871   :  { %10122 = vst [vmem:[#allocation15_spill] sm:$0xff] %v9020_v43  ;;  %v9022_v6 = vpop.f32.mrb[174].mxu0 }
 0x872   :  { %10123 = vst [vmem:[#allocation25_spill] sm:$0xff] %v9022_v6  ;;  %v9024_v60 = vpop.f32.mrb[175].mxu0 }
 0x873   :  { %10124 = vst [vmem:[#allocation21_spill] sm:$0xff] %v9024_v60 }
 0x876   :  { %5788 = vmatmul.mubr.msk.bf16.gmra.mrb[140].mxu1 %vm911_vm2, %v8752_v35  ;;  %v9044_v35 = vpop.permute.xlu0 %2862 }
 0x877   :  { %v9028_v13 = vpop.f32.mrb[176].mxu0  ;;  %3189 = vmatprep.mubr.bf16.mxu1 %v10080_v59 }
 0x878   :  { %10125 = vst [vmem:[#allocation27_spill] sm:$0xff] %v9028_v13  ;;  %v9031_v53 = vpop.f32.mrb[177].mxu0 }
 0x879   :  { %10126 = vst [vmem:[#allocation23_spill] sm:$0xff] %v9031_v53  ;;  %v9033_v23 = vpop.f32.mrb[178].mxu0  ;;  %v9050_v53 = vpop.permute.xlu1 %2867 }
 0x87a   :  { %10127 = vst [vmem:[#allocation34_spill] sm:$0xff] %v9033_v23  ;;  %v9035_v44 = vpop.f32.mrb[179].mxu0  ;;  %v3043_v9 = vadd.f32 %v8882_v41, %v9050_v53 }
 0x87b   :  { %10128 = vst [vmem:[#allocation29_spill] sm:$0xff] %v9035_v44  ;;  %v9054_v44 = vpop.permute.xlu0 %2882 }
 0x87c   :  { %v3059_v41 = vadd.f32 %v8910_v5, %v9054_v44 }
 0x87e   :  { %5789 = vmatmul.mubr.msk.bf16.gmra.mrb[144].mxu1 %vm911_vm2, %v8760_v55 }
 0x87f   :  { %v9039_v43 = vpop.f32.mrb[180].mxu0  ;;  %3199 = vmatprep.mubr.bf16.mxu1 %v10080_v59 }
 0x880   :  { %10129 = vst [vmem:[#allocation37_spill] sm:$0xff] %v9039_v43  ;;  %v9042_v60 = vpop.f32.mrb[181].mxu0 }
 0x881   :  { %10130 = vst [vmem:[#allocation32_spill] sm:$0xff] %v9042_v60  ;;  %v9046_v13 = vpop.f32.mrb[182].mxu0  ;;  %v9061_v60 = vpop.permute.xlu1 %2887 }
 0x882   :  { %10131 = vst [vmem:[#allocation46_spill] sm:$0xff] %v9046_v13  ;;  %v9048_v6 = vpop.f32.mrb[183].mxu0 }
 0x883   :  { %10132 = vst [vmem:[#allocation38_spill] sm:$0xff] %v9048_v6  ;;  %v9067_v6 = vpop.permute.xlu0 %2872 }
 0x884   :  { %v3049_v52 = vadd.f32 %v8888_v31, %v9067_v6 }
 0x886   :  { %5790 = vmatmul.mubr.msk.bf16.gmra.mrb[148].mxu1 %vm911_vm2, %v8768_v29  ;;  %v9071_v29 = vpop.permute.xlu1 %2877 }
 0x887   :  { %v9056_v55 = vpop.f32.mrb[184].mxu0  ;;  %3209 = vmatprep.mubr.bf16.mxu1 %v10080_v59 }
 0x888   :  { %10133 = vst [vmem:[#allocation49_spill] sm:$0xff] %v9056_v55  ;;  %v9059_v23 = vpop.f32.mrb[185].mxu0 }
 0x889   :  { %10134 = vst [vmem:[#allocation41_spill] sm:$0xff] %v9059_v23  ;;  %v9063_v43 = vpop.f32.mrb[186].mxu0 }
 0x88a   :  { %10135 = vst [vmem:[#allocation62_spill] sm:$0xff] %v9063_v43  ;;  %v9065_v13 = vpop.f32.mrb[187].mxu0  ;;  %v9082_v43 = vpop.permute.xlu0 %2892 }
 0x88b   :  { %10136 = vst [vmem:[#allocation54_spill] sm:$0xff] %v9065_v13  ;;  %v9084_v13 = vpop.permute.xlu1 %2897 }
 0x88e   :  { %5791 = vmatmul.mubr.msk.bf16.gmra.mrb[152].mxu1 %vm911_vm2, %v8776_v39  ;;  %v3039_v39 = vadd.f32 %v8878_v33, %v9044_v35  ;;  %v9095_v57 = vpop.permute.xlu0 %2902 }
 0x88f   :  { %v9073_v17 = vpop.f32.mrb[188].mxu0  ;;  %3219 = vmatprep.mubr.bf16.mxu1 %v10080_v59  ;;  %10141 = vst [vmem:[#allocation81_spill] sm:$0xff] %v9095_v57  ;;  %v9099_v3 = vpop.permute.xlu1 %2907 }
 0x890   :  { %10137 = vst [vmem:[#allocation65_spill] sm:$0xff] %v9073_v17  ;;  %v9076_v55 = vpop.f32.mrb[189].mxu0 }
 0x891   :  { %10138 = vst [vmem:[#allocation57_spill] sm:$0xff] %v9076_v55  ;;  %v9078_v23 = vpop.f32.mrb[190].mxu0  ;;  %v3053_v55 = vadd.f32 %v8894_v40, %v9071_v29 }
 0x892   :  { %10139 = vst [vmem:[#allocation78_spill] sm:$0xff] %v9078_v23  ;;  %v9080_v36 = vpop.f32.mrb[191].mxu0 }
 0x893   :  { %10140 = vst [vmem:[#allocation70_spill] sm:$0xff] %v9080_v36 }
 0x896   :  { %5792 = vmatmul.mubr.msk.bf16.gmra.mrb[156].mxu1 %vm911_vm2, %v8784_v47 }
 0x897   :  { %v6302_v17 = vpop.f32.mrb[192].mxu0  ;;  %3375 = vmatprep.mubr.bf16.mxu1 %v10080_v59 }
 0x898   :  { %v3779_v36 = vadd.f32 %v6302_v17, %v3049_v52  ;;  %v3714_v23 = vpop.f32.mrb[193].mxu0  ;;  %v3069_v17 = vadd.f32 %v8918_v0, %v9082_v43  ;;  %v9103_v52 = vpop.permute.xlu0 %2922 }
 0x899   :  { %v3777_v31 = vadd.f32 %v3714_v23, %v3039_v39  ;;  %v6303_v30 = vpop.f32.mrb[194].mxu0 }
 0x89a   :  { %v5827_v18 = vmul.f32 -1.442695, %v3779_v36  ;;  %v3780_v47 = vadd.f32 %v6303_v30, %v3053_v55  ;;  %v3717_v56 = vpop.f32.mrb[195].mxu0  ;;  %v3073_v36 = vadd.f32 %v8922_v34, %v9084_v13 }
 0x89b   :  { %v5825_v33 = vmul.f32 -1.442695, %v3777_v31  ;;  %v3778_v1 = vadd.f32 %v3717_v56, %v3043_v9 }
 0x89c   :  { %6958 = vpow2.f32 %v5827_v18  ;;  %v5828_v28 = vmul.f32 -1.442695, %v3780_v47  ;;  %v9109_v18 = vpop.permute.xlu1 %2927 }
 0x89d   :  { %6960 = vpow2.f32 %v5825_v33  ;;  %v5826_v40 = vmul.f32 -1.442695, %v3778_v1  ;;  %10142 = vst [vmem:[#allocation73_spill] sm:$0xff] %v9109_v18  ;;  %v3063_v1 = vadd.f32 %v8914_v62, %v9061_v60  ;;  %v9113_v33 = vpop.permute.xlu0 %2912 }
 0x89e   :  { %6962 = vpow2.f32 %v5828_v28 }
 0x89f   :  { %6964 = vpow2.f32 %v5826_v40  ;;  %v6306_v30 = vpop.f32.mrb[196].mxu0 }
 0x8a0   :  { %v3783_v23 = vadd.f32 %v6306_v30, %v3069_v17  ;;  %v3730_v56 = vpop.f32.mrb[197].mxu0  ;;  %v3089_v17 = vadd.f32 %v8946_v7, %v9113_v33  ;;  %v9117_v62 = vpop.permute.xlu1 %2917  ;;  %v3083_v7 = vadd.f32 %v8937_v4, %v9099_v3 }
 0x8a1   :  { %v3781_v9 = vadd.f32 %v3730_v56, %v3059_v41  ;;  %v6307_v0 = vpop.f32.mrb[198].mxu0  ;;  %v3079_v41 = vadd.f32 %v8932_v22, %v9095_v57 }
 0x8a2   :  { %v5831_v28 = vmul.f32 -1.442695, %v3783_v23  ;;  %v3784_v55 = vadd.f32 %v6307_v0, %v3073_v36  ;;  %v3733_v39 = vpop.f32.mrb[199].mxu0 }
 0x8a3   :  { %v5829_v31 = vmul.f32 -1.442695, %v3781_v9  ;;  %v3782_v47 = vadd.f32 %v3733_v39, %v3063_v1  ;;  %v3093_v1 = vadd.f32 %v8953_v63, %v9117_v62 }
 0x8a4   :  { %6966 = vpow2.f32 %v5831_v28  ;;  %v5832_v5 = vmul.f32 -1.442695, %v3784_v55 }
 0x8a5   :  { %6968 = vpow2.f32 %v5829_v31  ;;  %v5830_v34 = vmul.f32 -1.442695, %v3782_v47 }
 0x8a6   :  { %v6959_v40 = vpop.eup %6958  ;;  %6970 = vpow2.f32 %v5832_v5 }
 0x8a7   :  { %v6961_v30 = vpop.eup %6960  ;;  %v3831_v36 = vadd.f32 1.0, %v6959_v40  ;;  %6972 = vpow2.f32 %v5830_v34  ;;  %v6310_v23 = vpop.f32.mrb[200].mxu0 }
 0x8a8   :  { %v6963_v56 = vpop.eup %6962  ;;  %v3829_v9 = vadd.f32 1.0, %v6961_v30  ;;  %v3787_v0 = vadd.f32 %v6310_v23, %v3089_v17  ;;  %v3746_v28 = vpop.f32.mrb[201].mxu0 }
 0x8a9   :  { %v6965_v55 = vpop.eup %6964  ;;  %6974 = vrcp.f32 %v3831_v36  ;;  %v3832_v39 = vadd.f32 1.0, %v6963_v56  ;;  %v3785_v31 = vadd.f32 %v3746_v28, %v3079_v41  ;;  %v6311_v47 = vpop.f32.mrb[202].mxu0  ;;  %v3099_v56 = vadd.f32 %v8960_v45, %v9103_v52 }
 0x8aa   :  { %6976 = vrcp.f32 %v3829_v9  ;;  %v3830_v22 = vadd.f32 1.0, %v6965_v55  ;;  %v5835_v5 = vmul.f32 -1.442695, %v3787_v0  ;;  %v3788_v34 = vadd.f32 %v6311_v47, %v3093_v1  ;;  %v3749_v40 = vpop.f32.mrb[203].mxu0  ;;  %v9125_v17 = vpop.permute.xlu0 %2932 }
 0x8ab   :  { %6978 = vrcp.f32 %v3832_v39  ;;  %v5833_v24 = vmul.f32 -1.442695, %v3785_v31  ;;  %v3786_v57 = vadd.f32 %v3749_v40, %v3083_v7  ;;  %v3109_v4 = vadd.f32 %v8972_v10, %v9125_v17  ;;  %v9129_v36 = vpop.permute.xlu1 %2937 }
 0x8ac   :  { %6980 = vrcp.f32 %v3830_v22  ;;  %v5836_v63 = vmul.f32 -1.442695, %v3788_v34  ;;  %10143 = vst [vmem:[#allocation94_spill] sm:$0xff] %v9129_v36  ;;  %v3113_v28 = vadd.f32 %v8978_v38, %v9129_v36 }
 0x8ad   :  { %6982 = vpow2.f32 %v5835_v5  ;;  %v5834_v30 = vmul.f32 -1.442695, %v3786_v57 }
 0x8ae   :  { %v6967_v23 = vpop.eup %6966  ;;  %6984 = vpow2.f32 %v5833_v24  ;;  %v3103_v24 = vadd.f32 %v8966_v25, %v9109_v18 }
 0x8af   :  { %v6969_v41 = vpop.eup %6968  ;;  %v3835_v1 = vadd.f32 1.0, %v6967_v23  ;;  %6986 = vpow2.f32 %v5836_v63  ;;  %v6314_v9 = vpop.f32.mrb[204].mxu0 }
 0x8b0   :  { %v6971_v0 = vpop.eup %6970  ;;  %v3833_v55 = vadd.f32 1.0, %v6969_v41  ;;  %6988 = vpow2.f32 %v5834_v30  ;;  %v3791_v57 = vadd.f32 %v6314_v9, %v3109_v4  ;;  %v3762_v7 = vpop.f32.mrb[205].mxu0 }
 0x8b1   :  { %v6973_v39 = vpop.eup %6972  ;;  %6990 = vrcp.f32 %v3835_v1  ;;  %v3836_v10 = vadd.f32 1.0, %v6971_v0  ;;  %v3789_v31 = vadd.f32 %v3762_v7, %v3099_v56  ;;  %v6315_v47 = vpop.f32.mrb[206].mxu0 }
 0x8b2   :  { %6992 = vrcp.f32 %v3833_v55  ;;  %v3834_v45 = vadd.f32 1.0, %v6973_v39  ;;  %v3792_v22 = vadd.f32 %v6315_v47, %v3113_v28  ;;  %v3765_v5 = vpop.f32.mrb[207].mxu0 }
 0x8b3   :  { %v6975_v34 = vpop.eup %6974  ;;  %6994 = vrcp.f32 %v3836_v10  ;;  %v3790_v40 = vadd.f32 %v3765_v5, %v3103_v24 }
 0x8b4   :  { %v6977_v38 = vpop.eup %6976  ;;  %6996 = vrcp.f32 %v3834_v45 }
 0x8b5   :  { %v6979_v63 = vpop.eup %6978  ;;  %6998 = vtanh.f32 %v3791_v57 }
 0x8b6   :  { %v6981_v30 = vpop.eup %6980  ;;  %7000 = vtanh.f32 %v3789_v31 }
 0x8b7   :  { %v6983_v23 = vpop.eup %6982  ;;  %7002 = vtanh.f32 %v3792_v22 }
 0x8b8   :  { %v6985_v25 = vpop.eup %6984  ;;  %7004 = vtanh.f32 %v3790_v40  ;;  %v3839_v9 = vadd.f32 1.0, %v6983_v23 }
 0x8b9   :  { %v6987_v4 = vpop.eup %6986  ;;  %v3837_v28 = vadd.f32 1.0, %v6985_v25 }
 0x8ba   :  { %v6989_v41 = vpop.eup %6988  ;;  %v3840_v39 = vadd.f32 1.0, %v6987_v4  ;;  %7006 = vrcp.f32 %v3839_v9 }
 0x8bb   :  { %v6991_v56 = vpop.eup %6990  ;;  %v3838_v47 = vadd.f32 1.0, %v6989_v41  ;;  %7008 = vrcp.f32 %v3837_v28 }
 0x8bc   :  { %v6993_v1 = vpop.eup %6992  ;;  %v3871_v7 = vmul.f32 0.0, %v6991_v56  ;;  %7010 = vrcp.f32 %v3840_v39 }
 0x8bd   :  { %v6995_v0 = vpop.eup %6994  ;;  %v3869_v10 = vmul.f32 0.0, %v6993_v1  ;;  %7012 = vrcp.f32 %v3838_v47  ;;  %v10144_v47 = vld [vmem:[#allocation50_spill] sm:$0xff] }
 0x8be   :  { %v6997_v55 = vpop.eup %6996  ;;  %v3872_v45 = vmul.f32 0.0, %v6995_v0 }
 0x8bf   :  { %v6999_v24 = vpop.eup %6998  ;;  %v3870_v5 = vmul.f32 0.0, %v6997_v55 }
 0x8c0   :  { %v7001_v57 = vpop.eup %7000  ;;  %v3875_v31 = vmul.f32 %v6999_v24, %v6975_v34 }
 0x8c1   :  { %v7003_v22 = vpop.eup %7002  ;;  %v3873_v40 = vmul.f32 %v7001_v57, %v6977_v38  ;;  %v645_v57 = vadd.f32 %v10144_v47, %v8184_v16  ;;  %v10150_v47 = vld [vmem:[#allocation69_spill] sm:$0xff] }
 0x8c2   :  { %v7005_v18 = vpop.eup %7004  ;;  %v9137_v36 = vadd.f32 %v3875_v31, %v3871_v7  ;;  %v3876_v23 = vmul.f32 %v7003_v22, %v6979_v63 }
 0x8c3   :  { %v9139_v25 = vadd.f32 %v3873_v40, %v3869_v10  ;;  %v3874_v4 = vmul.f32 %v7005_v18, %v6981_v30 }
 0x8c4   :  { %7014 = vtanh.f32 %v9137_v36  ;;  %v9142_v41 = vadd.f32 %v3876_v23, %v3872_v45  ;;  %v7007_v38 = vpop.eup %7006  ;;  %v10145_v45 = vld [vmem:[#allocation42_spill] sm:$0xff] }
 0x8c5   :  { %7016 = vtanh.f32 %v9139_v25  ;;  %v9145_v34 = vadd.f32 %v3874_v4, %v3870_v5  ;;  %v7009_v56 = vpop.eup %7008  ;;  %v635_v31 = vadd.f32 %v10145_v45, %v8144_v27  ;;  %v10146_v5 = vld [vmem:[#allocation53_spill] sm:$0xff] }
 0x8c6   :  { %7018 = vtanh.f32 %v9142_v41  ;;  %v7011_v1 = vpop.eup %7010  ;;  %v649_v40 = vadd.f32 %v10146_v5, %v8186_v50  ;;  %v10149_v50 = vld [vmem:[#allocation58_spill] sm:$0xff] }
 0x8c7   :  { %7020 = vtanh.f32 %v9145_v34  ;;  %v7013_v63 = vpop.eup %7012 }
 0x8ce   :  { %v7015_v9 = vpop.eup %7014 }
 0x8cf   :  { %v7017_v0 = vpop.eup %7016  ;;  %v3887_v30 = vmul.f32 %v7015_v9, %v7007_v38  ;;  %v10147_v38 = vld [vmem:[#allocation45_spill] sm:$0xff] }
 0x8d0   :  { %v7019_v28 = vpop.eup %7018  ;;  %v3885_v7 = vmul.f32 %v7017_v0, %v7009_v56  ;;  %v639_v56 = vadd.f32 %v10147_v38, %v8164_v58 }
 0x8d1   :  { %v7021_v18 = vpop.eup %7020  ;;  %v3888_v55 = vmul.f32 %v7019_v28, %v7011_v1 }
 0x8d2   :  { %v3886_v39 = vmul.f32 %v7021_v18, %v7013_v63 }
 0x8d3   :  { %v9149_v24 = vpack.c.bf16 %v3888_v55, %v3887_v30  ;;  %v10148_v55 = vld [vmem:[#allocation66_spill] sm:$0xff] }
 0x8d4   :  { %v9151_v10 = vpack.c.bf16 %v3886_v39, %v3885_v7  ;;  %v665_v7 = vadd.f32 %v10148_v55, %v8202_v19  ;;  %v655_v39 = vadd.f32 %v10149_v50, %v8146_v54  ;;  %v10154_v55 = vld [vmem:[#allocation85_spill] sm:$0xff] }
 0x911   :  { %v6284_v22 = vpop.f32.mrb[112].mxu1 }
 0x912   :  { %v2665_v23 = vadd.f32 %v6284_v22, %v645_v57  ;;  %v2600_v4 = vpop.f32.mrb[113].mxu1  ;;  %v669_v57 = vadd.f32 %v10150_v47, %v8206_v46  ;;  %v10151_v22 = vld [vmem:[#allocation61_spill] sm:$0xff] }
 0x913   :  { %v2663_v1 = vadd.f32 %v2600_v4, %v635_v31  ;;  %v6285_v63 = vpop.f32.mrb[114].mxu1  ;;  %v659_v5 = vadd.f32 %v10151_v22, %v8166_v51 }
 0x914   :  { %v5759_v9 = vmul.f32 -1.442695, %v2665_v23  ;;  %v2666_v0 = vadd.f32 %v6285_v63, %v649_v40  ;;  %v2603_v28 = vpop.f32.mrb[115].mxu1 }
 0x915   :  { %v5757_v18 = vmul.f32 -1.442695, %v2663_v1  ;;  %v2664_v30 = vadd.f32 %v2603_v28, %v639_v56 }
 0x916   :  { %7022 = vpow2.f32 %v5759_v9  ;;  %v5760_v16 = vmul.f32 -1.442695, %v2666_v0  ;;  %v10152_v0 = vld [vmem:[#allocation82_spill] sm:$0xff] }
 0x917   :  { %7024 = vpow2.f32 %v5757_v18  ;;  %v5758_v27 = vmul.f32 -1.442695, %v2664_v30  ;;  %v685_v46 = vadd.f32 %v10152_v0, %v8232_v32  ;;  %v10153_v18 = vld [vmem:[#allocation74_spill] sm:$0xff] }
 0x918   :  { %7026 = vpow2.f32 %v5760_v16  ;;  %v675_v51 = vadd.f32 %v10153_v18, %v8210_v42 }
 0x919   :  { %7028 = vpow2.f32 %v5758_v27  ;;  %v6288_v58 = vpop.f32.mrb[116].mxu1 }
 0x91a   :  { %v2669_v45 = vadd.f32 %v6288_v58, %v665_v7  ;;  %v2616_v31 = vpop.f32.mrb[117].mxu1  ;;  %v689_v7 = vadd.f32 %v10154_v55, %v8234_v12 }
 0x91b   :  { %v2667_v40 = vadd.f32 %v2616_v31, %v655_v39  ;;  %v6289_v23 = vpop.f32.mrb[118].mxu1 }
 0x91c   :  { %v5763_v4 = vmul.f32 -1.442695, %v2669_v45  ;;  %v2670_v38 = vadd.f32 %v6289_v23, %v669_v57  ;;  %v2619_v56 = vpop.f32.mrb[119].mxu1  ;;  %v10155_v57 = vld [vmem:[#allocation77_spill] sm:$0xff] }
 0x91d   :  { %v5761_v19 = vmul.f32 -1.442695, %v2667_v40  ;;  %v2668_v1 = vadd.f32 %v2619_v56, %v659_v5  ;;  %v679_v45 = vadd.f32 %v10155_v57, %v8216_v26 }
 0x91e   :  { %7030 = vpow2.f32 %v5763_v4  ;;  %v5764_v63 = vmul.f32 -1.442695, %v2670_v38 }
 0x91f   :  { %7032 = vpow2.f32 %v5761_v19  ;;  %v5762_v54 = vmul.f32 -1.442695, %v2668_v1  ;;  %v10156_v1 = vld [vmem:[#allocation98_spill] sm:$0xff] }
 0x920   :  { %v7023_v9 = vpop.eup %7022  ;;  %7034 = vpow2.f32 %v5764_v63  ;;  %v705_v26 = vadd.f32 %v10156_v1, %v8244_v15 }
 0x921   :  { %v7025_v28 = vpop.eup %7024  ;;  %v2717_v30 = vadd.f32 1.0, %v7023_v9  ;;  %7036 = vpow2.f32 %v5762_v54  ;;  %v6292_v16 = vpop.f32.mrb[120].mxu1  ;;  %v10157_v54 = vld [vmem:[#allocation102_spill] sm:$0xff] }
 0x922   :  { %v7027_v27 = vpop.eup %7026  ;;  %v2715_v50 = vadd.f32 1.0, %v7025_v28  ;;  %v2673_v39 = vadd.f32 %v6292_v16, %v685_v46  ;;  %v2632_v58 = vpop.f32.mrb[121].mxu1  ;;  %v10158_v9 = vld [vmem:[#allocation90_spill] sm:$0xff] }
 0x923   :  { %v7029_v47 = vpop.eup %7028  ;;  %7038 = vrcp.f32 %v2717_v30  ;;  %v2718_v32 = vadd.f32 1.0, %v7027_v27  ;;  %v2671_v31 = vadd.f32 %v2632_v58, %v675_v51  ;;  %v6293_v22 = vpop.f32.mrb[122].mxu1  ;;  %v695_v0 = vadd.f32 %v10158_v9, %v10157_v54  ;;  %v10159_v51 = vld [vmem:[#allocation104_spill] sm:$0xff]  ;;  %v10160_v30 = vld [vmem:[#allocation101_spill] sm:$0xff] }
 0x924   :  { %7040 = vrcp.f32 %v2715_v50  ;;  %v2716_v42 = vadd.f32 1.0, %v7029_v47  ;;  %v5767_v5 = vmul.f32 -1.442695, %v2673_v39  ;;  %v2674_v40 = vadd.f32 %v6293_v22, %v689_v7  ;;  %v2635_v23 = vpop.f32.mrb[123].mxu1  ;;  %v10161_v39 = vld [vmem:[#allocation103_spill] sm:$0xff]  ;;  %v10162_v58 = vld [vmem:[#allocation93_spill] sm:$0xff] }
 0x925   :  { %7042 = vrcp.f32 %v2718_v32  ;;  %v5765_v4 = vmul.f32 -1.442695, %v2671_v31  ;;  %v2672_v38 = vadd.f32 %v2635_v23, %v679_v45  ;;  %v709_v16 = vadd.f32 %v10160_v30, %v10159_v51 }
 0x926   :  { %7044 = vrcp.f32 %v2716_v42  ;;  %v5768_v12 = vmul.f32 -1.442695, %v2674_v40  ;;  %v699_v15 = vadd.f32 %v10162_v58, %v10161_v39 }
 0x927   :  { %7046 = vpow2.f32 %v5767_v5  ;;  %v5766_v56 = vmul.f32 -1.442695, %v2672_v38 }
 0x928   :  { %v7031_v19 = vpop.eup %7030  ;;  %7048 = vpow2.f32 %v5765_v4 }
 0x929   :  { %v7033_v63 = vpop.eup %7032  ;;  %v2721_v46 = vadd.f32 1.0, %v7031_v19  ;;  %7050 = vpow2.f32 %v5768_v12  ;;  %v6296_v28 = vpop.f32.mrb[124].mxu1 }
 0x92a   :  { %v7035_v18 = vpop.eup %7034  ;;  %v2719_v27 = vadd.f32 1.0, %v7033_v63  ;;  %7052 = vpow2.f32 %v5766_v56  ;;  %v2677_v55 = vadd.f32 %v6296_v28, %v705_v26  ;;  %v2648_v7 = vpop.f32.mrb[125].mxu1 }
 0x92b   :  { %v7037_v50 = vpop.eup %7036  ;;  %7054 = vrcp.f32 %v2721_v46  ;;  %v2722_v47 = vadd.f32 1.0, %v7035_v18  ;;  %v2675_v57 = vadd.f32 %v2648_v7, %v695_v0  ;;  %v6297_v45 = vpop.f32.mrb[126].mxu1 }
 0x92c   :  { %7056 = vrcp.f32 %v2719_v27  ;;  %v2720_v32 = vadd.f32 1.0, %v7037_v50  ;;  %v2678_v31 = vadd.f32 %v6297_v45, %v709_v16  ;;  %v2651_v22 = vpop.f32.mrb[127].mxu1 }
 0x92d   :  { %v7039_v42 = vpop.eup %7038  ;;  %7058 = vrcp.f32 %v2722_v47  ;;  %v2676_v5 = vadd.f32 %v2651_v22, %v699_v15 }
 0x92e   :  { %v7041_v40 = vpop.eup %7040  ;;  %7060 = vrcp.f32 %v2720_v32 }
 0x92f   :  { %v7043_v23 = vpop.eup %7042  ;;  %7062 = vtanh.f32 %v2677_v55 }
 0x930   :  { %v7045_v4 = vpop.eup %7044  ;;  %7064 = vtanh.f32 %v2675_v57 }
 0x931   :  { %v7047_v38 = vpop.eup %7046  ;;  %7066 = vtanh.f32 %v2678_v31  ;;  %v9185_v12 = vpop.f32.mrb[128].mxu1 }
 0x932   :  { %v7049_v56 = vpop.eup %7048  ;;  %7068 = vtanh.f32 %v2676_v5  ;;  %v9187_v19 = vpop.f32.mrb[129].mxu1  ;;  %v2725_v46 = vadd.f32 1.0, %v7047_v38 }
 0x933   :  { %10163 = vst [vmem:[#allocation86_spill] sm:$0xff] %v9187_v19  ;;  %v7051_v1 = vpop.eup %7050  ;;  %v9189_v26 = vpop.f32.mrb[130].mxu1  ;;  %v2723_v18 = vadd.f32 1.0, %v7049_v56 }
 0x934   :  { %v7053_v63 = vpop.eup %7052  ;;  %v9191_v54 = vpop.f32.mrb[131].mxu1  ;;  %v2726_v16 = vadd.f32 1.0, %v7051_v1  ;;  %7070 = vrcp.f32 %v2725_v46 }
 0x935   :  { %10164 = vst [vmem:[#allocation97_spill] sm:$0xff] %v9191_v54  ;;  %v7055_v9 = vpop.eup %7054  ;;  %v2724_v7 = vadd.f32 1.0, %v7053_v63  ;;  %7072 = vrcp.f32 %v2723_v18 }
 0x936   :  { %v7057_v0 = vpop.eup %7056  ;;  %v2757_v30 = vmul.f32 %v7055_v9, %v8896_v48  ;;  %7074 = vrcp.f32 %v2726_v16 }
 0x937   :  { %v7059_v28 = vpop.eup %7058  ;;  %v2755_v55 = vmul.f32 %v7057_v0, %v8900_v11  ;;  %7076 = vrcp.f32 %v2724_v7 }
 0x938   :  { %v7061_v51 = vpop.eup %7060  ;;  %v2758_v58 = vmul.f32 %v7059_v28, %v8903_v2 }
 0x939   :  { %v7063_v27 = vpop.eup %7062  ;;  %v9195_v50 = vpop.f32.mrb[132].mxu1  ;;  %v2756_v45 = vmul.f32 %v7061_v51, %v8906_v20 }
 0x93a   :  { %v7065_v39 = vpop.eup %7064  ;;  %v2761_v15 = vmul.f32 %v7063_v27, %v7039_v42  ;;  %v9198_v47 = vpop.f32.mrb[133].mxu1 }
 0x93b   :  { %10165 = vst [vmem:[#allocation89_spill] sm:$0xff] %v9198_v47  ;;  %v7067_v57 = vpop.eup %7066  ;;  %v2759_v32 = vmul.f32 %v7065_v39, %v7041_v40  ;;  %v9201_v48 = vpop.f32.mrb[134].mxu1 }
 0x93c   :  { %v7069_v31 = vpop.eup %7068  ;;  %v2765_v11 = vadd.f32 %v2761_v15, %v2757_v30  ;;  %v2762_v22 = vmul.f32 %v7067_v57, %v7043_v23  ;;  %v9203_v5 = vpop.f32.mrb[135].mxu1 }
 0x93d   :  { %10166 = vst [vmem:[#allocation47_spill] sm:$0xff] %v9203_v5  ;;  %v2763_v38 = vadd.f32 %v2759_v32, %v2755_v55  ;;  %v2760_v2 = vmul.f32 %v7069_v31, %v7045_v4  ;;  %v10216_v5 = vld [vmem:[#allocation10_spill] sm:$0xff] }
 0x93e   :  { %7078 = vtanh.f32 %v2765_v11  ;;  %v2766_v42 = vadd.f32 %v2762_v22, %v2758_v58  ;;  %v7071_v63 = vpop.eup %7070  ;;  %v3071_v19 = vadd.f32 %v10216_v5, %v9082_v43 }
 0x93f   :  { %7080 = vtanh.f32 %v2763_v38  ;;  %v2764_v56 = vadd.f32 %v2760_v2, %v2756_v45  ;;  %v7073_v23 = vpop.eup %7072  ;;  %v7549_v38 = vld [vmem:[%s9895_s4] sm:$0xff]  }
 0x940   :  { %7082 = vtanh.f32 %v2766_v42  ;;  %v7075_v0 = vpop.eup %7074 }
 0x941   :  { %7084 = vtanh.f32 %v2764_v56  ;;  %v9205_v20 = vpop.f32.mrb[136].mxu1  ;;  %v7077_v46 = vpop.eup %7076  ;;  %v7550_v56 = vld [vmem:[%s9895_s4 + $0x8] sm:$0xff]  }
 0x942   :  { %v9207_v40 = vpop.f32.mrb[137].mxu1 }
 0x943   :  { %10167 = vst [vmem:[#allocation39_spill] sm:$0xff] %v9207_v40  ;;  %v9209_v1 = vpop.f32.mrb[138].mxu1 }
 0x944   :  { %v9211_v9 = vpop.f32.mrb[139].mxu1 }
 0x945   :  { %10168 = vst [vmem:[#allocation51_spill] sm:$0xff] %v9211_v9 }
 0x948   :  { %v7079_v28 = vpop.eup %7078 }
 0x949   :  { %v7081_v4 = vpop.eup %7080  ;;  %v9213_v18 = vpop.f32.mrb[140].mxu1  ;;  %v2773_v51 = vmul.f32 %v7079_v28, %v7071_v63 }
 0x94a   :  { %v7083_v30 = vpop.eup %7082  ;;  %v9215_v16 = vpop.f32.mrb[141].mxu1  ;;  %v2771_v27 = vmul.f32 %v7081_v4, %v7073_v23 }
 0x94b   :  { %10169 = vst [vmem:[#allocation43_spill] sm:$0xff] %v9215_v16  ;;  %v7085_v55 = vpop.eup %7084  ;;  %v9217_v7 = vpop.f32.mrb[142].mxu1  ;;  %v2774_v39 = vmul.f32 %v7083_v30, %v7075_v0  ;;  %v7552_v30 = vld [vmem:[%s9895_s4 + $0x18] sm:$0xff]  }
 0x94c   :  { %v9219_v58 = vpop.f32.mrb[143].mxu1  ;;  %v2772_v15 = vmul.f32 %v7085_v55, %v7077_v46  ;;  %v7554_v55 = vld [vmem:[%s9895_s4 + $0x28] sm:$0xff]  }
 0x94d   :  { %10170 = vst [vmem:[#allocation63_spill] sm:$0xff] %v9219_v58  ;;  %v2827_v57 = vpack.c.bf16 %v2774_v39, %v2773_v51  ;;  %v7555_v39 = vld [vmem:[%s9895_s4 + $0x30] sm:$0xff]  }
 0x94e   :  { %v2819_v45 = vpack.c.bf16 %v2772_v15, %v2771_v27  ;;  %v7553_v27 = vld [vmem:[%s9895_s4 + $0x20] sm:$0xff]   ;;  %v7556_v15 = vld [vmem:[%s9895_s4 + $0x38] sm:$0xff]  }
 0x950   :  { %3343 = vmatprep.subr.bf16.mxu1 %v2819_v45  ;;  %v9308_v45 = vld [vmem:[%s9896_s5 + $0x8] sm:$0xff]  }
 0x951   :  { %3344 = vmatpush1.bf16.msra.mxu1 %v8928_v14  ;;  %v9222_v32 = vpop.f32.mrb[144].mxu1 }
 0x952   :  { %3345 = vmatprep.subr.bf16.mxu1 %v2827_v57  ;;  %v9224_v31 = vpop.f32.mrb[145].mxu1  ;;  %v9301_v57 = vld [vmem:[%s9896_s5] sm:$0xff]  }
 0x953   :  { %10171 = vst [vmem:[#allocation55_spill] sm:$0xff] %v9224_v31  ;;  %v9226_v11 = vpop.f32.mrb[146].mxu1 }
 0x954   :  { %v9228_v22 = vpop.f32.mrb[147].mxu1 }
 0x955   :  { %10172 = vst [vmem:[#allocation67_spill] sm:$0xff] %v9228_v22  ;;  %3346 = vmatpush1.bf16.msra.mxu1 %v8926_v21 }
 0x956   :  { %6316 = vmatprep.subr.bf16.mxu1 %v9151_v10 }
 0x958   :  { %5801 = vmatmul.mubr.msk.bf16.vlgmr.msra.gmra.mrb[160].mxu1 %vm911_vm2, %v7549_v38  ;;  %v9322_v38 = vld [vmem:[%s9896_s5 + $0x18] sm:$0xff]  }
 0x959   :  { %6317 = vmatpush3.bf16.msra.mxu1 %v9151_v10  ;;  %v9237_v14 = vpop.f32.mrb[148].mxu1  ;;  %3385 = vmatprep.mubr.bf16.mxu1 %v10080_v59 }
 0x95a   :  { %6318 = vmatprep.subr.bf16.mxu1 %v9149_v24  ;;  %v9241_v2 = vpop.f32.mrb[149].mxu1 }
 0x95b   :  { %10173 = vst [vmem:[#allocation59_spill] sm:$0xff] %v9241_v2  ;;  %v9243_v42 = vpop.f32.mrb[150].mxu1 }
 0x95c   :  { %v9245_v21 = vpop.f32.mrb[151].mxu1 }
 0x95d   :  { %10174 = vst [vmem:[#allocation79_spill] sm:$0xff] %v9245_v21  ;;  %6319 = vmatpush3.bf16.msra.mxu1 %v9149_v24  ;;  %v7551_v24 = vld [vmem:[%s9895_s4 + $0x10] sm:$0xff]  }
 0x960   :  { %5802 = vmatmul.mubr.msk.bf16.gmra.mrb[164].mxu1 %vm911_vm2, %v7550_v56  ;;  %v9329_v56 = vld [vmem:[%s9896_s5 + $0x20] sm:$0xff]  }
 0x961   :  { %v9252_v10 = vpop.f32.mrb[152].mxu1  ;;  %3395 = vmatprep.mubr.bf16.mxu1 %v10080_v59 }
 0x962   :  { %10175 = vst [vmem:[#allocation71_spill] sm:$0xff] %v9252_v10  ;;  %v9255_v63 = vpop.f32.mrb[153].mxu1 }
 0x963   :  { %10176 = vst [vmem:[#allocation83_spill] sm:$0xff] %v9255_v63  ;;  %v9257_v23 = vpop.f32.mrb[154].mxu1 }
 0x964   :  { %10177 = vst [vmem:[#allocation75_spill] sm:$0xff] %v9257_v23  ;;  %v9259_v0 = vpop.f32.mrb[155].mxu1 }
 0x965   :  { %10178 = vst [vmem:[#allocation95_spill] sm:$0xff] %v9259_v0 }
 0x968   :  { %5803 = vmatmul.mubr.msk.bf16.gmra.mrb[168].mxu1 %vm911_vm2, %v7551_v24  ;;  %v9336_v24 = vld [vmem:[%s9896_s5 + $0x28] sm:$0xff]  }
 0x969   :  { %v9265_v46 = vpop.f32.mrb[156].mxu1  ;;  %3405 = vmatprep.mubr.bf16.mxu1 %v10080_v59 }
 0x96a   :  { %v9268_v28 = vpop.f32.mrb[157].mxu1 }
 0x96b   :  { %10179 = vst [vmem:[#allocation87_spill] sm:$0xff] %v9268_v28  ;;  %v9270_v4 = vpop.f32.mrb[158].mxu1 }
 0x96c   :  { %10180 = vst [vmem:[#allocation99_spill] sm:$0xff] %v9270_v4  ;;  %v9272_v51 = vpop.f32.mrb[159].mxu1 }
 0x96d   :  { %10181 = vst [vmem:[#allocation91_spill] sm:$0xff] %v9272_v51 }
 0x970   :  { %5804 = vmatmul.mubr.msk.bf16.gmra.mrb[172].mxu1 %vm911_vm2, %v7552_v30  ;;  %v9343_v30 = vld [vmem:[%s9896_s5 + $0x30] sm:$0xff]  }
 0x971   :  { %3415 = vmatprep.mubr.bf16.mxu1 %v10080_v59 }
 0x978   :  { %5805 = vmatmul.mubr.msk.bf16.gmra.mrb[176].mxu1 %vm911_vm2, %v7553_v27  ;;  %v9350_v27 = vld [vmem:[%s9896_s5 + $0x38] sm:$0xff]  }
 0x979   :  { %3425 = vmatprep.mubr.bf16.mxu1 %v10080_v59 }
 0x980   :  { %5806 = vmatmul.mubr.msk.bf16.gmra.mrb[180].mxu1 %vm911_vm2, %v7554_v55 }
 0x981   :  { %3435 = vmatprep.mubr.bf16.mxu1 %v10080_v59 }
 0x988   :  { %5807 = vmatmul.mubr.msk.bf16.gmra.mrb[184].mxu1 %vm911_vm2, %v7555_v39 }
 0x989   :  { %3445 = vmatprep.mubr.bf16.mxu1 %v10080_v59  ;;  %v9315_v59 = vld [vmem:[%s9896_s5 + $0x10] sm:$0xff]  }
 0x990   :  { %5808 = vmatmul.mubr.msk.bf16.gmra.mrb[188].mxu1 %vm911_vm2, %v7556_v15 }
 0x991   :  { %6320 = vmatprep.mubr.msk.bf16.mxu1 %vm911_vm2, %v9301_v57 }
 0x998   :  { %6321 = vmatmul.mubr.msk.bf16.vlgmr.msra.gmra.mrb[192].mxu1 %vm911_vm2, %v9308_v45 }
 0x999   :  { %6324 = vmatprep.mubr.msk.bf16.mxu1 %vm911_vm2, %v9315_v59 }
 0x9a0   :  { %6325 = vmatmul.mubr.msk.bf16.gmra.mrb[196].mxu1 %vm911_vm2, %v9322_v38 }
 0x9a1   :  { %6328 = vmatprep.mubr.msk.bf16.mxu1 %vm911_vm2, %v9329_v56 }
 0x9a8   :  { %6329 = vmatmul.mubr.msk.bf16.gmra.mrb[200].mxu1 %vm911_vm2, %v9336_v24 }
 0x9a9   :  { %6332 = vmatprep.mubr.msk.bf16.mxu1 %vm911_vm2, %v9343_v30 }
 0x9b0   :  { %6333 = vmatmul.mubr.msk.bf16.gmra.mrb[204].mxu1 %vm911_vm2, %v9350_v27 }
 0x9b1   :  { %6360 = vmatprep.mubr.msk.bf16.mxu1 %vm911_vm2, %v9301_v57 }
 0xa2b   :  { %v9356_v55 = vpop.f32.mrb[160].mxu1 }
 0xa2c   :  { %10182 = vst [vmem:[#allocation48_spill] sm:$0xff] %v9356_v55  ;;  %v9358_v39 = vpop.f32.mrb[161].mxu1 }
 0xa2d   :  { %10183 = vst [vmem:[#allocation40_spill] sm:$0xff] %v9358_v39  ;;  %v9360_v15 = vpop.f32.mrb[162].mxu1 }
 0xa2e   :  { %10184 = vst [vmem:[#allocation52_spill] sm:$0xff] %v9360_v15  ;;  %v9362_v0 = vpop.f32.mrb[163].mxu1 }
 0xa2f   :  { %10185 = vst [vmem:[#allocation44_spill] sm:$0xff] %v9362_v0 }
 0xa33   :  { %v9364_v51 = vpop.f32.mrb[164].mxu1 }
 0xa34   :  { %10186 = vst [vmem:[#allocation64_spill] sm:$0xff] %v9364_v51  ;;  %v9366_v63 = vpop.f32.mrb[165].mxu1 }
 0xa35   :  { %10187 = vst [vmem:[#allocation56_spill] sm:$0xff] %v9366_v63  ;;  %v9368_v28 = vpop.f32.mrb[166].mxu1 }
 0xa36   :  { %10188 = vst [vmem:[#allocation68_spill] sm:$0xff] %v9368_v28  ;;  %v9370_v22 = vpop.f32.mrb[167].mxu1 }
 0xa37   :  { %10189 = vst [vmem:[#allocation60_spill] sm:$0xff] %v9370_v22 }
 0xa3b   :  { %v9372_v21 = vpop.f32.mrb[168].mxu1 }
 0xa3c   :  { %10190 = vst [vmem:[#allocation80_spill] sm:$0xff] %v9372_v21  ;;  %v9374_v31 = vpop.f32.mrb[169].mxu1 }
 0xa3d   :  { %10191 = vst [vmem:[#allocation72_spill] sm:$0xff] %v9374_v31  ;;  %v9376_v2 = vpop.f32.mrb[170].mxu1 }
 0xa3e   :  { %10192 = vst [vmem:[#allocation84_spill] sm:$0xff] %v9376_v2  ;;  %v9378_v55 = vpop.f32.mrb[171].mxu1 }
 0xa3f   :  { %10193 = vst [vmem:[#allocation76_spill] sm:$0xff] %v9378_v55 }
 0xa43   :  { %v9380_v39 = vpop.f32.mrb[172].mxu1 }
 0xa44   :  { %10194 = vst [vmem:[#allocation96_spill] sm:$0xff] %v9380_v39  ;;  %v9382_v15 = vpop.f32.mrb[173].mxu1 }
 0xa45   :  { %10195 = vst [vmem:[#allocation88_spill] sm:$0xff] %v9382_v15  ;;  %v9384_v0 = vpop.f32.mrb[174].mxu1 }
 0xa46   :  { %10196 = vst [vmem:[#allocation100_spill] sm:$0xff] %v9384_v0  ;;  %v9386_v51 = vpop.f32.mrb[175].mxu1 }
 0xa47   :  { %10197 = vst [vmem:[#allocation92_spill] sm:$0xff] %v9386_v51 }
 0xa4b   :  { %v9388_v63 = vpop.f32.mrb[176].mxu1 }
 0xa4c   :  { %10198 = vst [vmem:[#allocation50_spill] sm:$0xff] %v9388_v63  ;;  %v9390_v28 = vpop.f32.mrb[177].mxu1 }
 0xa4d   :  { %10199 = vst [vmem:[#allocation42_spill] sm:$0xff] %v9390_v28  ;;  %v9392_v22 = vpop.f32.mrb[178].mxu1 }
 0xa4e   :  { %10200 = vst [vmem:[#allocation53_spill] sm:$0xff] %v9392_v22  ;;  %v9394_v21 = vpop.f32.mrb[179].mxu1 }
 0xa4f   :  { %10201 = vst [vmem:[#allocation45_spill] sm:$0xff] %v9394_v21 }
 0xa53   :  { %v9396_v31 = vpop.f32.mrb[180].mxu1 }
 0xa54   :  { %10202 = vst [vmem:[#allocation66_spill] sm:$0xff] %v9396_v31  ;;  %v9398_v2 = vpop.f32.mrb[181].mxu1 }
 0xa55   :  { %10203 = vst [vmem:[#allocation58_spill] sm:$0xff] %v9398_v2  ;;  %v9400_v55 = vpop.f32.mrb[182].mxu1  ;;  %v3051_v2 = vadd.f32 %v8891_v8, %v9067_v6 }
 0xa56   :  { %10204 = vst [vmem:[#allocation69_spill] sm:$0xff] %v9400_v55  ;;  %v9402_v39 = vpop.f32.mrb[183].mxu1 }
 0xa57   :  { %10205 = vst [vmem:[#allocation61_spill] sm:$0xff] %v9402_v39  ;;  %v10214_v39 = vld [vmem:[#allocation35_spill] sm:$0xff] }
 0xa5b   :  { %v9404_v15 = vpop.f32.mrb[184].mxu1 }
 0xa5c   :  { %10206 = vst [vmem:[#allocation82_spill] sm:$0xff] %v9404_v15  ;;  %v9406_v0 = vpop.f32.mrb[185].mxu1  ;;  %v3041_v15 = vadd.f32 %v10214_v39, %v9044_v35 }
 0xa5d   :  { %10207 = vst [vmem:[#allocation74_spill] sm:$0xff] %v9406_v0  ;;  %v9408_v51 = vpop.f32.mrb[186].mxu1  ;;  %v3055_v0 = vadd.f32 %v8898_v49, %v9071_v29  ;;  %v10217_v49 = vld [vmem:[#allocation8_spill] sm:$0xff] }
 0xa5e   :  { %10208 = vst [vmem:[#allocation85_spill] sm:$0xff] %v9408_v51  ;;  %v9410_v63 = vpop.f32.mrb[187].mxu1 }
 0xa5f   :  { %10209 = vst [vmem:[#allocation77_spill] sm:$0xff] %v9410_v63 }
 0xa63   :  { %v9412_v28 = vpop.f32.mrb[188].mxu1 }
 0xa64   :  { %10210 = vst [vmem:[#allocation98_spill] sm:$0xff] %v9412_v28  ;;  %v9414_v22 = vpop.f32.mrb[189].mxu1  ;;  %v10215_v28 = vld [vmem:[#allocation30_spill] sm:$0xff] }
 0xa65   :  { %10211 = vst [vmem:[#allocation102_spill] sm:$0xff] %v9414_v22  ;;  %v9416_v21 = vpop.f32.mrb[190].mxu1  ;;  %v3045_v9 = vadd.f32 %v10215_v28, %v9050_v53 }
 0xa66   :  { %10212 = vst [vmem:[#allocation90_spill] sm:$0xff] %v9416_v21  ;;  %v9418_v31 = vpop.f32.mrb[191].mxu1 }
 0xa67   :  { %10213 = vst [vmem:[#allocation104_spill] sm:$0xff] %v9418_v31 }
 0xa6b   :  { %v6322_v55 = vpop.f32.mrb[192].mxu1 }
 0xa6c   :  { %v4006_v51 = vadd.f32 %v6322_v55, %v3051_v2  ;;  %v3941_v63 = vpop.f32.mrb[193].mxu1  ;;  %v3061_v2 = vadd.f32 %v10217_v49, %v9054_v44  ;;  %v10220_v49 = vld [vmem:[#allocation6_spill] sm:$0xff] }
 0xa6d   :  { %v4004_v22 = vadd.f32 %v3941_v63, %v3041_v15  ;;  %v6323_v58 = vpop.f32.mrb[194].mxu1  ;;  %v3075_v63 = vadd.f32 %v8924_v61, %v9084_v13  ;;  %v3091_v61 = vadd.f32 %v8951_v37, %v9113_v33 }
 0xa6e   :  { %v5847_v21 = vmul.f32 -1.442695, %v4006_v51  ;;  %v4007_v40 = vadd.f32 %v6323_v58, %v3055_v0  ;;  %v3944_v31 = vpop.f32.mrb[195].mxu1 }
 0xa6f   :  { %v5845_v16 = vmul.f32 -1.442695, %v4004_v22  ;;  %v4005_v54 = vadd.f32 %v3944_v31, %v3045_v9  ;;  %v10218_v9 = vld [vmem:[#allocation4_spill] sm:$0xff] }
 0xa70   :  { %7086 = vpow2.f32 %v5847_v21  ;;  %v5848_v8 = vmul.f32 -1.442695, %v4007_v40  ;;  %v3065_v31 = vadd.f32 %v10218_v9, %v9061_v60 }
 0xa71   :  { %7088 = vpow2.f32 %v5845_v16  ;;  %v5846_v39 = vmul.f32 -1.442695, %v4005_v54 }
 0xa72   :  { %7090 = vpow2.f32 %v5848_v8 }
 0xa73   :  { %7092 = vpow2.f32 %v5846_v39  ;;  %v6326_v28 = vpop.f32.mrb[196].mxu1  ;;  %v10219_v39 = vld [vmem:[#allocation81_spill] sm:$0xff] }
 0xa74   :  { %v4010_v58 = vadd.f32 %v6326_v28, %v3071_v19  ;;  %v3957_v0 = vpop.f32.mrb[197].mxu1  ;;  %v3081_v28 = vadd.f32 %v10220_v49, %v10219_v39 }
 0xa75   :  { %v4008_v40 = vadd.f32 %v3957_v0, %v3061_v2  ;;  %v6327_v16 = vpop.f32.mrb[198].mxu1  ;;  %v10221_v0 = vld [vmem:[#allocation12_spill] sm:$0xff] }
 0xa76   :  { %v5851_v54 = vmul.f32 -1.442695, %v4010_v58  ;;  %v4011_v22 = vadd.f32 %v6327_v16, %v3075_v63  ;;  %v3960_v21 = vpop.f32.mrb[199].mxu1  ;;  %v3095_v9 = vadd.f32 %v10221_v0, %v9117_v62  ;;  %v10223_v0 = vld [vmem:[#allocation24_spill] sm:$0xff] }
 0xa77   :  { %v5849_v5 = vmul.f32 -1.442695, %v4008_v40  ;;  %v4009_v51 = vadd.f32 %v3960_v21, %v3065_v31 }
 0xa78   :  { %7094 = vpow2.f32 %v5851_v54  ;;  %v5852_v55 = vmul.f32 -1.442695, %v4011_v22  ;;  %v10222_v22 = vld [vmem:[#allocation16_spill] sm:$0xff] }
 0xa79   :  { %7096 = vpow2.f32 %v5849_v5  ;;  %v5850_v15 = vmul.f32 -1.442695, %v4009_v51  ;;  %v3085_v21 = vadd.f32 %v10222_v22, %v9099_v3  ;;  %v3111_v22 = vadd.f32 %v10223_v0, %v9125_v17 }
 0xa7a   :  { %v7087_v8 = vpop.eup %7086  ;;  %7098 = vpow2.f32 %v5852_v55 }
 0xa7b   :  { %v7089_v19 = vpop.eup %7088  ;;  %v4058_v2 = vadd.f32 1.0, %v7087_v8  ;;  %7100 = vpow2.f32 %v5850_v15  ;;  %v6330_v58 = vpop.f32.mrb[200].mxu1 }
 0xa7c   :  { %v7091_v63 = vpop.eup %7090  ;;  %v4056_v31 = vadd.f32 1.0, %v7089_v19  ;;  %v4014_v40 = vadd.f32 %v6330_v58, %v3091_v61  ;;  %v3973_v16 = vpop.f32.mrb[201].mxu1 }
 0xa7d   :  { %v7093_v54 = vpop.eup %7092  ;;  %7102 = vrcp.f32 %v4058_v2  ;;  %v4059_v37 = vadd.f32 1.0, %v7091_v63  ;;  %v4012_v5 = vadd.f32 %v3973_v16, %v3081_v28  ;;  %v6331_v51 = vpop.f32.mrb[202].mxu1  ;;  %v10224_v28 = vld [vmem:[#allocation18_spill] sm:$0xff] }
 0xa7e   :  { %7104 = vrcp.f32 %v4056_v31  ;;  %v4057_v55 = vadd.f32 1.0, %v7093_v54  ;;  %v5855_v8 = vmul.f32 -1.442695, %v4014_v40  ;;  %v4015_v15 = vadd.f32 %v6331_v51, %v3095_v9  ;;  %v3976_v49 = vpop.f32.mrb[203].mxu1  ;;  %v10225_v16 = vld [vmem:[#allocation94_spill] sm:$0xff]  ;;  %v10226_v54 = vld [vmem:[#allocation20_spill] sm:$0xff] }
 0xa7f   :  { %7106 = vrcp.f32 %v4059_v37  ;;  %v5853_v47 = vmul.f32 -1.442695, %v4012_v5  ;;  %v4013_v23 = vadd.f32 %v3976_v49, %v3085_v21  ;;  %v3101_v63 = vadd.f32 %v10224_v28, %v9103_v52 }
 0xa80   :  { %7108 = vrcp.f32 %v4057_v55  ;;  %v5856_v19 = vmul.f32 -1.442695, %v4015_v15  ;;  %v3115_v21 = vadd.f32 %v10226_v54, %v10225_v16  ;;  %v10227_v55 = vld [vmem:[#allocation73_spill] sm:$0xff] }
 0xa81   :  { %7110 = vpow2.f32 %v5855_v8  ;;  %v5854_v61 = vmul.f32 -1.442695, %v4013_v23  ;;  %v10228_v8 = vld [vmem:[#allocation14_spill] sm:$0xff] }
 0xa82   :  { %v7095_v58 = vpop.eup %7094  ;;  %7112 = vpow2.f32 %v5853_v47  ;;  %v3105_v15 = vadd.f32 %v10228_v8, %v10227_v55 }
 0xa83   :  { %v7097_v2 = vpop.eup %7096  ;;  %v4062_v31 = vadd.f32 1.0, %v7095_v58  ;;  %7114 = vpow2.f32 %v5856_v19  ;;  %v6334_v9 = vpop.f32.mrb[204].mxu1 }
 0xa84   :  { %v7099_v40 = vpop.eup %7098  ;;  %v4060_v37 = vadd.f32 1.0, %v7097_v2  ;;  %7116 = vpow2.f32 %v5854_v61  ;;  %v4018_v5 = vadd.f32 %v6334_v9, %v3111_v22  ;;  %v3989_v23 = vpop.f32.mrb[205].mxu1 }
 0xa85   :  { %v7101_v51 = vpop.eup %7100  ;;  %7118 = vrcp.f32 %v4062_v31  ;;  %v4063_v47 = vadd.f32 1.0, %v7099_v40  ;;  %v4016_v49 = vadd.f32 %v3989_v23, %v3101_v63  ;;  %v6335_v0 = vpop.f32.mrb[206].mxu1 }
 0xa86   :  { %7120 = vrcp.f32 %v4060_v37  ;;  %v4061_v58 = vadd.f32 1.0, %v7101_v51  ;;  %v4019_v19 = vadd.f32 %v6335_v0, %v3115_v21  ;;  %v3992_v28 = vpop.f32.mrb[207].mxu1 }
 0xa87   :  { %v7103_v4 = vpop.eup %7102  ;;  %7122 = vrcp.f32 %v4063_v47  ;;  %v4017_v10 = vadd.f32 %v3992_v28, %v3105_v15 }
 0xa88   :  { %v7105_v54 = vpop.eup %7104  ;;  %7124 = vrcp.f32 %v4061_v58 }
 0xa89   :  { %v7107_v61 = vpop.eup %7106  ;;  %7126 = vtanh.f32 %v4018_v5 }
 0xa8a   :  { %v7109_v22 = vpop.eup %7108  ;;  %7128 = vtanh.f32 %v4016_v49 }
 0xa8b   :  { %v7111_v2 = vpop.eup %7110  ;;  %7130 = vtanh.f32 %v4019_v19 }
 0xa8c   :  { %v7113_v9 = vpop.eup %7112  ;;  %7132 = vtanh.f32 %v4017_v10  ;;  %v4066_v23 = vadd.f32 1.0, %v7111_v2 }
 0xa8d   :  { %v7115_v31 = vpop.eup %7114  ;;  %v4064_v51 = vadd.f32 1.0, %v7113_v9 }
 0xa8e   :  { %v7117_v63 = vpop.eup %7116  ;;  %v4067_v47 = vadd.f32 1.0, %v7115_v31  ;;  %7134 = vrcp.f32 %v4066_v23 }
 0xa8f   :  { %v7119_v40 = vpop.eup %7118  ;;  %v4065_v58 = vadd.f32 1.0, %v7117_v63  ;;  %7136 = vrcp.f32 %v4064_v51 }
 0xa90   :  { %v7121_v37 = vpop.eup %7120  ;;  %v4098_v15 = vmul.f32 %v7119_v40, %v9137_v36  ;;  %7138 = vrcp.f32 %v4067_v47 }
 0xa91   :  { %v7123_v21 = vpop.eup %7122  ;;  %v4096_v5 = vmul.f32 %v7121_v37, %v9139_v25  ;;  %7140 = vrcp.f32 %v4065_v58  ;;  %v3166_v58 = vadd.f32 %v9201_v48, %v9071_v29  ;;  %v3172_v48 = vadd.f32 %v9205_v20, %v9054_v44 }
 0xa92   :  { %v7125_v8 = vpop.eup %7124  ;;  %v4099_v19 = vmul.f32 %v7123_v21, %v9142_v41 }
 0xa93   :  { %v7127_v0 = vpop.eup %7126  ;;  %v4097_v55 = vmul.f32 %v7125_v8, %v9145_v34 }
 0xa94   :  { %v7129_v49 = vpop.eup %7128  ;;  %v4102_v10 = vmul.f32 %v7127_v0, %v7103_v4  ;;  %v3152_v0 = vadd.f32 %v9185_v12, %v9044_v35 }
 0xa95   :  { %v7131_v28 = vpop.eup %7130  ;;  %v4100_v2 = vmul.f32 %v7129_v49, %v7105_v54 }
 0xa96   :  { %v7133_v16 = vpop.eup %7132  ;;  %v9456_v9 = vadd.f32 %v4102_v10, %v4098_v15  ;;  %v4103_v36 = vmul.f32 %v7131_v28, %v7107_v61  ;;  %v3156_v10 = vadd.f32 %v9189_v26, %v9050_v53 }
 0xa97   :  { %v9458_v31 = vadd.f32 %v4100_v2, %v4096_v5  ;;  %v4101_v25 = vmul.f32 %v7133_v16, %v7109_v22 }
 0xa98   :  { %7142 = vtanh.f32 %v9456_v9  ;;  %v9461_v63 = vadd.f32 %v4103_v36, %v4099_v19  ;;  %v7135_v34 = vpop.eup %7134 }
 0xa99   :  { %7144 = vtanh.f32 %v9458_v31  ;;  %v9464_v41 = vadd.f32 %v4101_v25, %v4097_v55  ;;  %v7137_v4 = vpop.eup %7136  ;;  %v3162_v55 = vadd.f32 %v9195_v50, %v9067_v6 }
 0xa9a   :  { %7146 = vtanh.f32 %v9461_v63  ;;  %v7139_v54 = vpop.eup %7138 }
 0xa9b   :  { %7148 = vtanh.f32 %v9464_v41  ;;  %v7141_v61 = vpop.eup %7140 }
 0xaa2   :  { %v7143_v40 = vpop.eup %7142 }
 0xaa3   :  { %v7145_v37 = vpop.eup %7144  ;;  %v4114_v22 = vmul.f32 %v7143_v40, %v7135_v34  ;;  %v3186_v40 = vadd.f32 %v9217_v7, %v9084_v13  ;;  %v3202_v7 = vadd.f32 %v9237_v14, %v9113_v33 }
 0xaa4   :  { %v7147_v23 = vpop.eup %7146  ;;  %v4112_v51 = vmul.f32 %v7145_v37, %v7137_v4 }
 0xaa5   :  { %v7149_v16 = vpop.eup %7148  ;;  %v4115_v21 = vmul.f32 %v7147_v23, %v7139_v54 }
 0xaa6   :  { %v4113_v8 = vmul.f32 %v7149_v16, %v7141_v61  ;;  %v3182_v61 = vadd.f32 %v9213_v18, %v9082_v43  ;;  %v3176_v16 = vadd.f32 %v9209_v1, %v9061_v60  ;;  %v3192_v1 = vadd.f32 %v9222_v32, %v10219_v39 }
 0xaa7   :  { %v4133_v15 = vpack.c.bf16 %v4115_v21, %v4114_v22 }
 0xaa8   :  { %v4132_v47 = vpack.c.bf16 %v4113_v8, %v4112_v51 }
 0xaaa   :  { %6336 = vmatprep.subr.bf16.mxu0 %v4132_v47 }
 0xaab   :  { %6337 = vmatpush3.bf16.msra.mxu0 %v4132_v47 }
 0xaac   :  { %6338 = vmatprep.subr.bf16.mxu0 %v4133_v15 }
 0xaaf   :  { %6339 = vmatpush3.bf16.msra.mxu0 %v4133_v15 }
 0xab2   :  { %6341 = vmatmul.mubr.msk.bf16.vlgmr.msra.gmra.mrb[208].mxu0 %vm911_vm2, %v9308_v45 }
 0xab3   :  { %6344 = vmatprep.mubr.msk.bf16.mxu0 %vm911_vm2, %v9315_v59 }
 0xaba   :  { %6345 = vmatmul.mubr.msk.bf16.gmra.mrb[212].mxu0 %vm911_vm2, %v9322_v38 }
 0xabb   :  { %6348 = vmatprep.mubr.msk.bf16.mxu0 %vm911_vm2, %v9329_v56 }
 0xac2   :  { %6349 = vmatmul.mubr.msk.bf16.gmra.mrb[216].mxu0 %vm911_vm2, %v9336_v24 }
 0xac3   :  { %6352 = vmatprep.mubr.msk.bf16.mxu0 %vm911_vm2, %v9343_v30 }
 0xaca   :  { %6353 = vmatmul.mubr.msk.bf16.gmra.mrb[220].mxu0 %vm911_vm2, %v9350_v27 }
 0xacb   :  { %6380 = vmatprep.mubr.msk.bf16.mxu0 %vm911_vm2, %v9301_v57 }
 0xb85   :  { %v6342_v5 = vpop.f32.mrb[208].mxu0 }
 0xb86   :  { %v4233_v49 = vadd.f32 %v6342_v5, %v3162_v55  ;;  %v4168_v19 = vpop.f32.mrb[209].mxu0 }
 0xb87   :  { %v4231_v28 = vadd.f32 %v4168_v19, %v3152_v0  ;;  %v6343_v2 = vpop.f32.mrb[210].mxu0 }
 0xb88   :  { %v5867_v36 = vmul.f32 -1.442695, %v4233_v49  ;;  %v4234_v25 = vadd.f32 %v6343_v2, %v3166_v58  ;;  %v4171_v34 = vpop.f32.mrb[211].mxu0 }
 0xb89   :  { %v5865_v4 = vmul.f32 -1.442695, %v4231_v28  ;;  %v4232_v54 = vadd.f32 %v4171_v34, %v3156_v10  ;;  %v3206_v10 = vadd.f32 %v9243_v42, %v9117_v62  ;;  %v3196_v34 = vadd.f32 %v9226_v11, %v9099_v3 }
 0xb8a   :  { %7150 = vpow2.f32 %v5867_v36  ;;  %v5868_v50 = vmul.f32 -1.442695, %v4234_v25  ;;  %v3222_v11 = vadd.f32 %v9265_v46, %v9125_v17 }
 0xb8b   :  { %7152 = vpow2.f32 %v5865_v4  ;;  %v5866_v12 = vmul.f32 -1.442695, %v4232_v54 }
 0xb8c   :  { %7154 = vpow2.f32 %v5868_v50 }
 0xb8d   :  { %7156 = vpow2.f32 %v5866_v12  ;;  %v6346_v26 = vpop.f32.mrb[212].mxu0 }
 0xb8e   :  { %v4237_v37 = vadd.f32 %v6346_v26, %v3182_v61  ;;  %v4184_v23 = vpop.f32.mrb[213].mxu0 }
 0xb8f   :  { %v4235_v22 = vadd.f32 %v4184_v23, %v3172_v48  ;;  %v6347_v21 = vpop.f32.mrb[214].mxu0 }
 0xb90   :  { %v5871_v51 = vmul.f32 -1.442695, %v4237_v37  ;;  %v4238_v8 = vadd.f32 %v6347_v21, %v3186_v40  ;;  %v4187_v15 = vpop.f32.mrb[215].mxu0 }
 0xb91   :  { %v5869_v18 = vmul.f32 -1.442695, %v4235_v22  ;;  %v4236_v47 = vadd.f32 %v4187_v15, %v3176_v16  ;;  %v10229_v16 = vld [vmem:[#allocation71_spill] sm:$0xff]  ;;  %v10230_v15 = vld [vmem:[#allocation94_spill] sm:$0xff] }
 0xb92   :  { %7158 = vpow2.f32 %v5871_v51  ;;  %v5872_v55 = vmul.f32 -1.442695, %v4238_v8  ;;  %v3212_v22 = vadd.f32 %v10229_v16, %v9103_v52 }
 0xb93   :  { %7160 = vpow2.f32 %v5869_v18  ;;  %v5870_v20 = vmul.f32 -1.442695, %v4236_v47  ;;  %v10231_v18 = vld [vmem:[#allocation99_spill] sm:$0xff] }
 0xb94   :  { %v7151_v0 = vpop.eup %7150  ;;  %7162 = vpow2.f32 %v5872_v55  ;;  %v3226_v47 = vadd.f32 %v10231_v18, %v10230_v15 }
 0xb95   :  { %v7153_v5 = vpop.eup %7152  ;;  %v4285_v58 = vadd.f32 1.0, %v7151_v0  ;;  %7164 = vpow2.f32 %v5870_v20  ;;  %v6350_v49 = vpop.f32.mrb[216].mxu0 }
 0xb96   :  { %v7155_v19 = vpop.eup %7154  ;;  %v4283_v28 = vadd.f32 1.0, %v7153_v5  ;;  %v4241_v2 = vadd.f32 %v6350_v49, %v3202_v7  ;;  %v4200_v36 = vpop.f32.mrb[217].mxu0  ;;  %v10232_v5 = vld [vmem:[#allocation73_spill] sm:$0xff] }
 0xb97   :  { %v7157_v25 = vpop.eup %7156  ;;  %7166 = vrcp.f32 %v4285_v58  ;;  %v4286_v14 = vadd.f32 1.0, %v7155_v19  ;;  %v4239_v4 = vadd.f32 %v4200_v36, %v3192_v1  ;;  %v6351_v54 = vpop.f32.mrb[218].mxu0  ;;  %v10233_v1 = vld [vmem:[#allocation75_spill] sm:$0xff] }
 0xb98   :  { %7168 = vrcp.f32 %v4283_v28  ;;  %v4284_v32 = vadd.f32 1.0, %v7157_v25  ;;  %v5875_v50 = vmul.f32 -1.442695, %v4241_v2  ;;  %v4242_v12 = vadd.f32 %v6351_v54, %v3206_v10  ;;  %v4203_v61 = vpop.f32.mrb[219].mxu0 }
 0xb99   :  { %7170 = vrcp.f32 %v4286_v14  ;;  %v5873_v48 = vmul.f32 -1.442695, %v4239_v4  ;;  %v4240_v26 = vadd.f32 %v4203_v61, %v3196_v34  ;;  %v3216_v46 = vadd.f32 %v10233_v1, %v10232_v5 }
 0xb9a   :  { %7172 = vrcp.f32 %v4284_v32  ;;  %v5876_v42 = vmul.f32 -1.442695, %v4242_v12 }
 0xb9b   :  { %7174 = vpow2.f32 %v5875_v50  ;;  %v5874_v40 = vmul.f32 -1.442695, %v4240_v26 }
 0xb9c   :  { %v7159_v37 = vpop.eup %7158  ;;  %7176 = vpow2.f32 %v5873_v48 }
 0xb9d   :  { %v7161_v23 = vpop.eup %7160  ;;  %v4289_v21 = vadd.f32 1.0, %v7159_v37  ;;  %7178 = vpow2.f32 %v5876_v42  ;;  %v6354_v51 = vpop.f32.mrb[220].mxu0 }
 0xb9e   :  { %v7163_v8 = vpop.eup %7162  ;;  %v4287_v55 = vadd.f32 1.0, %v7161_v23  ;;  %7180 = vpow2.f32 %v5874_v40  ;;  %v4245_v20 = vadd.f32 %v6354_v51, %v3222_v11  ;;  %v4216_v0 = vpop.f32.mrb[221].mxu0 }
 0xb9f   :  { %v7165_v7 = vpop.eup %7164  ;;  %7182 = vrcp.f32 %v4289_v21  ;;  %v4290_v58 = vadd.f32 1.0, %v7163_v8  ;;  %v4243_v49 = vadd.f32 %v4216_v0, %v3212_v22  ;;  %v6355_v19 = vpop.f32.mrb[222].mxu0 }
 0xba0   :  { %7184 = vrcp.f32 %v4287_v55  ;;  %v4288_v10 = vadd.f32 1.0, %v7165_v7  ;;  %v4246_v28 = vadd.f32 %v6355_v19, %v3226_v47  ;;  %v4219_v2 = vpop.f32.mrb[223].mxu0 }
 0xba1   :  { %v7167_v36 = vpop.eup %7166  ;;  %7186 = vrcp.f32 %v4290_v58  ;;  %v4244_v25 = vadd.f32 %v4219_v2, %v3216_v46 }
 0xba2   :  { %v7169_v34 = vpop.eup %7168  ;;  %7188 = vrcp.f32 %v4288_v10 }
 0xba3   :  { %v7171_v14 = vpop.eup %7170  ;;  %7190 = vtanh.f32 %v4245_v20 }
 0xba4   :  { %v7173_v4 = vpop.eup %7172  ;;  %7192 = vtanh.f32 %v4243_v49 }
 0xba5   :  { %v7175_v54 = vpop.eup %7174  ;;  %7194 = vtanh.f32 %v4246_v28 }
 0xba6   :  { %v7177_v32 = vpop.eup %7176  ;;  %7196 = vtanh.f32 %v4244_v25  ;;  %v4293_v26 = vadd.f32 1.0, %v7175_v54 }
 0xba7   :  { %v7179_v50 = vpop.eup %7178  ;;  %v4291_v40 = vadd.f32 1.0, %v7177_v32 }
 0xba8   :  { %v7181_v12 = vpop.eup %7180  ;;  %v4294_v23 = vadd.f32 1.0, %v7179_v50  ;;  %7198 = vrcp.f32 %v4293_v26 }
 0xba9   :  { %v7183_v61 = vpop.eup %7182  ;;  %v4292_v21 = vadd.f32 1.0, %v7181_v12  ;;  %7200 = vrcp.f32 %v4291_v40 }
 0xbaa   :  { %v7185_v48 = vpop.eup %7184  ;;  %v4325_v11 = vmul.f32 %v7183_v61, %v9456_v9  ;;  %7202 = vrcp.f32 %v4294_v23 }
 0xbab   :  { %v7187_v42 = vpop.eup %7186  ;;  %v4323_v22 = vmul.f32 %v7185_v48, %v9458_v31  ;;  %7204 = vrcp.f32 %v4292_v21  ;;  %v10238_v21 = vld [vmem:[#allocation43_spill] sm:$0xff] }
 0xbac   :  { %v7189_v37 = vpop.eup %7188  ;;  %v4326_v8 = vmul.f32 %v7187_v42, %v9461_v63 }
 0xbad   :  { %v7191_v16 = vpop.eup %7190  ;;  %v4324_v55 = vmul.f32 %v7189_v37, %v9464_v41 }
 0xbae   :  { %v7193_v51 = vpop.eup %7192  ;;  %v4329_v18 = vmul.f32 %v7191_v16, %v7167_v36 }
 0xbaf   :  { %v7195_v47 = vpop.eup %7194  ;;  %v4327_v20 = vmul.f32 %v7193_v51, %v7169_v34  ;;  %v3184_v51 = vadd.f32 %v10238_v21, %v9082_v43 }
 0xbb0   :  { %v7197_v0 = vpop.eup %7196  ;;  %v9520_v7 = vadd.f32 %v4329_v18, %v4325_v11  ;;  %v4330_v9 = vmul.f32 %v7195_v47, %v7171_v14 }
 0xbb1   :  { %v9522_v1 = vadd.f32 %v4327_v20, %v4323_v22  ;;  %v4328_v31 = vmul.f32 %v7197_v0, %v7173_v4 }
 0xbb2   :  { %7206 = vtanh.f32 %v9520_v7  ;;  %v9525_v46 = vadd.f32 %v4330_v9, %v4326_v8  ;;  %v7199_v41 = vpop.eup %7198  ;;  %v10239_v8 = vld [vmem:[#allocation39_spill] sm:$0xff] }
 0xbb3   :  { %7208 = vtanh.f32 %v9522_v1  ;;  %v9528_v63 = vadd.f32 %v4328_v31, %v4324_v55  ;;  %v7201_v58 = vpop.eup %7200  ;;  %v3174_v18 = vadd.f32 %v10239_v8, %v9054_v44  ;;  %v10240_v55 = vld [vmem:[#allocation63_spill] sm:$0xff] }
 0xbb4   :  { %7210 = vtanh.f32 %v9525_v46  ;;  %v7203_v49 = vpop.eup %7202  ;;  %v3188_v20 = vadd.f32 %v10240_v55, %v9084_v13  ;;  %v10241_v31 = vld [vmem:[#allocation51_spill] sm:$0xff] }
 0xbb5   :  { %7212 = vtanh.f32 %v9528_v63  ;;  %v7205_v19 = vpop.eup %7204  ;;  %v10246_v55 = vld [vmem:[#allocation87_spill] sm:$0xff] }
 0xbbc   :  { %v7207_v10 = vpop.eup %7206 }
 0xbbd   :  { %v7209_v28 = vpop.eup %7208  ;;  %v4341_v25 = vmul.f32 %v7207_v10, %v7199_v41  ;;  %v3178_v41 = vadd.f32 %v10241_v31, %v9061_v60 }
 0xbbe   :  { %v7211_v2 = vpop.eup %7210  ;;  %v4339_v14 = vmul.f32 %v7209_v28, %v7201_v58 }
 0xbbf   :  { %v7213_v36 = vpop.eup %7212  ;;  %v4342_v34 = vmul.f32 %v7211_v2, %v7203_v49 }
 0xbc0   :  { %v4340_v4 = vmul.f32 %v7213_v36, %v7205_v19 }
 0xbc1   :  { %v4360_v54 = vpack.c.bf16 %v4342_v34, %v4341_v25 }
 0xbc2   :  { %v4359_v32 = vpack.c.bf16 %v4340_v4, %v4339_v14  ;;  %v10242_v4 = vld [vmem:[#allocation59_spill] sm:$0xff] }
 0xbc4   :  { %6356 = vmatprep.subr.bf16.mxu1 %v4359_v32 }
 0xbc5   :  { %6357 = vmatpush3.bf16.msra.mxu1 %v4359_v32 }
 0xbc6   :  { %6358 = vmatprep.subr.bf16.mxu1 %v4360_v54 }
 0xbc9   :  { %6359 = vmatpush3.bf16.msra.mxu1 %v4360_v54  ;;  %v3204_v54 = vadd.f32 %v10242_v4, %v9113_v33 }
 0xbcc   :  { %6361 = vmatmul.mubr.msk.bf16.vlgmr.msra.gmra.mrb[208].mxu1 %vm911_vm2, %v9308_v45  ;;  %v10234_v45 = vld [vmem:[#allocation89_spill] sm:$0xff] }
 0xbcd   :  { %6364 = vmatprep.mubr.msk.bf16.mxu1 %vm911_vm2, %v9315_v59  ;;  %v3164_v59 = vadd.f32 %v10234_v45, %v9067_v6  ;;  %v10243_v45 = vld [vmem:[#allocation55_spill] sm:$0xff] }
 0xbd4   :  { %6365 = vmatmul.mubr.msk.bf16.gmra.mrb[212].mxu1 %vm911_vm2, %v9322_v38  ;;  %v10235_v38 = vld [vmem:[#allocation86_spill] sm:$0xff] }
 0xbd5   :  { %6368 = vmatprep.mubr.msk.bf16.mxu1 %vm911_vm2, %v9329_v56  ;;  %v3154_v50 = vadd.f32 %v10235_v38, %v9044_v35  ;;  %v10236_v56 = vld [vmem:[#allocation47_spill] sm:$0xff] }
 0xbd6   :  { %v3168_v61 = vadd.f32 %v10236_v56, %v9071_v29  ;;  %v10244_v56 = vld [vmem:[#allocation79_spill] sm:$0xff] }
 0xbdc   :  { %6369 = vmatmul.mubr.msk.bf16.gmra.mrb[216].mxu1 %vm911_vm2, %v9336_v24 }
 0xbdd   :  { %6372 = vmatprep.mubr.msk.bf16.mxu1 %vm911_vm2, %v9343_v30  ;;  %v10237_v30 = vld [vmem:[#allocation97_spill] sm:$0xff] }
 0xbde   :  { %v3158_v26 = vadd.f32 %v10237_v30, %v9050_v53 }
 0xbe4   :  { %6373 = vmatmul.mubr.msk.bf16.gmra.mrb[220].mxu1 %vm911_vm2, %v9350_v27 }
 0xbe5   :  { %6400 = vmatprep.mubr.msk.bf16.mxu1 %vm911_vm2, %v9301_v57 }
 0xc9f   :  { %v6362_v12 = vpop.f32.mrb[208].mxu1 }
 0xca0   :  { %v4460_v24 = vadd.f32 %v6362_v12, %v3164_v59  ;;  %v4395_v48 = vpop.f32.mrb[209].mxu1  ;;  %v3194_v59 = vadd.f32 %v10243_v45, %v10219_v39 }
 0xca1   :  { %v4458_v42 = vadd.f32 %v4395_v48, %v3154_v50  ;;  %v6363_v27 = vpop.f32.mrb[210].mxu1 }
 0xca2   :  { %v5887_v40 = vmul.f32 -1.442695, %v4460_v24  ;;  %v4461_v37 = vadd.f32 %v6363_v27, %v3168_v61  ;;  %v4398_v57 = vpop.f32.mrb[211].mxu1  ;;  %v3208_v61 = vadd.f32 %v10244_v56, %v9117_v62 }
 0xca3   :  { %v5885_v11 = vmul.f32 -1.442695, %v4458_v42  ;;  %v4459_v23 = vadd.f32 %v4398_v57, %v3158_v26  ;;  %v10245_v42 = vld [vmem:[#allocation67_spill] sm:$0xff] }
 0xca4   :  { %7214 = vpow2.f32 %v5887_v40  ;;  %v5888_v16 = vmul.f32 -1.442695, %v4461_v37  ;;  %v3198_v27 = vadd.f32 %v10245_v42, %v9099_v3 }
 0xca5   :  { %7216 = vpow2.f32 %v5885_v11  ;;  %v5886_v22 = vmul.f32 -1.442695, %v4459_v23 }
 0xca6   :  { %7218 = vpow2.f32 %v5888_v16 }
 0xca7   :  { %7220 = vpow2.f32 %v5886_v22  ;;  %v6366_v47 = vpop.f32.mrb[212].mxu1 }
 0xca8   :  { %v4464_v0 = vadd.f32 %v6366_v47, %v3184_v51  ;;  %v4411_v9 = vpop.f32.mrb[213].mxu1 }
 0xca9   :  { %v4462_v58 = vadd.f32 %v4411_v9, %v3174_v18  ;;  %v6367_v49 = vpop.f32.mrb[214].mxu1  ;;  %v10247_v9 = vld [vmem:[#allocation83_spill] sm:$0xff] }
 0xcaa   :  { %v5891_v19 = vmul.f32 -1.442695, %v4464_v0  ;;  %v4465_v10 = vadd.f32 %v6367_v49, %v3188_v20  ;;  %v4414_v28 = vpop.f32.mrb[215].mxu1  ;;  %v3224_v20 = vadd.f32 %v10246_v55, %v9125_v17  ;;  %v3214_v31 = vadd.f32 %v10247_v9, %v9103_v52 }
 0xcab   :  { %v5889_v2 = vmul.f32 -1.442695, %v4462_v58  ;;  %v4463_v36 = vadd.f32 %v4414_v28, %v3178_v41 }
 0xcac   :  { %7222 = vpow2.f32 %v5891_v19  ;;  %v5892_v25 = vmul.f32 -1.442695, %v4465_v10  ;;  %v10248_v19 = vld [vmem:[#allocation91_spill] sm:$0xff] }
 0xcad   :  { %7224 = vpow2.f32 %v5889_v2  ;;  %v5890_v34 = vmul.f32 -1.442695, %v4463_v36  ;;  %v3228_v10 = vadd.f32 %v10248_v19, %v10230_v15 }
 0xcae   :  { %v7215_v14 = vpop.eup %7214  ;;  %7226 = vpow2.f32 %v5892_v25 }
 0xcaf   :  { %v7217_v32 = vpop.eup %7216  ;;  %v4512_v38 = vadd.f32 1.0, %v7215_v14  ;;  %7228 = vpow2.f32 %v5890_v34  ;;  %v6370_v50 = vpop.f32.mrb[216].mxu1  ;;  %v10249_v34 = vld [vmem:[#allocation95_spill] sm:$0xff] }
 0xcb0   :  { %v7219_v12 = vpop.eup %7218  ;;  %v4510_v24 = vadd.f32 1.0, %v7217_v32  ;;  %v4468_v48 = vadd.f32 %v6370_v50, %v3204_v54  ;;  %v4427_v30 = vpop.f32.mrb[217].mxu1  ;;  %v3218_v14 = vadd.f32 %v10249_v34, %v10232_v5 }
 0xcb1   :  { %v7221_v26 = vpop.eup %7220  ;;  %7230 = vrcp.f32 %v4512_v38  ;;  %v4513_v40 = vadd.f32 1.0, %v7219_v12  ;;  %v4466_v37 = vadd.f32 %v4427_v30, %v3194_v59  ;;  %v6371_v57 = vpop.f32.mrb[218].mxu1 }
 0xcb2   :  { %7232 = vrcp.f32 %v4510_v24  ;;  %v4511_v11 = vadd.f32 1.0, %v7221_v26  ;;  %v5895_v23 = vmul.f32 -1.442695, %v4468_v48  ;;  %v4469_v16 = vadd.f32 %v6371_v57, %v3208_v61  ;;  %v4430_v22 = vpop.f32.mrb[219].mxu1 }
 0xcb3   :  { %7234 = vrcp.f32 %v4513_v40  ;;  %v5893_v21 = vmul.f32 -1.442695, %v4466_v37  ;;  %v4467_v51 = vadd.f32 %v4430_v22, %v3198_v27 }
 0xcb4   :  { %7236 = vrcp.f32 %v4511_v11  ;;  %v5896_v8 = vmul.f32 -1.442695, %v4469_v16 }
 0xcb5   :  { %7238 = vpow2.f32 %v5895_v23  ;;  %v5894_v18 = vmul.f32 -1.442695, %v4467_v51 }
 0xcb6   :  { %v7223_v47 = vpop.eup %7222  ;;  %7240 = vpow2.f32 %v5893_v21 }
 0xcb7   :  { %v7225_v0 = vpop.eup %7224  ;;  %v4516_v41 = vadd.f32 1.0, %v7223_v47  ;;  %7242 = vpow2.f32 %v5896_v8  ;;  %v6374_v58 = vpop.f32.mrb[220].mxu1 }
 0xcb8   :  { %v7227_v49 = vpop.eup %7226  ;;  %v4514_v28 = vadd.f32 1.0, %v7225_v0  ;;  %7244 = vpow2.f32 %v5894_v18  ;;  %v4472_v2 = vadd.f32 %v6374_v58, %v3224_v20  ;;  %v4443_v36 = vpop.f32.mrb[221].mxu1 }
 0xcb9   :  { %v7229_v25 = vpop.eup %7228  ;;  %7246 = vrcp.f32 %v4516_v41  ;;  %v4517_v4 = vadd.f32 1.0, %v7227_v49  ;;  %v4470_v54 = vadd.f32 %v4443_v36, %v3214_v31  ;;  %v6375_v32 = vpop.f32.mrb[222].mxu1 }
 0xcba   :  { %7248 = vrcp.f32 %v4514_v28  ;;  %v4515_v45 = vadd.f32 1.0, %v7229_v25  ;;  %v4473_v59 = vadd.f32 %v6375_v32, %v3228_v10  ;;  %v4446_v38 = vpop.f32.mrb[223].mxu1 }
 0xcbb   :  { %v7231_v50 = vpop.eup %7230  ;;  %7250 = vrcp.f32 %v4517_v4  ;;  %v4471_v12 = vadd.f32 %v4446_v38, %v3218_v14  ;;  %v9599_v38 = vld [vmem:[%s9896_s5 + $0x8] sm:$0xff]  }
 0xcbc   :  { %v7233_v56 = vpop.eup %7232  ;;  %7252 = vrcp.f32 %v4515_v45 }
 0xcbd   :  { %v7235_v61 = vpop.eup %7234  ;;  %7254 = vtanh.f32 %v4472_v2 }
 0xcbe   :  { %v7237_v24 = vpop.eup %7236  ;;  %7256 = vtanh.f32 %v4470_v54 }
 0xcbf   :  { %v7239_v48 = vpop.eup %7238  ;;  %7258 = vtanh.f32 %v4473_v59 }
 0xcc0   :  { %v7241_v30 = vpop.eup %7240  ;;  %7260 = vtanh.f32 %v4471_v12  ;;  %v4520_v37 = vadd.f32 1.0, %v7239_v48  ;;  %v9613_v12 = vld [vmem:[%s9896_s5 + $0x18] sm:$0xff]  }
 0xcc1   :  { %v7243_v26 = vpop.eup %7242  ;;  %v4518_v11 = vadd.f32 1.0, %v7241_v30  ;;  %v9641_v48 = vld [vmem:[%s9896_s5 + $0x38] sm:$0xff]   ;;  %v9648_v30 = vld [vmem:[%s9896_s5] sm:$0xff]  }
 0xcc2   :  { %v7245_v42 = vpop.eup %7244  ;;  %v4521_v22 = vadd.f32 1.0, %v7243_v26  ;;  %7262 = vrcp.f32 %v4520_v37  ;;  %v10250_v26 = vld [vmem:[#allocation36_spill] sm:$0xff] }
 0xcc3   :  { %v7247_v27 = vpop.eup %7246  ;;  %v4519_v8 = vadd.f32 1.0, %v7245_v42  ;;  %7264 = vrcp.f32 %v4518_v11  ;;  %v3275_v42 = vadd.f32 %v10250_v26, %v9067_v6 }
 0xcc4   :  { %v7249_v40 = vpop.eup %7248  ;;  %v4552_v16 = vmul.f32 %v7247_v27, %v9520_v7  ;;  %7266 = vrcp.f32 %v4521_v22  ;;  %v10251_v27 = vld [vmem:[#allocation26_spill] sm:$0xff]  ;;  %v10253_v22 = vld [vmem:[#allocation33_spill] sm:$0xff] }
 0xcc5   :  { %v7251_v57 = vpop.eup %7250  ;;  %v4550_v51 = vmul.f32 %v7249_v40, %v9522_v1  ;;  %7268 = vrcp.f32 %v4519_v8  ;;  %v3265_v40 = vadd.f32 %v10251_v27, %v9044_v35 }
 0xcc6   :  { %v7253_v23 = vpop.eup %7252  ;;  %v4553_v47 = vmul.f32 %v7251_v57, %v9525_v46  ;;  %v10252_v57 = vld [vmem:[#allocation9_spill] sm:$0xff] }
 0xcc7   :  { %v7255_v21 = vpop.eup %7254  ;;  %v4551_v0 = vmul.f32 %v7253_v23, %v9528_v63  ;;  %v3279_v11 = vadd.f32 %v10252_v57, %v9071_v29  ;;  %v10258_v57 = vld [vmem:[#allocation37_spill] sm:$0xff] }
 0xcc8   :  { %v7257_v18 = vpop.eup %7256  ;;  %v4556_v55 = vmul.f32 %v7255_v21, %v7231_v50  ;;  %v9606_v50 = vld [vmem:[%s9896_s5 + $0x10] sm:$0xff]   ;;  %v3269_v21 = vadd.f32 %v10253_v22, %v9050_v53 }
 0xcc9   :  { %v7259_v20 = vpop.eup %7258  ;;  %v4554_v9 = vmul.f32 %v7257_v18, %v7233_v56  ;;  %v9620_v56 = vld [vmem:[%s9896_s5 + $0x20] sm:$0xff]  }
 0xcca   :  { %v7261_v31 = vpop.eup %7260  ;;  %v9584_v41 = vadd.f32 %v4556_v55, %v4552_v16  ;;  %v4557_v7 = vmul.f32 %v7259_v20, %v7235_v61  ;;  %v9627_v61 = vld [vmem:[%s9896_s5 + $0x28] sm:$0xff]  }
 0xccb   :  { %v9586_v58 = vadd.f32 %v4554_v9, %v4550_v51  ;;  %v4555_v1 = vmul.f32 %v7261_v31, %v7237_v24  ;;  %v9634_v24 = vld [vmem:[%s9896_s5 + $0x30] sm:$0xff]  }
 0xccc   :  { %7270 = vtanh.f32 %v9584_v41  ;;  %v9589_v49 = vadd.f32 %v4557_v7, %v4553_v47  ;;  %v7263_v63 = vpop.eup %7262  ;;  %v10254_v7 = vld [vmem:[#allocation19_spill] sm:$0xff] }
 0xccd   :  { %7272 = vtanh.f32 %v9586_v58  ;;  %v9592_v46 = vadd.f32 %v4555_v1, %v4551_v0  ;;  %v7265_v19 = vpop.eup %7264  ;;  %v3295_v1 = vadd.f32 %v10254_v7, %v9082_v43 }
 0xcce   :  { %7274 = vtanh.f32 %v9589_v49  ;;  %v7267_v10 = vpop.eup %7266 }
 0xccf   :  { %7276 = vtanh.f32 %v9592_v46  ;;  %v7269_v28 = vpop.eup %7268 }
 0xcd6   :  { %v7271_v2 = vpop.eup %7270 }
 0xcd7   :  { %v7273_v36 = vpop.eup %7272  ;;  %v4568_v14 = vmul.f32 %v7271_v2, %v7263_v63  ;;  %v10255_v63 = vld [vmem:[#allocation11_spill] sm:$0xff] }
 0xcd8   :  { %v7275_v25 = vpop.eup %7274  ;;  %v4566_v54 = vmul.f32 %v7273_v36, %v7265_v19  ;;  %v3285_v19 = vadd.f32 %v10255_v63, %v9054_v44 }
 0xcd9   :  { %v7277_v34 = vpop.eup %7276  ;;  %v4569_v4 = vmul.f32 %v7275_v25, %v7267_v10 }
 0xcda   :  { %v4567_v32 = vmul.f32 %v7277_v34, %v7269_v28  ;;  %v10256_v28 = vld [vmem:[#allocation25_spill] sm:$0xff] }
 0xcdb   :  { %v4587_v45 = vpack.c.bf16 %v4569_v4, %v4568_v14  ;;  %v3299_v2 = vadd.f32 %v10256_v28, %v9084_v13  ;;  %v10257_v34 = vld [vmem:[#allocation17_spill] sm:$0xff] }
 0xcdc   :  { %v4586_v59 = vpack.c.bf16 %v4567_v32, %v4566_v54  ;;  %v3289_v14 = vadd.f32 %v10257_v34, %v9061_v60 }
 0xcde   :  { %6376 = vmatprep.subr.bf16.mxu0 %v4586_v59 }
 0xcdf   :  { %6377 = vmatpush3.bf16.msra.mxu0 %v4586_v59 }
 0xce0   :  { %6378 = vmatprep.subr.bf16.mxu0 %v4587_v45 }
 0xce3   :  { %6379 = vmatpush3.bf16.msra.mxu0 %v4587_v45 }
 0xce6   :  { %6381 = vmatmul.mubr.msk.bf16.vlgmr.msra.gmra.mrb[224].mxu0 %vm911_vm2, %v9599_v38 }
 0xce7   :  { %6384 = vmatprep.mubr.msk.bf16.mxu0 %vm911_vm2, %v9606_v50 }
 0xcee   :  { %6385 = vmatmul.mubr.msk.bf16.gmra.mrb[228].mxu0 %vm911_vm2, %v9613_v12 }
 0xcef   :  { %6388 = vmatprep.mubr.msk.bf16.mxu0 %vm911_vm2, %v9620_v56 }
 0xcf6   :  { %6389 = vmatmul.mubr.msk.bf16.gmra.mrb[232].mxu0 %vm911_vm2, %v9627_v61 }
 0xcf7   :  { %6392 = vmatprep.mubr.msk.bf16.mxu0 %vm911_vm2, %v9634_v24 }
 0xcfe   :  { %6393 = vmatmul.mubr.msk.bf16.gmra.mrb[236].mxu0 %vm911_vm2, %v9641_v48 }
 0xcff   :  { %6420 = vmatprep.mubr.msk.bf16.mxu0 %vm911_vm2, %v9648_v30 }
 0xdb9   :  { %v6382_v37 = vpop.f32.mrb[224].mxu0 }
 0xdba   :  { %v4687_v23 = vadd.f32 %v6382_v37, %v3275_v42  ;;  %v4622_v16 = vpop.f32.mrb[225].mxu0 }
 0xdbb   :  { %v4685_v51 = vadd.f32 %v4622_v16, %v3265_v40  ;;  %v6383_v8 = vpop.f32.mrb[226].mxu0  ;;  %v10259_v16 = vld [vmem:[#allocation27_spill] sm:$0xff] }
 0xdbc   :  { %v5907_v18 = vmul.f32 -1.442695, %v4687_v23  ;;  %v4688_v47 = vadd.f32 %v6383_v8, %v3279_v11  ;;  %v4625_v55 = vpop.f32.mrb[227].mxu0  ;;  %v3315_v11 = vadd.f32 %v10258_v57, %v9113_v33  ;;  %v3305_v22 = vadd.f32 %v10259_v16, %v10219_v39  ;;  %v10264_v57 = vld [vmem:[#allocation78_spill] sm:$0xff] }
 0xdbd   :  { %v5905_v20 = vmul.f32 -1.442695, %v4685_v51  ;;  %v4686_v0 = vadd.f32 %v4625_v55, %v3269_v21 }
 0xdbe   :  { %7278 = vpow2.f32 %v5907_v18  ;;  %v5908_v9 = vmul.f32 -1.442695, %v4688_v47  ;;  %v10260_v18 = vld [vmem:[#allocation46_spill] sm:$0xff] }
 0xdbf   :  { %7280 = vpow2.f32 %v5905_v20  ;;  %v5906_v31 = vmul.f32 -1.442695, %v4686_v0  ;;  %v3319_v47 = vadd.f32 %v10260_v18, %v9117_v62 }
 0xdc0   :  { %7282 = vpow2.f32 %v5908_v9 }
 0xdc1   :  { %7284 = vpow2.f32 %v5906_v31  ;;  %v6386_v10 = vpop.f32.mrb[228].mxu0  ;;  %v10261_v31 = vld [vmem:[#allocation34_spill] sm:$0xff] }
 0xdc2   :  { %v4691_v36 = vadd.f32 %v6386_v10, %v3295_v1  ;;  %v4638_v25 = vpop.f32.mrb[229].mxu0  ;;  %v3309_v7 = vadd.f32 %v10261_v31, %v9099_v3 }
 0xdc3   :  { %v4689_v4 = vadd.f32 %v4638_v25, %v3285_v19  ;;  %v6387_v54 = vpop.f32.mrb[230].mxu0 }
 0xdc4   :  { %v5911_v32 = vmul.f32 -1.442695, %v4691_v36  ;;  %v4692_v45 = vadd.f32 %v6387_v54, %v3299_v2  ;;  %v4641_v59 = vpop.f32.mrb[231].mxu0 }
 0xdc5   :  { %v5909_v26 = vmul.f32 -1.442695, %v4689_v4  ;;  %v4690_v42 = vadd.f32 %v4641_v59, %v3289_v14 }
 0xdc6   :  { %7286 = vpow2.f32 %v5911_v32  ;;  %v5912_v27 = vmul.f32 -1.442695, %v4692_v45  ;;  %v10262_v32 = vld [vmem:[#allocation65_spill] sm:$0xff] }
 0xdc7   :  { %7288 = vpow2.f32 %v5909_v26  ;;  %v5910_v40 = vmul.f32 -1.442695, %v4690_v42  ;;  %v3335_v45 = vadd.f32 %v10262_v32, %v9125_v17  ;;  %v10263_v26 = vld [vmem:[#allocation49_spill] sm:$0xff] }
 0xdc8   :  { %v7279_v37 = vpop.eup %7278  ;;  %7290 = vpow2.f32 %v5912_v27  ;;  %v3325_v42 = vadd.f32 %v10263_v26, %v9103_v52 }
 0xdc9   :  { %v7281_v23 = vpop.eup %7280  ;;  %v4739_v21 = vadd.f32 1.0, %v7279_v37  ;;  %7292 = vpow2.f32 %v5910_v40  ;;  %v6390_v51 = vpop.f32.mrb[232].mxu0 }
 0xdca   :  { %v7283_v8 = vpop.eup %7282  ;;  %v4737_v55 = vadd.f32 1.0, %v7281_v23  ;;  %v4695_v20 = vadd.f32 %v6390_v51, %v3315_v11  ;;  %v4654_v0 = vpop.f32.mrb[233].mxu0  ;;  %v3339_v11 = vadd.f32 %v10264_v57, %v10230_v15  ;;  %v10265_v51 = vld [vmem:[#allocation62_spill] sm:$0xff] }
 0xdcb   :  { %v7285_v9 = vpop.eup %7284  ;;  %7294 = vrcp.f32 %v4739_v21  ;;  %v4740_v1 = vadd.f32 1.0, %v7283_v8  ;;  %v4693_v63 = vadd.f32 %v4654_v0, %v3305_v22  ;;  %v6391_v19 = vpop.f32.mrb[234].mxu0  ;;  %v3329_v8 = vadd.f32 %v10265_v51, %v10232_v5 }
 0xdcc   :  { %7296 = vrcp.f32 %v4737_v55  ;;  %v4738_v10 = vadd.f32 1.0, %v7285_v9  ;;  %v5915_v28 = vmul.f32 -1.442695, %v4695_v20  ;;  %v4696_v2 = vadd.f32 %v6391_v19, %v3319_v47  ;;  %v4657_v36 = vpop.f32.mrb[235].mxu0 }
 0xdcd   :  { %7298 = vrcp.f32 %v4740_v1  ;;  %v5913_v25 = vmul.f32 -1.442695, %v4693_v63  ;;  %v4694_v34 = vadd.f32 %v4657_v36, %v3309_v7 }
 0xdce   :  { %7300 = vrcp.f32 %v4738_v10  ;;  %v5916_v14 = vmul.f32 -1.442695, %v4696_v2 }
 0xdcf   :  { %7302 = vpow2.f32 %v5915_v28  ;;  %v5914_v4 = vmul.f32 -1.442695, %v4694_v34 }
 0xdd0   :  { %v7287_v54 = vpop.eup %7286  ;;  %7304 = vpow2.f32 %v5913_v25 }
 0xdd1   :  { %v7289_v59 = vpop.eup %7288  ;;  %v4743_v27 = vadd.f32 1.0, %v7287_v54  ;;  %7306 = vpow2.f32 %v5916_v14  ;;  %v6394_v40 = vpop.f32.mrb[236].mxu0 }
 0xdd2   :  { %v7291_v37 = vpop.eup %7290  ;;  %v4741_v23 = vadd.f32 1.0, %v7289_v59  ;;  %7308 = vpow2.f32 %v5914_v4  ;;  %v4699_v16 = vadd.f32 %v6394_v40, %v3335_v45  ;;  %v4670_v22 = vpop.f32.mrb[237].mxu0 }
 0xdd3   :  { %v7293_v21 = vpop.eup %7292  ;;  %7310 = vrcp.f32 %v4743_v27  ;;  %v4744_v18 = vadd.f32 1.0, %v7291_v37  ;;  %v4697_v47 = vadd.f32 %v4670_v22, %v3325_v42  ;;  %v6395_v55 = vpop.f32.mrb[238].mxu0 }
 0xdd4   :  { %7312 = vrcp.f32 %v4741_v23  ;;  %v4742_v20 = vadd.f32 1.0, %v7293_v21  ;;  %v4700_v0 = vadd.f32 %v6395_v55, %v3339_v11  ;;  %v4673_v9 = vpop.f32.mrb[239].mxu0 }
 0xdd5   :  { %v7295_v31 = vpop.eup %7294  ;;  %7314 = vrcp.f32 %v4744_v18  ;;  %v4698_v7 = vadd.f32 %v4673_v9, %v3329_v8 }
 0xdd6   :  { %v7297_v1 = vpop.eup %7296  ;;  %7316 = vrcp.f32 %v4742_v20 }
 0xdd7   :  { %v7299_v63 = vpop.eup %7298  ;;  %7318 = vtanh.f32 %v4699_v16 }
 0xdd8   :  { %v7301_v19 = vpop.eup %7300  ;;  %7320 = vtanh.f32 %v4697_v47 }
 0xdd9   :  { %v7303_v10 = vpop.eup %7302  ;;  %7322 = vtanh.f32 %v4700_v0 }
 0xdda   :  { %v7305_v28 = vpop.eup %7304  ;;  %7324 = vtanh.f32 %v4698_v7  ;;  %v4747_v14 = vadd.f32 1.0, %v7303_v10 }
 0xddb   :  { %v7307_v2 = vpop.eup %7306  ;;  %v4745_v54 = vadd.f32 1.0, %v7305_v28 }
 0xddc   :  { %v7309_v36 = vpop.eup %7308  ;;  %v4748_v59 = vadd.f32 1.0, %v7307_v2  ;;  %7326 = vrcp.f32 %v4747_v14  ;;  %v10266_v2 = vld [vmem:[#allocation31_spill] sm:$0xff] }
 0xddd   :  { %v7311_v25 = vpop.eup %7310  ;;  %v4746_v27 = vadd.f32 1.0, %v7309_v36  ;;  %7328 = vrcp.f32 %v4745_v54  ;;  %v3277_v36 = vadd.f32 %v10266_v2, %v9067_v6 }
 0xdde   :  { %v7313_v34 = vpop.eup %7312  ;;  %v4779_v45 = vmul.f32 %v7311_v25, %v9584_v41  ;;  %7330 = vrcp.f32 %v4748_v59  ;;  %v10267_v25 = vld [vmem:[#allocation22_spill] sm:$0xff]  ;;  %v10269_v59 = vld [vmem:[#allocation28_spill] sm:$0xff] }
 0xddf   :  { %v7315_v4 = vpop.eup %7314  ;;  %v4777_v42 = vmul.f32 %v7313_v34, %v9586_v58  ;;  %7332 = vrcp.f32 %v4746_v27  ;;  %v3267_v34 = vadd.f32 %v10267_v25, %v9044_v35 }
 0xde0   :  { %v7317_v32 = vpop.eup %7316  ;;  %v4780_v37 = vmul.f32 %v7315_v4, %v9589_v49  ;;  %v10268_v4 = vld [vmem:[#allocation5_spill] sm:$0xff] }
 0xde1   :  { %v7319_v26 = vpop.eup %7318  ;;  %v4778_v23 = vmul.f32 %v7317_v32, %v9592_v46  ;;  %v3281_v54 = vadd.f32 %v10268_v4, %v9071_v29 }
 0xde2   :  { %v7321_v40 = vpop.eup %7320  ;;  %v4783_v57 = vmul.f32 %v7319_v26, %v7295_v31  ;;  %v3271_v26 = vadd.f32 %v10269_v59, %v9050_v53 }
 0xde3   :  { %v7323_v11 = vpop.eup %7322  ;;  %v4781_v16 = vmul.f32 %v7321_v40, %v7297_v1 }
 0xde4   :  { %v7325_v22 = vpop.eup %7324  ;;  %v9688_v21 = vadd.f32 %v4783_v57, %v4779_v45  ;;  %v4784_v41 = vmul.f32 %v7323_v11, %v7299_v63 }
 0xde5   :  { %v9690_v51 = vadd.f32 %v4781_v16, %v4777_v42  ;;  %v4782_v58 = vmul.f32 %v7325_v22, %v7301_v19  ;;  %v10270_v22 = vld [vmem:[#allocation15_spill] sm:$0xff] }
 0xde6   :  { %7334 = vtanh.f32 %v9688_v21  ;;  %v9693_v8 = vadd.f32 %v4784_v41, %v4780_v37  ;;  %v7327_v46 = vpop.eup %7326  ;;  %v3297_v41 = vadd.f32 %v10270_v22, %v9082_v43 }
 0xde7   :  { %7336 = vtanh.f32 %v9690_v51  ;;  %v9696_v49 = vadd.f32 %v4782_v58, %v4778_v23  ;;  %v7329_v18 = vpop.eup %7328  ;;  %v10271_v58 = vld [vmem:[#allocation7_spill] sm:$0xff] }
 0xde8   :  { %7338 = vtanh.f32 %v9693_v8  ;;  %v7331_v47 = vpop.eup %7330 }
 0xde9   :  { %7340 = vtanh.f32 %v9696_v49  ;;  %v7333_v55 = vpop.eup %7332 }
 0xdf0   :  { %v7335_v20 = vpop.eup %7334 }
 0xdf1   :  { %v7337_v0 = vpop.eup %7336  ;;  %v4795_v7 = vmul.f32 %v7335_v20, %v7327_v46  ;;  %v3287_v46 = vadd.f32 %v10271_v58, %v9054_v44 }
 0xdf2   :  { %v7339_v9 = vpop.eup %7338  ;;  %v4793_v63 = vmul.f32 %v7337_v0, %v7329_v18 }
 0xdf3   :  { %v7341_v31 = vpop.eup %7340  ;;  %v4796_v1 = vmul.f32 %v7339_v9, %v7331_v47  ;;  %v10272_v47 = vld [vmem:[#allocation21_spill] sm:$0xff] }
 0xdf4   :  { %v4794_v19 = vmul.f32 %v7341_v31, %v7333_v55  ;;  %v3301_v55 = vadd.f32 %v10272_v47, %v9084_v13  ;;  %v10273_v9 = vld [vmem:[#allocation13_spill] sm:$0xff] }
 0xdf5   :  { %v4814_v10 = vpack.c.bf16 %v4796_v1, %v4795_v7  ;;  %v3291_v31 = vadd.f32 %v10273_v9, %v9061_v60 }
 0xdf6   :  { %v4813_v28 = vpack.c.bf16 %v4794_v19, %v4793_v63 }
 0xdf8   :  { %6396 = vmatprep.subr.bf16.mxu1 %v4813_v28 }
 0xdf9   :  { %6397 = vmatpush3.bf16.msra.mxu1 %v4813_v28 }
 0xdfa   :  { %6398 = vmatprep.subr.bf16.mxu1 %v4814_v10 }
 0xdfd   :  { %6399 = vmatpush3.bf16.msra.mxu1 %v4814_v10 }
 0xe00   :  { %6401 = vmatmul.mubr.msk.bf16.vlgmr.msra.gmra.mrb[224].mxu1 %vm911_vm2, %v9599_v38 }
 0xe01   :  { %6404 = vmatprep.mubr.msk.bf16.mxu1 %vm911_vm2, %v9606_v50 }
 0xe08   :  { %6405 = vmatmul.mubr.msk.bf16.gmra.mrb[228].mxu1 %vm911_vm2, %v9613_v12 }
 0xe09   :  { %6408 = vmatprep.mubr.msk.bf16.mxu1 %vm911_vm2, %v9620_v56 }
 0xe10   :  { %6409 = vmatmul.mubr.msk.bf16.gmra.mrb[232].mxu1 %vm911_vm2, %v9627_v61 }
 0xe11   :  { %6412 = vmatprep.mubr.msk.bf16.mxu1 %vm911_vm2, %v9634_v24 }
 0xe18   :  { %6413 = vmatmul.mubr.msk.bf16.gmra.mrb[236].mxu1 %vm911_vm2, %v9641_v48 }
 0xe19   :  { %6440 = vmatprep.mubr.msk.bf16.mxu1 %vm911_vm2, %v9648_v30 }
 0xed3   :  { %v6402_v14 = vpop.f32.mrb[224].mxu1 }
 0xed4   :  { %v4914_v32 = vadd.f32 %v6402_v14, %v3277_v36  ;;  %v4849_v45 = vpop.f32.mrb[225].mxu1  ;;  %v10274_v14 = vld [vmem:[#allocation32_spill] sm:$0xff] }
 0xed5   :  { %v4912_v42 = vadd.f32 %v4849_v45, %v3267_v34  ;;  %v6403_v27 = vpop.f32.mrb[226].mxu1  ;;  %v3317_v4 = vadd.f32 %v10274_v14, %v9113_v33 }
 0xed6   :  { %v5927_v40 = vmul.f32 -1.442695, %v4914_v32  ;;  %v4915_v37 = vadd.f32 %v6403_v27, %v3281_v54  ;;  %v4852_v30 = vpop.f32.mrb[227].mxu1  ;;  %v10275_v32 = vld [vmem:[#allocation23_spill] sm:$0xff]  ;;  %v10276_v27 = vld [vmem:[#allocation38_spill] sm:$0xff] }
 0xed7   :  { %v5925_v57 = vmul.f32 -1.442695, %v4912_v42  ;;  %v4913_v11 = vadd.f32 %v4852_v30, %v3271_v26  ;;  %v3307_v45 = vadd.f32 %v10275_v32, %v10219_v39 }
 0xed8   :  { %7342 = vpow2.f32 %v5927_v40  ;;  %v5928_v23 = vmul.f32 -1.442695, %v4915_v37  ;;  %v3321_v40 = vadd.f32 %v10276_v27, %v9117_v62 }
 0xed9   :  { %7344 = vpow2.f32 %v5925_v57  ;;  %v5926_v16 = vmul.f32 -1.442695, %v4913_v11 }
 0xeda   :  { %7346 = vpow2.f32 %v5928_v23  ;;  %v10277_v23 = vld [vmem:[#allocation29_spill] sm:$0xff] }
 0xedb   :  { %7348 = vpow2.f32 %v5926_v16  ;;  %v6406_v18 = vpop.f32.mrb[228].mxu1  ;;  %v3311_v16 = vadd.f32 %v10277_v23, %v9099_v3 }
 0xedc   :  { %v4918_v20 = vadd.f32 %v6406_v18, %v3297_v41  ;;  %v4865_v0 = vpop.f32.mrb[229].mxu1 }
 0xedd   :  { %v4916_v7 = vadd.f32 %v4865_v0, %v3287_v46  ;;  %v6407_v1 = vpop.f32.mrb[230].mxu1 }
 0xede   :  { %v5931_v63 = vmul.f32 -1.442695, %v4918_v20  ;;  %v4919_v19 = vadd.f32 %v6407_v1, %v3301_v55  ;;  %v4868_v10 = vpop.f32.mrb[231].mxu1  ;;  %v10278_v1 = vld [vmem:[#allocation57_spill] sm:$0xff] }
 0xedf   :  { %v5929_v28 = vmul.f32 -1.442695, %v4916_v7  ;;  %v4917_v2 = vadd.f32 %v4868_v10, %v3291_v31  ;;  %v10279_v10 = vld [vmem:[#allocation41_spill] sm:$0xff] }
 0xee0   :  { %7350 = vpow2.f32 %v5931_v63  ;;  %v5932_v36 = vmul.f32 -1.442695, %v4919_v19  ;;  %v3337_v63 = vadd.f32 %v10278_v1, %v9125_v17 }
 0xee1   :  { %7352 = vpow2.f32 %v5929_v28  ;;  %v5930_v25 = vmul.f32 -1.442695, %v4917_v2  ;;  %v3327_v28 = vadd.f32 %v10279_v10, %v9103_v52 }
 0xee2   :  { %v7343_v34 = vpop.eup %7342  ;;  %7354 = vpow2.f32 %v5932_v36 }
 0xee3   :  { %v7345_v54 = vpop.eup %7344  ;;  %v4966_v59 = vadd.f32 1.0, %v7343_v34  ;;  %7356 = vpow2.f32 %v5930_v25  ;;  %v6410_v26 = vpop.f32.mrb[232].mxu1  ;;  %v10280_v34 = vld [vmem:[#allocation70_spill] sm:$0xff] }
 0xee4   :  { %v7347_v42 = vpop.eup %7346  ;;  %v4964_v37 = vadd.f32 1.0, %v7345_v54  ;;  %v4922_v30 = vadd.f32 %v6410_v26, %v3317_v4  ;;  %v4881_v57 = vpop.f32.mrb[233].mxu1  ;;  %v3341_v14 = vadd.f32 %v10280_v34, %v10230_v15 }
 0xee5   :  { %v7349_v11 = vpop.eup %7348  ;;  %7358 = vrcp.f32 %v4966_v59  ;;  %v4967_v22 = vadd.f32 1.0, %v7347_v42  ;;  %v4920_v41 = vadd.f32 %v4881_v57, %v3307_v45  ;;  %v6411_v58 = vpop.f32.mrb[234].mxu1  ;;  %v10281_v59 = vld [vmem:[#allocation54_spill] sm:$0xff] }
 0xee6   :  { %7360 = vrcp.f32 %v4964_v37  ;;  %v4965_v46 = vadd.f32 1.0, %v7349_v11  ;;  %v5935_v18 = vmul.f32 -1.442695, %v4922_v30  ;;  %v4923_v47 = vadd.f32 %v6411_v58, %v3321_v40  ;;  %v4884_v55 = vpop.f32.mrb[235].mxu1 }
 0xee7   :  { %7362 = vrcp.f32 %v4967_v22  ;;  %v5933_v20 = vmul.f32 -1.442695, %v4920_v41  ;;  %v4921_v0 = vadd.f32 %v4884_v55, %v3311_v16  ;;  %v3331_v26 = vadd.f32 %v10281_v59, %v10232_v5 }
 0xee8   :  { %7364 = vrcp.f32 %v4965_v46  ;;  %v5936_v9 = vmul.f32 -1.442695, %v4923_v47 }
 0xee9   :  { %7366 = vpow2.f32 %v5935_v18  ;;  %v5934_v31 = vmul.f32 -1.442695, %v4921_v0 }
 0xeea   :  { %v7351_v7 = vpop.eup %7350  ;;  %7368 = vpow2.f32 %v5933_v20 }
 0xeeb   :  { %v7353_v19 = vpop.eup %7352  ;;  %v4970_v2 = vadd.f32 1.0, %v7351_v7  ;;  %7370 = vpow2.f32 %v5936_v9  ;;  %v6414_v36 = vpop.f32.mrb[236].mxu1 }
 0xeec   :  { %v7355_v25 = vpop.eup %7354  ;;  %v4968_v4 = vadd.f32 1.0, %v7353_v19  ;;  %7372 = vpow2.f32 %v5934_v31  ;;  %v4926_v54 = vadd.f32 %v6414_v36, %v3337_v63  ;;  %v4897_v32 = vpop.f32.mrb[237].mxu1 }
 0xeed   :  { %v7357_v45 = vpop.eup %7356  ;;  %7374 = vrcp.f32 %v4970_v2  ;;  %v4971_v42 = vadd.f32 1.0, %v7355_v25  ;;  %v4924_v27 = vadd.f32 %v4897_v32, %v3327_v28  ;;  %v6415_v40 = vpop.f32.mrb[238].mxu1 }
 0xeee   :  { %7376 = vrcp.f32 %v4968_v4  ;;  %v4969_v37 = vadd.f32 1.0, %v7357_v45  ;;  %v4927_v30 = vadd.f32 %v6415_v40, %v3341_v14  ;;  %v4900_v57 = vpop.f32.mrb[239].mxu1 }
 0xeef   :  { %v7359_v11 = vpop.eup %7358  ;;  %7378 = vrcp.f32 %v4971_v42  ;;  %v4925_v23 = vadd.f32 %v4900_v57, %v3331_v26 }
 0xef0   :  { %v7361_v16 = vpop.eup %7360  ;;  %7380 = vrcp.f32 %v4969_v37 }
 0xef1   :  { %v7363_v22 = vpop.eup %7362  ;;  %7382 = vtanh.f32 %v4926_v54 }
 0xef2   :  { %v7365_v41 = vpop.eup %7364  ;;  %7384 = vtanh.f32 %v4924_v27 }
 0xef3   :  { %v7367_v58 = vpop.eup %7366  ;;  %7386 = vtanh.f32 %v4927_v30 }
 0xef4   :  { %v7369_v46 = vpop.eup %7368  ;;  %7388 = vtanh.f32 %v4925_v23  ;;  %v4974_v0 = vadd.f32 1.0, %v7367_v58 }
 0xef5   :  { %v7371_v18 = vpop.eup %7370  ;;  %v4972_v31 = vadd.f32 1.0, %v7369_v46  ;;  %v10282_v46 = vld [vmem:[#allocation64_spill] sm:$0xff] }
 0xef6   :  { %v7373_v47 = vpop.eup %7372  ;;  %v4975_v63 = vadd.f32 1.0, %v7371_v18  ;;  %7390 = vrcp.f32 %v4974_v0  ;;  %v3388_v18 = vadd.f32 %v10282_v46, %v9067_v6  ;;  %v10284_v0 = vld [vmem:[#allocation68_spill] sm:$0xff] }
 0xef7   :  { %v7375_v55 = vpop.eup %7374  ;;  %v4973_v28 = vadd.f32 1.0, %v7373_v47  ;;  %7392 = vrcp.f32 %v4972_v31  ;;  %v10283_v47 = vld [vmem:[#allocation48_spill] sm:$0xff] }
 0xef8   :  { %v7377_v20 = vpop.eup %7376  ;;  %v5006_v1 = vmul.f32 %v7375_v55, %v9688_v21  ;;  %7394 = vrcp.f32 %v4975_v63  ;;  %v3378_v55 = vadd.f32 %v10283_v47, %v9044_v35 }
 0xef9   :  { %v7379_v9 = vpop.eup %7378  ;;  %v5004_v10 = vmul.f32 %v7377_v20, %v9690_v51  ;;  %7396 = vrcp.f32 %v4973_v28 }
 0xefa   :  { %v7381_v7 = vpop.eup %7380  ;;  %v5007_v36 = vmul.f32 %v7379_v9, %v9693_v8  ;;  %v3392_v9 = vadd.f32 %v10284_v0, %v9071_v29 }
 0xefb   :  { %v7383_v19 = vpop.eup %7382  ;;  %v5005_v14 = vmul.f32 %v7381_v7, %v9696_v49 }
 0xefc   :  { %v7385_v2 = vpop.eup %7384  ;;  %v5010_v25 = vmul.f32 %v7383_v19, %v7359_v11 }
 0xefd   :  { %v7387_v34 = vpop.eup %7386  ;;  %v5008_v4 = vmul.f32 %v7385_v2, %v7361_v16 }
 0xefe   :  { %v7389_v54 = vpop.eup %7388  ;;  %v9752_v32 = vadd.f32 %v5010_v25, %v5006_v1  ;;  %v5011_v21 = vmul.f32 %v7387_v34, %v7363_v22  ;;  %v10285_v1 = vld [vmem:[#allocation52_spill] sm:$0xff] }
 0xeff   :  { %v9754_v45 = vadd.f32 %v5008_v4, %v5004_v10  ;;  %v5009_v51 = vmul.f32 %v7389_v54, %v7365_v41  ;;  %v3382_v63 = vadd.f32 %v10285_v1, %v9050_v53  ;;  %v10286_v54 = vld [vmem:[#allocation96_spill] sm:$0xff] }
 0xf00   :  { %7398 = vtanh.f32 %v9752_v32  ;;  %v9757_v59 = vadd.f32 %v5011_v21, %v5007_v36  ;;  %v7391_v49 = vpop.eup %7390  ;;  %v3408_v21 = vadd.f32 %v10286_v54, %v9082_v43 }
 0xf01   :  { %7400 = vtanh.f32 %v9754_v45  ;;  %v9760_v8 = vadd.f32 %v5009_v51, %v5005_v14  ;;  %v7393_v26 = vpop.eup %7392  ;;  %v10287_v51 = vld [vmem:[#allocation80_spill] sm:$0xff] }
 0xf02   :  { %7402 = vtanh.f32 %v9757_v59  ;;  %v7395_v42 = vpop.eup %7394 }
 0xf03   :  { %7404 = vtanh.f32 %v9760_v8  ;;  %v7397_v27 = vpop.eup %7396 }
 0xf0a   :  { %v7399_v40 = vpop.eup %7398 }
 0xf0b   :  { %v7401_v37 = vpop.eup %7400  ;;  %v5022_v11 = vmul.f32 %v7399_v40, %v7391_v49  ;;  %v3398_v49 = vadd.f32 %v10287_v51, %v9054_v44 }
 0xf0c   :  { %v7403_v30 = vpop.eup %7402  ;;  %v5020_v16 = vmul.f32 %v7401_v37, %v7393_v26 }
 0xf0d   :  { %v7405_v57 = vpop.eup %7404  ;;  %v5023_v23 = vmul.f32 %v7403_v30, %v7395_v42  ;;  %v10288_v42 = vld [vmem:[#allocation100_spill] sm:$0xff] }
 0xf0e   :  { %v5021_v22 = vmul.f32 %v7405_v57, %v7397_v27  ;;  %v3412_v27 = vadd.f32 %v10288_v42, %v9084_v13  ;;  %v10289_v30 = vld [vmem:[#allocation84_spill] sm:$0xff] }
 0xf0f   :  { %v5041_v41 = vpack.c.bf16 %v5023_v23, %v5022_v11  ;;  %v3402_v57 = vadd.f32 %v10289_v30, %v9061_v60 }
 0xf10   :  { %v5040_v58 = vpack.c.bf16 %v5021_v22, %v5020_v16 }
 0xf12   :  { %6416 = vmatprep.subr.bf16.mxu0 %v5040_v58 }
 0xf13   :  { %6417 = vmatpush3.bf16.msra.mxu0 %v5040_v58 }
 0xf14   :  { %6418 = vmatprep.subr.bf16.mxu0 %v5041_v41 }
 0xf17   :  { %6419 = vmatpush3.bf16.msra.mxu0 %v5041_v41 }
 0xf1a   :  { %6421 = vmatmul.mubr.msk.bf16.vlgmr.msra.gmra.mrb[240].mxu0 %vm911_vm2, %v9599_v38 }
 0xf1b   :  { %6424 = vmatprep.mubr.msk.bf16.mxu0 %vm911_vm2, %v9606_v50 }
 0xf22   :  { %6425 = vmatmul.mubr.msk.bf16.gmra.mrb[244].mxu0 %vm911_vm2, %v9613_v12 }
 0xf23   :  { %6428 = vmatprep.mubr.msk.bf16.mxu0 %vm911_vm2, %v9620_v56 }
 0xf2a   :  { %6429 = vmatmul.mubr.msk.bf16.gmra.mrb[248].mxu0 %vm911_vm2, %v9627_v61 }
 0xf2b   :  { %6432 = vmatprep.mubr.msk.bf16.mxu0 %vm911_vm2, %v9634_v24 }
 0xf32   :  { %6433 = vmatmul.mubr.msk.bf16.gmra.mrb[252].mxu0 %vm911_vm2, %v9641_v48 }
 0xfed   :  { %v6422_v20 = vpop.f32.mrb[240].mxu0 }
 0xfee   :  { %v5141_v31 = vadd.f32 %v6422_v20, %v3388_v18  ;;  %v5076_v7 = vpop.f32.mrb[241].mxu0  ;;  %v10290_v20 = vld [vmem:[#allocation66_spill] sm:$0xff] }
 0xfef   :  { %v5139_v19 = vadd.f32 %v5076_v7, %v3378_v55  ;;  %v6423_v10 = vpop.f32.mrb[242].mxu0  ;;  %v3428_v0 = vadd.f32 %v10290_v20, %v9113_v33 }
 0xff0   :  { %v5947_v28 = vmul.f32 -1.442695, %v5141_v31  ;;  %v5142_v2 = vadd.f32 %v6423_v10, %v3392_v9  ;;  %v5079_v36 = vpop.f32.mrb[243].mxu0  ;;  %v10291_v31 = vld [vmem:[#allocation50_spill] sm:$0xff]  ;;  %v10292_v10 = vld [vmem:[#allocation69_spill] sm:$0xff] }
 0xff1   :  { %v5945_v25 = vmul.f32 -1.442695, %v5139_v19  ;;  %v5140_v34 = vadd.f32 %v5079_v36, %v3382_v63  ;;  %v3418_v7 = vadd.f32 %v10291_v31, %v10219_v39 }
 0xff2   :  { %7406 = vpow2.f32 %v5947_v28  ;;  %v5948_v14 = vmul.f32 -1.442695, %v5142_v2  ;;  %v3432_v28 = vadd.f32 %v10292_v10, %v9117_v62 }
 0xff3   :  { %7408 = vpow2.f32 %v5945_v25  ;;  %v5946_v4 = vmul.f32 -1.442695, %v5140_v34 }
 0xff4   :  { %7410 = vpow2.f32 %v5948_v14  ;;  %v10293_v14 = vld [vmem:[#allocation53_spill] sm:$0xff] }
 0xff5   :  { %7412 = vpow2.f32 %v5946_v4  ;;  %v6426_v26 = vpop.f32.mrb[244].mxu0  ;;  %v3422_v4 = vadd.f32 %v10293_v14, %v9099_v3 }
 0xff6   :  { %v5145_v40 = vadd.f32 %v6426_v26, %v3408_v21  ;;  %v5092_v37 = vpop.f32.mrb[245].mxu0 }
 0xff7   :  { %v5143_v11 = vadd.f32 %v5092_v37, %v3398_v49  ;;  %v6427_v23 = vpop.f32.mrb[246].mxu0 }
 0xff8   :  { %v5951_v16 = vmul.f32 -1.442695, %v5145_v40  ;;  %v5146_v22 = vadd.f32 %v6427_v23, %v3412_v27  ;;  %v5095_v41 = vpop.f32.mrb[247].mxu0  ;;  %v10294_v23 = vld [vmem:[#allocation98_spill] sm:$0xff] }
 0xff9   :  { %v5949_v58 = vmul.f32 -1.442695, %v5143_v11  ;;  %v5144_v46 = vadd.f32 %v5095_v41, %v3402_v57  ;;  %v10295_v41 = vld [vmem:[#allocation82_spill] sm:$0xff] }
 0xffa   :  { %7414 = vpow2.f32 %v5951_v16  ;;  %v5952_v18 = vmul.f32 -1.442695, %v5146_v22  ;;  %v3448_v16 = vadd.f32 %v10294_v23, %v9125_v17 }
 0xffb   :  { %7416 = vpow2.f32 %v5949_v58  ;;  %v5950_v47 = vmul.f32 -1.442695, %v5144_v46  ;;  %v3438_v58 = vadd.f32 %v10295_v41, %v9103_v52 }
 0xffc   :  { %v7407_v55 = vpop.eup %7406  ;;  %7418 = vpow2.f32 %v5952_v18 }
 0xffd   :  { %v7409_v9 = vpop.eup %7408  ;;  %v5193_v1 = vadd.f32 1.0, %v7407_v55  ;;  %7420 = vpow2.f32 %v5950_v47  ;;  %v6430_v63 = vpop.f32.mrb[248].mxu0  ;;  %v10296_v55 = vld [vmem:[#allocation90_spill] sm:$0xff] }
 0xffe   :  { %v7411_v19 = vpop.eup %7410  ;;  %v5191_v2 = vadd.f32 1.0, %v7409_v9  ;;  %v5149_v36 = vadd.f32 %v6430_v63, %v3428_v0  ;;  %v5108_v25 = vpop.f32.mrb[249].mxu0  ;;  %v3452_v20 = vadd.f32 %v10296_v55, %v10230_v15 }
 0xfff   :  { %v7413_v34 = vpop.eup %7412  ;;  %7422 = vrcp.f32 %v5193_v1  ;;  %v5194_v54 = vadd.f32 1.0, %v7411_v19  ;;  %v5147_v21 = vadd.f32 %v5108_v25, %v3418_v7  ;;  %v6431_v51 = vpop.f32.mrb[250].mxu0  ;;  %v10297_v1 = vld [vmem:[#allocation85_spill] sm:$0xff] }
0x1000   :  { %7424 = vrcp.f32 %v5191_v2  ;;  %v5192_v49 = vadd.f32 1.0, %v7413_v34  ;;  %v5955_v26 = vmul.f32 -1.442695, %v5149_v36  ;;  %v5150_v42 = vadd.f32 %v6431_v51, %v3432_v28  ;;  %v5111_v27 = vpop.f32.mrb[251].mxu0 }
0x1001   :  { %7426 = vrcp.f32 %v5194_v54  ;;  %v5953_v40 = vmul.f32 -1.442695, %v5147_v21  ;;  %v5148_v37 = vadd.f32 %v5111_v27, %v3422_v4  ;;  %v3442_v63 = vadd.f32 %v10297_v1, %v10232_v5 }
0x1002   :  { %7428 = vrcp.f32 %v5192_v49  ;;  %v5956_v30 = vmul.f32 -1.442695, %v5150_v42 }
0x1003   :  { %7430 = vpow2.f32 %v5955_v26  ;;  %v5954_v57 = vmul.f32 -1.442695, %v5148_v37 }
0x1004   :  { %v7415_v11 = vpop.eup %7414  ;;  %7432 = vpow2.f32 %v5953_v40 }
0x1005   :  { %v7417_v22 = vpop.eup %7416  ;;  %v5197_v46 = vadd.f32 1.0, %v7415_v11  ;;  %7434 = vpow2.f32 %v5956_v30  ;;  %v6434_v18 = vpop.f32.mrb[252].mxu0 }
0x1006   :  { %v7419_v47 = vpop.eup %7418  ;;  %v5195_v0 = vadd.f32 1.0, %v7417_v22  ;;  %7436 = vpow2.f32 %v5954_v57  ;;  %v5153_v9 = vadd.f32 %v6434_v18, %v3448_v16  ;;  %v5124_v31 = vpop.f32.mrb[253].mxu0 }
0x1007   :  { %v7421_v7 = vpop.eup %7420  ;;  %7438 = vrcp.f32 %v5197_v46  ;;  %v5198_v19 = vadd.f32 1.0, %v7419_v47  ;;  %v5151_v10 = vadd.f32 %v5124_v31, %v3438_v58  ;;  %v6435_v28 = vpop.f32.mrb[254].mxu0 }
0x1008   :  { %7440 = vrcp.f32 %v5195_v0  ;;  %v5196_v2 = vadd.f32 1.0, %v7421_v7  ;;  %v5154_v36 = vadd.f32 %v6435_v28, %v3452_v20  ;;  %v5127_v25 = vpop.f32.mrb[255].mxu0 }
0x1009   :  { %v7423_v34 = vpop.eup %7422  ;;  %7442 = vrcp.f32 %v5198_v19  ;;  %v5152_v14 = vadd.f32 %v5127_v25, %v3442_v63 }
0x100a   :  { %v7425_v4 = vpop.eup %7424  ;;  %7444 = vrcp.f32 %v5196_v2 }
0x100b   :  { %v7427_v54 = vpop.eup %7426  ;;  %7446 = vtanh.f32 %v5153_v9 }
0x100c   :  { %v7429_v21 = vpop.eup %7428  ;;  %7448 = vtanh.f32 %v5151_v10 }
0x100d   :  { %v7431_v51 = vpop.eup %7430  ;;  %7450 = vtanh.f32 %v5154_v36 }
0x100e   :  { %v7433_v49 = vpop.eup %7432  ;;  %7452 = vtanh.f32 %v5152_v14  ;;  %v5201_v37 = vadd.f32 1.0, %v7431_v51 }
0x100f   :  { %v7435_v26 = vpop.eup %7434  ;;  %v5199_v57 = vadd.f32 1.0, %v7433_v49  ;;  %v7574_v49 = vmov 0.0  }
0x1010   :  { %v7437_v42 = vpop.eup %7436  ;;  %v5202_v16 = vadd.f32 1.0, %v7435_v26  ;;  %7454 = vrcp.f32 %v5201_v37  ;;  %6456 = vmatprep.subr.bf16.mxu0 %v7574_v49  ;;  %6460 = vmatprep.mubr.msk.bf16.mxu0 %vm7575_vm3, %v7574_v49 }
0x1011   :  { %v7439_v27 = vpop.eup %7438  ;;  %v5200_v58 = vadd.f32 1.0, %v7437_v42  ;;  %7456 = vrcp.f32 %v5199_v57 }
0x1012   :  { %v7441_v40 = vpop.eup %7440  ;;  %v5233_v23 = vmul.f32 %v7439_v27, %v9752_v32  ;;  %7458 = vrcp.f32 %v5202_v16 }
0x1013   :  { %v7443_v30 = vpop.eup %7442  ;;  %v5231_v41 = vmul.f32 %v7441_v40, %v9754_v45  ;;  %7460 = vrcp.f32 %v5200_v58 }
0x1014   :  { %v7445_v11 = vpop.eup %7444  ;;  %v5234_v18 = vmul.f32 %v7443_v30, %v9757_v59 }
0x1015   :  { %v7447_v22 = vpop.eup %7446  ;;  %v5232_v20 = vmul.f32 %v7445_v11, %v9760_v8 }
0x1016   :  { %v7449_v46 = vpop.eup %7448  ;;  %v5237_v47 = vmul.f32 %v7447_v22, %v7423_v34 }
0x1017   :  { %v7451_v55 = vpop.eup %7450  ;;  %v5235_v0 = vmul.f32 %v7449_v46, %v7425_v4 }
0x1018   :  { %v7453_v9 = vpop.eup %7452  ;;  %v9814_v31 = vadd.f32 %v5237_v47, %v5233_v23  ;;  %v5238_v32 = vmul.f32 %v7451_v55, %v7427_v54 }
0x1019   :  { %v9816_v7 = vadd.f32 %v5235_v0, %v5231_v41  ;;  %v5236_v45 = vmul.f32 %v7453_v9, %v7429_v21  ;;  %v10302_v41 = vld [vmem:[#allocation88_spill] sm:$0xff] }
0x101a   :  { %7462 = vtanh.f32 %v9814_v31  ;;  %v9819_v1 = vadd.f32 %v5238_v32, %v5234_v18  ;;  %v7455_v8 = vpop.eup %7454  ;;  %v3410_v58 = vadd.f32 %v10302_v41, %v9082_v43  ;;  %v10304_v18 = vld [vmem:[#allocation92_spill] sm:$0xff] }
0x101b   :  { %7464 = vtanh.f32 %v9816_v7  ;;  %v9822_v59 = vadd.f32 %v5236_v45, %v5232_v20  ;;  %v7457_v63 = vpop.eup %7456  ;;  %v3414_v47 = vadd.f32 %v10304_v18, %v9084_v13  ;;  %v10305_v0 = vld [vmem:[#allocation76_spill] sm:$0xff] }
0x101c   :  { %7466 = vtanh.f32 %v9819_v1  ;;  %v7459_v19 = vpop.eup %7458  ;;  %v3404_v9 = vadd.f32 %v10305_v0, %v9061_v60 }
0x101d   :  { %7468 = vtanh.f32 %v9822_v59  ;;  %v7461_v10 = vpop.eup %7460 }
0x1024   :  { %v7463_v28 = vpop.eup %7462 }
0x1025   :  { %v7465_v2 = vpop.eup %7464  ;;  %v5249_v34 = vmul.f32 %v7463_v28, %v7455_v8 }
0x1026   :  { %v7467_v36 = vpop.eup %7466  ;;  %v5247_v4 = vmul.f32 %v7465_v2, %v7457_v63 }
0x1027   :  { %v7469_v25 = vpop.eup %7468  ;;  %v5250_v14 = vmul.f32 %v7467_v36, %v7459_v19  ;;  %v10306_v36 = vld [vmem:[#allocation58_spill] sm:$0xff] }
0x1028   :  { %v5248_v54 = vmul.f32 %v7469_v25, %v7461_v10  ;;  %v3430_v13 = vadd.f32 %v10306_v36, %v9113_v33 }
0x1029   :  { %v5268_v21 = vpack.c.bf16 %v5250_v14, %v5249_v34  ;;  %v10307_v34 = vld [vmem:[#allocation42_spill] sm:$0xff] }
0x102a   :  { %v5267_v51 = vpack.c.bf16 %v5248_v54, %v5247_v4  ;;  %v3420_v60 = vadd.f32 %v10307_v34, %v10219_v39 }
0x102c   :  { %6436 = vmatprep.subr.bf16.mxu1 %v5267_v51 }
0x102d   :  { %6437 = vmatpush3.bf16.msra.mxu1 %v5267_v51 }
0x102e   :  { %6438 = vmatprep.subr.bf16.mxu1 %v5268_v21 }
0x1031   :  { %6439 = vmatpush3.bf16.msra.mxu1 %v5268_v21  ;;  %v10308_v21 = vld [vmem:[#allocation61_spill] sm:$0xff] }
0x1032   :  { %v3434_v51 = vadd.f32 %v10308_v21, %v9117_v62 }
0x1034   :  { %6441 = vmatmul.mubr.msk.bf16.vlgmr.msra.gmra.mrb[240].mxu1 %vm911_vm2, %v9599_v38  ;;  %v10298_v38 = vld [vmem:[#allocation56_spill] sm:$0xff] }
0x1035   :  { %6444 = vmatprep.mubr.msk.bf16.mxu1 %vm911_vm2, %v9606_v50  ;;  %v3390_v50 = vadd.f32 %v10298_v38, %v9067_v6 }
0x103c   :  { %6445 = vmatmul.mubr.msk.bf16.gmra.mrb[244].mxu1 %vm911_vm2, %v9613_v12  ;;  %v10299_v12 = vld [vmem:[#allocation40_spill] sm:$0xff] }
0x103d   :  { %6448 = vmatprep.mubr.msk.bf16.mxu1 %vm911_vm2, %v9620_v56  ;;  %v3380_v56 = vadd.f32 %v10299_v12, %v9044_v35 }
0x1044   :  { %6449 = vmatmul.mubr.msk.bf16.gmra.mrb[248].mxu1 %vm911_vm2, %v9627_v61  ;;  %v10300_v61 = vld [vmem:[#allocation60_spill] sm:$0xff] }
0x1045   :  { %6452 = vmatprep.mubr.msk.bf16.mxu1 %vm911_vm2, %v9634_v24  ;;  %v3394_v42 = vadd.f32 %v10300_v61, %v9071_v29  ;;  %v10303_v29 = vld [vmem:[#allocation72_spill] sm:$0xff] }
0x1046   :  { %v3400_v46 = vadd.f32 %v10303_v29, %v9054_v44  ;;  %v10312_v29 = vld [vmem:[#allocation104_spill] sm:$0xff] }
0x104c   :  { %6453 = vmatmul.mubr.msk.bf16.gmra.mrb[252].mxu1 %vm911_vm2, %v9641_v48  ;;  %v10301_v48 = vld [vmem:[#allocation44_spill] sm:$0xff] }
0x104d   :  { %v3384_v40 = vadd.f32 %v10301_v48, %v9050_v53 }
0x1107   :  { %v6442_v26 = vpop.f32.mrb[240].mxu1 }
0x1108   :  { %v5368_v24 = vadd.f32 %v6442_v26, %v3390_v50  ;;  %v5303_v27 = vpop.f32.mrb[241].mxu1  ;;  %v10309_v26 = vld [vmem:[#allocation45_spill] sm:$0xff] }
0x1109   :  { %v5366_v37 = vadd.f32 %v5303_v27, %v3380_v56  ;;  %v6443_v30 = vpop.f32.mrb[242].mxu1  ;;  %v3424_v61 = vadd.f32 %v10309_v26, %v9099_v3 }
0x110a   :  { %v5967_v57 = vmul.f32 -1.442695, %v5368_v24  ;;  %v5369_v11 = vadd.f32 %v6443_v30, %v3394_v42  ;;  %v5306_v23 = vpop.f32.mrb[243].mxu1 }
0x110b   :  { %v5965_v16 = vmul.f32 -1.442695, %v5366_v37  ;;  %v5367_v22 = vadd.f32 %v5306_v23, %v3384_v40  ;;  %v10310_v23 = vld [vmem:[#allocation102_spill] sm:$0xff] }
0x110c   :  { %7470 = vpow2.f32 %v5967_v57  ;;  %v5968_v6 = vmul.f32 -1.442695, %v5369_v11  ;;  %v3450_v3 = vadd.f32 %v10310_v23, %v9125_v17 }
0x110d   :  { %7472 = vpow2.f32 %v5965_v16  ;;  %v5966_v35 = vmul.f32 -1.442695, %v5367_v22  ;;  %v10311_v22 = vld [vmem:[#allocation74_spill] sm:$0xff] }
0x110e   :  { %7474 = vpow2.f32 %v5968_v6  ;;  %v3440_v6 = vadd.f32 %v10311_v22, %v9103_v52 }
0x110f   :  { %7476 = vpow2.f32 %v5966_v35  ;;  %v6446_v53 = vpop.f32.mrb[244].mxu1 }
0x1110   :  { %v5372_v55 = vadd.f32 %v6446_v53, %v3410_v58  ;;  %v5319_v20 = vpop.f32.mrb[245].mxu1 }
0x1111   :  { %v5370_v32 = vadd.f32 %v5319_v20, %v3400_v46  ;;  %v6447_v45 = vpop.f32.mrb[246].mxu1  ;;  %v3454_v46 = vadd.f32 %v10312_v29, %v10230_v15  ;;  %v10313_v20 = vld [vmem:[#allocation77_spill] sm:$0xff] }
0x1112   :  { %v5971_v8 = vmul.f32 -1.442695, %v5372_v55  ;;  %v5373_v63 = vadd.f32 %v6447_v45, %v3414_v47  ;;  %v5322_v19 = vpop.f32.mrb[247].mxu1  ;;  %v3444_v17 = vadd.f32 %v10313_v20, %v10232_v5 }
0x1113   :  { %v5969_v43 = vmul.f32 -1.442695, %v5370_v32  ;;  %v5371_v10 = vadd.f32 %v5322_v19, %v3404_v9 }
0x1114   :  { %7478 = vpow2.f32 %v5971_v8  ;;  %v5972_v28 = vmul.f32 -1.442695, %v5373_v63 }
0x1115   :  { %7480 = vpow2.f32 %v5969_v43  ;;  %v5970_v44 = vmul.f32 -1.442695, %v5371_v10 }
0x1116   :  { %v7471_v2 = vpop.eup %7470  ;;  %7482 = vpow2.f32 %v5972_v28 }
0x1117   :  { %v7473_v25 = vpop.eup %7472  ;;  %v5420_v14 = vadd.f32 1.0, %v7471_v2  ;;  %7484 = vpow2.f32 %v5970_v44  ;;  %v6450_v4 = vpop.f32.mrb[248].mxu1 }
0x1118   :  { %v7475_v54 = vpop.eup %7474  ;;  %v5418_v38 = vadd.f32 1.0, %v7473_v25  ;;  %v5376_v50 = vadd.f32 %v6450_v4, %v3430_v13  ;;  %v5335_v12 = vpop.f32.mrb[249].mxu1 }
0x1119   :  { %v7477_v56 = vpop.eup %7476  ;;  %7486 = vrcp.f32 %v5420_v14  ;;  %v5421_v33 = vadd.f32 1.0, %v7475_v54  ;;  %v5374_v42 = vadd.f32 %v5335_v12, %v3420_v60  ;;  %v6451_v24 = vpop.f32.mrb[250].mxu1 }
0x111a   :  { %7488 = vrcp.f32 %v5418_v38  ;;  %v5419_v39 = vadd.f32 1.0, %v7477_v56  ;;  %v5975_v27 = vmul.f32 -1.442695, %v5376_v50  ;;  %v5377_v48 = vadd.f32 %v6451_v24, %v3434_v51  ;;  %v5338_v40 = vpop.f32.mrb[251].mxu1 }
0x111b   :  { %7490 = vrcp.f32 %v5421_v33  ;;  %v5973_v37 = vmul.f32 -1.442695, %v5374_v42  ;;  %v5375_v30 = vadd.f32 %v5338_v40, %v3424_v61 }
0x111c   :  { %7492 = vrcp.f32 %v5419_v39  ;;  %v5976_v62 = vmul.f32 -1.442695, %v5377_v48 }
0x111d   :  { %7494 = vpow2.f32 %v5975_v27  ;;  %v5974_v57 = vmul.f32 -1.442695, %v5375_v30 }
0x111e   :  { %v7479_v11 = vpop.eup %7478  ;;  %7496 = vpow2.f32 %v5973_v37 }
0x111f   :  { %v7481_v16 = vpop.eup %7480  ;;  %v5424_v35 = vadd.f32 1.0, %v7479_v11  ;;  %7498 = vpow2.f32 %v5976_v62  ;;  %v6454_v41 = vpop.f32.mrb[252].mxu1 }
0x1120   :  { %v7483_v58 = vpop.eup %7482  ;;  %v5422_v53 = vadd.f32 1.0, %v7481_v16  ;;  %7500 = vpow2.f32 %v5974_v57  ;;  %v5380_v18 = vadd.f32 %v6454_v41, %v3450_v3  ;;  %v5351_v47 = vpop.f32.mrb[253].mxu1  ;;  %v6509_v41 = vld [vmem:[%s9897_s7] sm:$0x3f]  }
0x1121   :  { %v7485_v55 = vpop.eup %7484  ;;  %7502 = vrcp.f32 %v5424_v35  ;;  %v5425_v0 = vadd.f32 1.0, %v7483_v58  ;;  %v5378_v9 = vadd.f32 %v5351_v47, %v3440_v6  ;;  %v6455_v32 = vpop.f32.mrb[254].mxu1 }
0x1122   :  { %7504 = vrcp.f32 %v5422_v53  ;;  %v5423_v52 = vadd.f32 1.0, %v7485_v55  ;;  %v5381_v45 = vadd.f32 %v6455_v32, %v3454_v46  ;;  %v5354_v8 = vpop.f32.mrb[255].mxu1  ;;  %v5487_v58 = vpop.permute.xlu0 %5486 }
0x1123   :  { %v7487_v63 = vpop.eup %7486  ;;  %7506 = vrcp.f32 %v5425_v0  ;;  %v5379_v19 = vadd.f32 %v5354_v8, %v3444_v17 }
0x1124   :  { %v7489_v15 = vpop.eup %7488  ;;  %7508 = vrcp.f32 %v5423_v52 }
0x1125   :  { %v7491_v43 = vpop.eup %7490  ;;  %7510 = vtanh.f32 %v5380_v18  ;;  %v5492_v18 = vpop.permute.xlu1 %5491 }
0x1126   :  { %v7493_v10 = vpop.eup %7492  ;;  %7512 = vtanh.f32 %v5378_v9 }
0x1127   :  { %v7495_v28 = vpop.eup %7494  ;;  %7514 = vtanh.f32 %v5381_v45 }
0x1128   :  { %v7497_v5 = vpop.eup %7496  ;;  %7516 = vtanh.f32 %v5379_v19  ;;  %v5428_v25 = vadd.f32 1.0, %v7495_v28 }
0x1129   :  { %v7499_v44 = vpop.eup %7498  ;;  %v5426_v60 = vadd.f32 1.0, %v7497_v5 }
0x112a   :  { %v7501_v2 = vpop.eup %7500  ;;  %v5429_v54 = vadd.f32 1.0, %v7499_v44  ;;  %7518 = vrcp.f32 %v5428_v25 }
0x112b   :  { %v7503_v36 = vpop.eup %7502  ;;  %v5427_v38 = vadd.f32 1.0, %v7501_v2  ;;  %7520 = vrcp.f32 %v5426_v60 }
0x112c   :  { %v7505_v13 = vpop.eup %7504  ;;  %v5460_v4 = vmul.f32 %v7503_v36, %v9814_v31  ;;  %7522 = vrcp.f32 %v5429_v54 }
0x112d   :  { %v7507_v34 = vpop.eup %7506  ;;  %v5458_v51 = vmul.f32 %v7505_v13, %v9816_v7  ;;  %7524 = vrcp.f32 %v5427_v38 }
0x112e   :  { %v7509_v14 = vpop.eup %7508  ;;  %v5461_v12 = vmul.f32 %v7507_v34, %v9819_v1 }
0x112f   :  { %v7511_v21 = vpop.eup %7510  ;;  %v5459_v61 = vmul.f32 %v7509_v14, %v9822_v59 }
0x1130   :  { %v7513_v50 = vpop.eup %7512  ;;  %v5464_v56 = vmul.f32 %v7511_v21, %v7487_v63 }
0x1131   :  { %v7515_v26 = vpop.eup %7514  ;;  %v5462_v33 = vmul.f32 %v7513_v50, %v7489_v15 }
0x1132   :  { %v7517_v42 = vpop.eup %7516  ;;  %v5468_v24 = vadd.f32 %v5464_v56, %v5460_v4  ;;  %v5465_v39 = vmul.f32 %v7515_v26, %v7491_v43 }
0x1133   :  { %v5466_v31 = vadd.f32 %v5462_v33, %v5458_v51  ;;  %v5463_v27 = vmul.f32 %v7517_v42, %v7493_v10 }
0x1134   :  { %7526 = vtanh.f32 %v5468_v24  ;;  %v5469_v7 = vadd.f32 %v5465_v39, %v5461_v12  ;;  %v7519_v1 = vpop.eup %7518 }
0x1135   :  { %7528 = vtanh.f32 %v5466_v31  ;;  %v5467_v48 = vadd.f32 %v5463_v27, %v5459_v61  ;;  %v7521_v40 = vpop.eup %7520 }
0x1136   :  { %7530 = vtanh.f32 %v5469_v7  ;;  %v7523_v37 = vpop.eup %7522 }
0x1137   :  { %7532 = vtanh.f32 %v5467_v48  ;;  %v7525_v30 = vpop.eup %7524 }
0x113e   :  { %v7527_v59 = vpop.eup %7526 }
0x113f   :  { %v7529_v62 = vpop.eup %7528  ;;  %v5476_v57 = vmul.f32 %v7527_v59, %v7519_v1 }
0x1140   :  { %v7531_v11 = vpop.eup %7530  ;;  %v5474_v23 = vmul.f32 %v7529_v62, %v7521_v40 }
0x1141   :  { %v7533_v3 = vpop.eup %7532  ;;  %v5477_v16 = vmul.f32 %v7531_v11, %v7523_v37 }
0x1142   :  { %v5475_v22 = vmul.f32 %v7533_v3, %v7525_v30 }
0x1143   :  { %v5481_v6 = vpack.c.bf16 %v5477_v16, %v5476_v57 }
0x1144   :  { %v5480_v35 = vpack.c.bf16 %v5475_v22, %v5474_v23 }
0x1146   :  { %6457 = vmatpush3.bf16.msra.mxu0 %v5480_v35 }
0x1147   :  { %6458 = vmatprep.subr.bf16.mxu0 %v7574_v49 }
0x114a   :  { %6459 = vmatpush3.bf16.msra.mxu0 %v5481_v6 }
0x114d   :  { %6461 = vmatmul.mubr.msk.bf16.vlgmr.msra.gmra.mrb[0].mxu0 %vm911_vm2, %v6509_v41 }
0x1220   :  { %v5536_v29 = vpop.f32.mrb[0].mxu0 }
0x1221   :  { %v5537_v46 = vadd.f32 %v5536_v29, %v5487_v58  ;;  %v6462_v53 = vpop.f32.mrb[1].mxu0 }
0x1222   :  { %v5539_v47 = vpop.f32.mrb[2].mxu0 }
0x1223   :  { %5543 = vst [vmem:[%s9898_s9] sm:$0xff] %v5537_v46  ;;  %v5540_v55 = vadd.f32 %v5539_v47, %v5492_v18  ;;  %v6463_v20 = vpop.f32.mrb[3].mxu0 }
0x1225   :  { %5544 = vst [vmem:[%s9898_s9 + $0x8] sm:$0xf] %v5540_v55 }

</bundles_post_ra>
